<compile_context>
chip_gen: v6e
topology: v6e:2x2x1
jax: 0.10.0
libtpu: 0.0.40
codegen_flags: <defaults>
</compile_context>

<pallas_src>
import functools
import math

import jax
import jax.numpy as jnp
from jax.experimental import pallas as pl
from jax.experimental.pallas import tpu as pltpu


def _gelu_tanh(x):
    # GELU with tanh approximation, matching nn.GELU(approximate='tanh').
    c = math.sqrt(2.0 / math.pi)
    return 0.5 * x * (1.0 + jnp.tanh(c * (x + 0.044715 * x * x * x)))


def geglu_mlp_kernel(x_ref, gamma_ref, beta_ref, w0_ref, b0_ref, w1_ref, b1_ref,
                     w2_ref, b2_ref, o_ref, xn_ref, acc_ref, *, ew_dtype):
    h = pl.program_id(1)

    @pl.when(h == 0)
    def _():
        # LayerNorm (eps=1e-6) in f32, computed once per token tile; normalized
        # activations stay resident (bf16) for every hidden chunk of this tile.
        x = x_ref[...].astype(jnp.float32)
        mean = jnp.mean(x, axis=-1, keepdims=True)
        xc = x - mean
        var = jnp.mean(xc * xc, axis=-1, keepdims=True)
        xn = xc * jax.lax.rsqrt(var + 1e-6) * gamma_ref[...].astype(jnp.float32) \
             + beta_ref[...].astype(jnp.float32)
        xn_ref[...] = xn.astype(xn_ref.dtype)
        acc_ref[...] = jnp.zeros_like(acc_ref)

    xn = xn_ref[...]                                                    # (tm, C) bf16
    # Gate / up projections for this hidden chunk: bf16 MXU matmuls, f32 accumulation.
    gate = jnp.dot(xn, w0_ref[...], preferred_element_type=jnp.float32) + b0_ref[...]
    up = jnp.dot(xn, w1_ref[...], preferred_element_type=jnp.float32) + b1_ref[...]

    # GeGLU elementwise in bf16 (native VPU/EUP dtype on v6e/v7x); f32 partial sums.
    hact = _gelu_tanh(gate.astype(ew_dtype)) * up.astype(ew_dtype)      # (tm, th)
    acc_ref[...] += jnp.dot(hact.astype(w2_ref.dtype), w2_ref[...],
                            preferred_element_type=jnp.float32)

    @pl.when(h == pl.num_programs(1) - 1)
    def _():
        o_ref[...] = (acc_ref[...] + b2_ref[...]).astype(o_ref.dtype)


def _round_up(n, m):
    return ((n + m - 1) // m) * m


def pack_params(params, compute_dtype=jnp.bfloat16):
    """One-time packing: cast weights to the MXU dtype; biases to lane-dense 2-D f32."""
    C, H = params["w0"].shape
    assert C % 128 == 0 and H % 128 == 0, (
        "in_features / hidden_features must be multiples of 128 for lane-dense tiles "
        "(pad the weight columns at pack time otherwise)")
    return {
        "gamma": params["gamma"].reshape(1, C).astype(jnp.float32),
        "beta": params["beta"].reshape(1, C).astype(jnp.float32),
        "w0": params["w0"].astype(compute_dtype),
        "b0": params["b0"].reshape(1, H).astype(jnp.float32),
        "w1": params["w1"].astype(compute_dtype),
        "b1": params["b1"].reshape(1, H).astype(jnp.float32),
        "w2": params["w2"].astype(compute_dtype),
        "b2": params["b2"].reshape(1, C).astype(jnp.float32),
    }


def _pick_th(H, th_max=1024):
    """Largest multiple-of-128 hidden chunk <= th_max that divides H (or H itself)."""
    if H <= th_max:
        return H
    best, t = 128, 128
    while t <= th_max:
        if H % t == 0:
            best = t
        t += 128
    return best


def _vmem_limit_bytes(tm, C, th, grid_h, io_itemsize, w_itemsize):
    w_buf = 1 if grid_h == 1 else 2                       # Buffered(1) when weights resident
    weights = w_buf * (2 * C * th + th * C) * w_itemsize  # w0 / w1 / w2 chunks
    biases = w_buf * 2 * th * 4 + 3 * C * 4               # b0/b1 chunks + gamma/beta/b2
    io = 2 * 2 * tm * C * io_itemsize                     # x & out tiles, double-buffered
    scratch = tm * C * (2 + 4)                            # xn (bf16) + acc (f32)
    interm = 3 * tm * th * 4                              # gate / up / hact working set
    est = weights + biases + io + scratch + interm + (8 << 20)   # + compiler scratch headroom
    try:
        cap = int(getattr(pltpu.get_tpu_info(), "vmem_capacity_bytes", 64 << 20))
    except Exception:
        cap = 64 << 20                                    # most conservative (v7x per-TC)
    return int(min(max(est, 32 << 20), cap - (2 << 20)))


def geglu_mlp(x, packed, *, tm=256, th=None, elementwise_dtype=jnp.bfloat16):
    """x: (..., C). packed: output of pack_params(). Returns same shape/dtype as x.

    tm: token tile (v6e can profitably use 512; keep 256/128 on v5e / small M).
    th: hidden-dim chunk (multiple of 128 dividing hidden_features); None = auto.
    """
    orig_shape = x.shape
    C = orig_shape[-1]
    H = packed["w0"].shape[1]
    assert packed["w0"].shape == (C, H) and packed["w2"].shape == (H, C)

    if th is None:
        th = _pick_th(H)
    assert th % 128 == 0 and H % th == 0, "th must be a multiple of 128 dividing hidden_features"
    grid_h = H // th

    x2 = x.reshape(-1, C)
    M = x2.shape[0]

    # dtype-dependent sublane multiple (8 for f32, 16 for bf16).
    sub = max(8, 32 // jnp.dtype(x2.dtype).itemsize)
    tm = _round_up(min(tm, _round_up(M, sub)), sub)
    grid_m = pl.cdiv(M, tm)
    # Ragged last token tile is handled by Pallas (partial-block reads/writes are
    # clamped/masked) and rows are independent -> no jnp.pad HBM round trip needed.

    const1 = dict(pipeline_mode=pl.Buffered(1))   # block index never changes: single buffer
    w_kw = const1 if grid_h == 1 else {}          # weights fully resident only when not H-tiled

    io_item = jnp.dtype(x.dtype).itemsize
    w_item = jnp.dtype(packed["w0"].dtype).itemsize

    cost = pl.CostEstimate(
        flops=6 * M * C * H,                      # 2*M*C*2H (gate/up) + 2*M*H*C (down)
        transcendentals=M * H,                    # tanh
        bytes_accessed=2 * M * C * io_item + 3 * C * H * w_item + (2 * H + 3 * C) * 4,
    )

    kernel = functools.partial(geglu_mlp_kernel, ew_dtype=elementwise_dtype)

    out = pl.pallas_call(
        kernel,
        out_shape=jax.ShapeDtypeStruct((M, C), x.dtype),
        grid_spec=pltpu.PrefetchScalarGridSpec(
            num_scalar_prefetch=0,
            grid=(grid_m, grid_h),
            in_specs=[
                pl.BlockSpec((tm, C), lambda i, h: (i, 0)),              # x tile
                pl.BlockSpec((1, C), lambda i, h: (0, 0), **const1),     # gamma
                pl.BlockSpec((1, C), lambda i, h: (0, 0), **const1),     # beta
                pl.BlockSpec((C, th), lambda i, h: (0, h), **w_kw),      # w0 chunk
                pl.BlockSpec((1, th), lambda i, h: (0, h), **w_kw),      # b0 chunk
                pl.BlockSpec((C, th), lambda i, h: (0, h), **w_kw),      # w1 chunk
                pl.BlockSpec((1, th), lambda i, h: (0, h), **w_kw),      # b1 chunk
                pl.BlockSpec((th, C), lambda i, h: (h, 0), **w_kw),      # w2 chunk
                pl.BlockSpec((1, C), lambda i, h: (0, 0), **const1),     # b2
            ],
            out_specs=pl.BlockSpec((tm, C), lambda i, h: (i, 0)),
            scratch_shapes=[
                pltpu.VMEM((tm, C), packed["w0"].dtype),   # normalized activations (per tile)
                pltpu.VMEM((tm, C), jnp.float32),          # down-projection accumulator
            ],
        ),
        compiler_params=pltpu.CompilerParams(
            dimension_semantics=("parallel", "arbitrary"),
            vmem_limit_bytes=_vmem_limit_bytes(tm, C, th, grid_h, io_item, w_item),
        ),
        cost_estimate=cost,
    )(x2, packed["gamma"], packed["beta"], packed["w0"], packed["b0"],
      packed["w1"], packed["b1"], packed["w2"], packed["b2"])

    return out.reshape(orig_shape)


def init_params(key, in_features, hidden_features, dtype=jnp.float32):
    """Deterministic synthetic parameters mirroring the nn.Module shapes."""
    ks = jax.random.split(key, 6)
    s_in = 1.0 / math.sqrt(in_features)
    s_hid = 1.0 / math.sqrt(hidden_features)
    return {
        "gamma": jnp.ones((in_features,), dtype),
        "beta": jnp.zeros((in_features,), dtype),
        # stored (in, out) == transpose of PyTorch's (out, in)
        "w0": jax.random.uniform(ks[0], (in_features, hidden_features), dtype, -s_in, s_in),
        "b0": jax.random.uniform(ks[1], (hidden_features,), dtype, -s_in, s_in),
        "w1": jax.random.uniform(ks[2], (in_features, hidden_features), dtype, -s_in, s_in),
        "b1": jax.random.uniform(ks[3], (hidden_features,), dtype, -s_in, s_in),
        "w2": jax.random.uniform(ks[4], (hidden_features, in_features), dtype, -s_hid, s_hid),
        "b2": jax.random.uniform(ks[5], (in_features,), dtype, -s_hid, s_hid),
    }


def geglu_mlp_ref(x, p, compute_dtype=jnp.bfloat16):
    """Pure-JAX reference following the same precision recipe (bf16 matmuls, f32 accum)."""
    xf = x.astype(jnp.float32)
    mean = jnp.mean(xf, axis=-1, keepdims=True)
    var = jnp.mean((xf - mean) ** 2, axis=-1, keepdims=True)
    xn = (xf - mean) * jax.lax.rsqrt(var + 1e-6) * p["gamma"] + p["beta"]
    xn = xn.astype(compute_dtype)
    h0 = jnp.dot(xn, p["w0"].astype(compute_dtype),
                 preferred_element_type=jnp.float32) + p["b0"]
    h1 = jnp.dot(xn, p["w1"].astype(compute_dtype),
                 preferred_element_type=jnp.float32) + p["b1"]
    h = (_gelu_tanh(h0) * h1).astype(compute_dtype)
    out = jnp.dot(h, p["w2"].astype(compute_dtype),
                  preferred_element_type=jnp.float32) + p["b2"]
    return out.astype(x.dtype)


if __name__ == "__main__":
    key = jax.random.PRNGKey(0)
    k_x, k_p = jax.random.split(key)

    # Small but lane-dense shapes (C, H multiples of 128).
    batch, seq, in_features, hidden_features = 2, 256, 256, 512
    x = jax.random.normal(k_x, (batch, seq, in_features), jnp.float32)
    params = init_params(k_p, in_features, hidden_features)
    packed = pack_params(params)

    # 1) Resident-weight path (grid_h == 1 -> Buffered(1) on every weight spec).
    out = jax.block_until_ready(geglu_mlp(x, packed, tm=256))
    ref = geglu_mlp_ref(x, params)
    assert out.shape == x.shape
    err = jnp.max(jnp.abs(out - ref))
    assert jnp.allclose(out, ref, atol=2e-2, rtol=2e-2), f"max err {err}"

    # 2) Hidden-dim-tiled path (grid_h == 2) + ragged token count (no jnp.pad round trip).
    x_ragged = x[:, :200]                       # M = 400, not a multiple of tm
    out2 = jax.block_until_ready(geglu_mlp(x_ragged, packed, tm=256, th=256))
    ref2 = geglu_mlp_ref(x_ragged, params)
    assert out2.shape == x_ragged.shape
    err2 = jnp.max(jnp.abs(out2 - ref2))
    assert jnp.allclose(out2, ref2, atol=2e-2, rtol=2e-2), f"max err {err2}"

    print("KERNEL_OK")
</pallas_src>

<mosaic_0001>
module attributes {stable_mosaic.version = 11 : i64} {
  func.func @geglu_mlp_kernel(%arg0: i32, %arg1: i32, %arg2: memref<256x256xf32, #tpu.memory_space<vmem>>, %arg3: memref<1x256xf32, #tpu.memory_space<vmem>>, %arg4: memref<1x256xf32, #tpu.memory_space<vmem>>, %arg5: memref<256x512xbf16, #tpu.memory_space<vmem>>, %arg6: memref<1x512xf32, #tpu.memory_space<vmem>>, %arg7: memref<256x512xbf16, #tpu.memory_space<vmem>>, %arg8: memref<1x512xf32, #tpu.memory_space<vmem>>, %arg9: memref<512x256xbf16, #tpu.memory_space<vmem>>, %arg10: memref<1x256xf32, #tpu.memory_space<vmem>>, %arg11: memref<256x256xf32, #tpu.memory_space<vmem>>, %arg12: memref<256x256xbf16, #tpu.memory_space<vmem>>, %arg13: memref<256x256xf32, #tpu.memory_space<vmem>>) attributes {dimension_semantics = [#tpu.dimension_semantics<parallel>, #tpu.dimension_semantics<arbitrary>], iteration_bounds = array<i64: 2, 1>, scalar_prefetch = 0 : i64, scratch_operands = 2 : i64, tpu.core_type = #tpu.core_type<tc>, window_params = [{transform_indices = @transform_0, window_bounds = array<i64: 256, 256>}, {pipeline_mode = #tpu.pipeline_mode<synchronous>, transform_indices = @transform_1, window_bounds = array<i64: 1, 256>}, {pipeline_mode = #tpu.pipeline_mode<synchronous>, transform_indices = @transform_2, window_bounds = array<i64: 1, 256>}, {pipeline_mode = #tpu.pipeline_mode<synchronous>, transform_indices = @transform_3, window_bounds = array<i64: 256, 512>}, {pipeline_mode = #tpu.pipeline_mode<synchronous>, transform_indices = @transform_4, window_bounds = array<i64: 1, 512>}, {pipeline_mode = #tpu.pipeline_mode<synchronous>, transform_indices = @transform_5, window_bounds = array<i64: 256, 512>}, {pipeline_mode = #tpu.pipeline_mode<synchronous>, transform_indices = @transform_6, window_bounds = array<i64: 1, 512>}, {pipeline_mode = #tpu.pipeline_mode<synchronous>, transform_indices = @transform_7, window_bounds = array<i64: 512, 256>}, {pipeline_mode = #tpu.pipeline_mode<synchronous>, transform_indices = @transform_8, window_bounds = array<i64: 1, 256>}, {transform_indices = @transform_9, window_bounds = array<i64: 256, 256>}]} {
    %c0_i32 = arith.constant 0 : i32
    %0 = arith.cmpi eq, %arg1, %c0_i32 : i32
    %1 = arith.extui %0 : i1 to i32
    %c0_i32_0 = arith.constant 0 : i32
    %2 = arith.cmpi ne, %1, %c0_i32_0 : i32
    scf.if %2 {
      %c0_24 = arith.constant 0 : index
      %c0_25 = arith.constant 0 : index
      %38 = vector.load %arg2[%c0_24, %c0_25] : memref<256x256xf32, #tpu.memory_space<vmem>>, vector<256x256xf32>
      %cst_26 = arith.constant dense<0.000000e+00> : vector<256xf32>
      %39 = vector.multi_reduction <add>, %38, %cst_26 [1] : vector<256x256xf32> to vector<256xf32>
      %40 = vector.shape_cast %39 : vector<256xf32> to vector<256x1xf32>
      %cst_27 = arith.constant 2.560000e+02 : f32
      %41 = vector.broadcast %cst_27 : f32 to vector<256x1xf32>
      %42 = arith.divf %40, %41 : vector<256x1xf32>
      %43 = vector.broadcast %42 : vector<256x1xf32> to vector<256x256xf32>
      %44 = arith.subf %38, %43 : vector<256x256xf32>
      %45 = arith.mulf %44, %44 : vector<256x256xf32>
      %cst_28 = arith.constant dense<0.000000e+00> : vector<256xf32>
      %46 = vector.multi_reduction <add>, %45, %cst_28 [1] : vector<256x256xf32> to vector<256xf32>
      %47 = vector.shape_cast %46 : vector<256xf32> to vector<256x1xf32>
      %cst_29 = arith.constant 2.560000e+02 : f32
      %48 = vector.broadcast %cst_29 : f32 to vector<256x1xf32>
      %49 = arith.divf %47, %48 : vector<256x1xf32>
      %cst_30 = arith.constant 9.99999997E-7 : f32
      %50 = vector.broadcast %cst_30 : f32 to vector<256x1xf32>
      %51 = arith.addf %49, %50 : vector<256x1xf32>
      %52 = math.rsqrt %51 : vector<256x1xf32>
      %53 = vector.broadcast %52 : vector<256x1xf32> to vector<256x256xf32>
      %54 = arith.mulf %44, %53 : vector<256x256xf32>
      %c0_31 = arith.constant 0 : index
      %c0_32 = arith.constant 0 : index
      %55 = vector.load %arg3[%c0_31, %c0_32] : memref<1x256xf32, #tpu.memory_space<vmem>>, vector<1x256xf32>
      %56 = vector.broadcast %55 : vector<1x256xf32> to vector<256x256xf32>
      %57 = arith.mulf %54, %56 : vector<256x256xf32>
      %c0_33 = arith.constant 0 : index
      %c0_34 = arith.constant 0 : index
      %58 = vector.load %arg4[%c0_33, %c0_34] : memref<1x256xf32, #tpu.memory_space<vmem>>, vector<1x256xf32>
      %59 = vector.broadcast %58 : vector<1x256xf32> to vector<256x256xf32>
      %60 = arith.addf %57, %59 : vector<256x256xf32>
      %61 = arith.truncf %60 : vector<256x256xf32> to vector<256x256xbf16>
      %c0_35 = arith.constant 0 : index
      %c0_36 = arith.constant 0 : index
      %62 = vector.load %arg12[%c0_35, %c0_36] : memref<256x256xbf16, #tpu.memory_space<vmem>>, vector<256x256xbf16>
      tpu.vector_store %arg12[%c0_35, %c0_36], %61 {strides = array<i32>} : memref<256x256xbf16, #tpu.memory_space<vmem>>, vector<256x256xbf16>,
      %cst_37 = arith.constant 0.000000e+00 : f32
      %63 = vector.broadcast %cst_37 : f32 to vector<256x256xf32>
      %c0_38 = arith.constant 0 : index
      %c0_39 = arith.constant 0 : index
      %64 = vector.load %arg13[%c0_38, %c0_39] : memref<256x256xf32, #tpu.memory_space<vmem>>, vector<256x256xf32>
      tpu.vector_store %arg13[%c0_38, %c0_39], %63 {strides = array<i32>} : memref<256x256xf32, #tpu.memory_space<vmem>>, vector<256x256xf32>,
    } else {
    }
    %c0 = arith.constant 0 : index
    %c0_1 = arith.constant 0 : index
    %3 = vector.load %arg12[%c0, %c0_1] : memref<256x256xbf16, #tpu.memory_space<vmem>>, vector<256x256xbf16>
    %c0_2 = arith.constant 0 : index
    %c0_3 = arith.constant 0 : index
    %4 = vector.load %arg5[%c0_2, %c0_3] : memref<256x512xbf16, #tpu.memory_space<vmem>>, vector<256x512xbf16>
    %cst = arith.constant dense<0.000000e+00> : vector<256x512xf32>
    %5 = tpu.matmul %3, %4, %cst {dimension_numbers = #tpu.dot_dimension_numbers<[1], [0], [0], [1], [0, 0, 1, 1], [], []>} : vector<256x256xbf16>, vector<256x512xbf16>, vector<256x512xf32> -> vector<256x512xf32>
    %c0_4 = arith.constant 0 : index
    %c0_5 = arith.constant 0 : index
    %6 = vector.load %arg6[%c0_4, %c0_5] : memref<1x512xf32, #tpu.memory_space<vmem>>, vector<1x512xf32>
    %7 = vector.broadcast %6 : vector<1x512xf32> to vector<256x512xf32>
    %8 = arith.addf %5, %7 : vector<256x512xf32>
    %c0_6 = arith.constant 0 : index
    %c0_7 = arith.constant 0 : index
    %9 = vector.load %arg7[%c0_6, %c0_7] : memref<256x512xbf16, #tpu.memory_space<vmem>>, vector<256x512xbf16>
    %cst_8 = arith.constant dense<0.000000e+00> : vector<256x512xf32>
    %10 = tpu.matmul %3, %9, %cst_8 {dimension_numbers = #tpu.dot_dimension_numbers<[1], [0], [0], [1], [0, 0, 1, 1], [], []>} : vector<256x256xbf16>, vector<256x512xbf16>, vector<256x512xf32> -> vector<256x512xf32>
    %c0_9 = arith.constant 0 : index
    %c0_10 = arith.constant 0 : index
    %11 = vector.load %arg8[%c0_9, %c0_10] : memref<1x512xf32, #tpu.memory_space<vmem>>, vector<1x512xf32>
    %12 = vector.broadcast %11 : vector<1x512xf32> to vector<256x512xf32>
    %13 = arith.addf %10, %12 : vector<256x512xf32>
    %14 = arith.truncf %8 : vector<256x512xf32> to vector<256x512xbf16>
    %cst_11 = arith.constant 5.000000e-01 : bf16
    %15 = vector.broadcast %cst_11 : bf16 to vector<256x512xbf16>
    %16 = arith.mulf %15, %14 : vector<256x512xbf16>
    %cst_12 = arith.constant 4.467770e-02 : bf16
    %17 = vector.broadcast %cst_12 : bf16 to vector<256x512xbf16>
    %18 = arith.mulf %17, %14 : vector<256x512xbf16>
    %19 = arith.mulf %18, %14 : vector<256x512xbf16>
    %20 = arith.mulf %19, %14 : vector<256x512xbf16>
    %21 = arith.addf %14, %20 : vector<256x512xbf16>
    %cst_13 = arith.constant 7.968750e-01 : bf16
    %22 = vector.broadcast %cst_13 : bf16 to vector<256x512xbf16>
    %23 = arith.mulf %22, %21 : vector<256x512xbf16>
    %24 = math.tanh %23 : vector<256x512xbf16>
    %cst_14 = arith.constant 1.000000e+00 : bf16
    %25 = vector.broadcast %cst_14 : bf16 to vector<256x512xbf16>
    %26 = arith.addf %25, %24 : vector<256x512xbf16>
    %27 = arith.mulf %16, %26 : vector<256x512xbf16>
    %28 = arith.truncf %13 : vector<256x512xf32> to vector<256x512xbf16>
    %29 = arith.mulf %27, %28 : vector<256x512xbf16>
    %c0_15 = arith.constant 0 : index
    %c0_16 = arith.constant 0 : index
    %30 = vector.load %arg13[%c0_15, %c0_16] : memref<256x256xf32, #tpu.memory_space<vmem>>, vector<256x256xf32>
    %c0_17 = arith.constant 0 : index
    %c0_18 = arith.constant 0 : index
    %31 = vector.load %arg9[%c0_17, %c0_18] : memref<512x256xbf16, #tpu.memory_space<vmem>>, vector<512x256xbf16>
    %cst_19 = arith.constant dense<0.000000e+00> : vector<256x256xf32>
    %32 = tpu.matmul %29, %31, %cst_19 {dimension_numbers = #tpu.dot_dimension_numbers<[1], [0], [0], [1], [0, 0, 1, 1], [], []>} : vector<256x512xbf16>, vector<512x256xbf16>, vector<256x256xf32> -> vector<256x256xf32>
    %33 = arith.addf %30, %32 : vector<256x256xf32>
    %c0_20 = arith.constant 0 : index
    %c0_21 = arith.constant 0 : index
    %34 = vector.load %arg13[%c0_20, %c0_21] : memref<256x256xf32, #tpu.memory_space<vmem>>, vector<256x256xf32>
    tpu.vector_store %arg13[%c0_20, %c0_21], %33 {strides = array<i32>} : memref<256x256xf32, #tpu.memory_space<vmem>>, vector<256x256xf32>,
    %c0_i32_22 = arith.constant 0 : i32
    %35 = arith.cmpi eq, %arg1, %c0_i32_22 : i32
    %36 = arith.extui %35 : i1 to i32
    %c0_i32_23 = arith.constant 0 : i32
    %37 = arith.cmpi ne, %36, %c0_i32_23 : i32
    scf.if %37 {
      %c0_24 = arith.constant 0 : index
      %c0_25 = arith.constant 0 : index
      %38 = vector.load %arg13[%c0_24, %c0_25] : memref<256x256xf32, #tpu.memory_space<vmem>>, vector<256x256xf32>
      %c0_26 = arith.constant 0 : index
      %c0_27 = arith.constant 0 : index
      %39 = vector.load %arg10[%c0_26, %c0_27] : memref<1x256xf32, #tpu.memory_space<vmem>>, vector<1x256xf32>
      %40 = vector.broadcast %39 : vector<1x256xf32> to vector<256x256xf32>
      %41 = arith.addf %38, %40 : vector<256x256xf32>
      %c0_28 = arith.constant 0 : index
      %c0_29 = arith.constant 0 : index
      %42 = vector.load %arg11[%c0_28, %c0_29] : memref<256x256xf32, #tpu.memory_space<vmem>>, vector<256x256xf32>
      tpu.vector_store %arg11[%c0_28, %c0_29], %41 {strides = array<i32>} : memref<256x256xf32, #tpu.memory_space<vmem>>, vector<256x256xf32>,
    } else {
    }
    return
  }
  func.func @transform_0(%arg0: i32, %arg1: i32) -> (i32, i32) {
    %c0_i32 = arith.constant 0 : i32
    %c0_i32_0 = arith.constant 0 : i32
    return %arg0, %c0_i32 : i32, i32
  }
  func.func @transform_1(%arg0: i32, %arg1: i32) -> (i32, i32) {
    %c0_i32 = arith.constant 0 : i32
    %c0_i32_0 = arith.constant 0 : i32
    %c0_i32_1 = arith.constant 0 : i32
    return %c0_i32, %c0_i32_0 : i32, i32
  }
  func.func @transform_2(%arg0: i32, %arg1: i32) -> (i32, i32) {
    %c0_i32 = arith.constant 0 : i32
    %c0_i32_0 = arith.constant 0 : i32
    %c0_i32_1 = arith.constant 0 : i32
    return %c0_i32, %c0_i32_0 : i32, i32
  }
  func.func @transform_3(%arg0: i32, %arg1: i32) -> (i32, i32) {
    %c0_i32 = arith.constant 0 : i32
    %c0_i32_0 = arith.constant 0 : i32
    return %c0_i32, %arg1 : i32, i32
  }
  func.func @transform_4(%arg0: i32, %arg1: i32) -> (i32, i32) {
    %c0_i32 = arith.constant 0 : i32
    %c0_i32_0 = arith.constant 0 : i32
    return %c0_i32, %arg1 : i32, i32
  }
  func.func @transform_5(%arg0: i32, %arg1: i32) -> (i32, i32) {
    %c0_i32 = arith.constant 0 : i32
    %c0_i32_0 = arith.constant 0 : i32
    return %c0_i32, %arg1 : i32, i32
  }
  func.func @transform_6(%arg0: i32, %arg1: i32) -> (i32, i32) {
    %c0_i32 = arith.constant 0 : i32
    %c0_i32_0 = arith.constant 0 : i32
    return %c0_i32, %arg1 : i32, i32
  }
  func.func @transform_7(%arg0: i32, %arg1: i32) -> (i32, i32) {
    %c0_i32 = arith.constant 0 : i32
    %c0_i32_0 = arith.constant 0 : i32
    return %arg1, %c0_i32 : i32, i32
  }
  func.func @transform_8(%arg0: i32, %arg1: i32) -> (i32, i32) {
    %c0_i32 = arith.constant 0 : i32
    %c0_i32_0 = arith.constant 0 : i32
    %c0_i32_1 = arith.constant 0 : i32
    return %c0_i32, %c0_i32_0 : i32, i32
  }
  func.func @transform_9(%arg0: i32, %arg1: i32) -> (i32, i32) {
    %c0_i32 = arith.constant 0 : i32
    %c0_i32_0 = arith.constant 0 : i32
    return %arg0, %c0_i32 : i32, i32
  }
}

</mosaic_0001>

<bundles_post_ra>
// kernel: tpu_custom_call.1
= control target key start
LH: loop header
LB: loop body
LE: loop exit
PB: predicated region body
PF: predicated region fallthrough
CT: control target
= control target key end

     0   :  { %s9530_s0 = inlined_call_operand.hbm [shape: f32[512,256], index: 0, kind: input, shape index: {}]   ;;  %s9531_s1 = inlined_call_operand.hbm [shape: f32[1,256], index: 1, kind: input, shape index: {}]   ;;  %s9532_s2 = inlined_call_operand.hbm [shape: f32[1,256], index: 2, kind: input, shape index: {}]   ;;  %s9533_s3 = inlined_call_operand.hbm [shape: bf16[256,512], index: 3, kind: input, shape index: {}]   ;;  %s9534_s4 = inlined_call_operand.vmem [shape: f32[1,512], index: 4, kind: input, shape index: {}]   ;;  %s9535_s5 = inlined_call_operand.hbm [shape: bf16[256,512], index: 5, kind: input, shape index: {}]   ;;  %s9536_s6 = inlined_call_operand.vmem [shape: f32[1,512], index: 6, kind: input, shape index: {}]   ;;  %s9537_s7 = inlined_call_operand.hbm [shape: bf16[512,256], index: 7, kind: input, shape index: {}]   ;;  %s9538_s8 = inlined_call_operand.vmem [shape: f32[1,256], index: 8, kind: input, shape index: {}]   ;;  %s9539_s9 = inlined_call_operand.hbm [shape: f32[512,256], index: 9, kind: output, shape index: {}]  }
   0x1   :  { %9646 = sst [smem:[#allocation81_spill]] %s9531_s1 }
   0x2   :  { %9647 = sst [smem:[#allocation82_spill]] %s9532_s2 }
   0x3   :  { %9648 = sst [smem:[#allocation83_spill]] %s9533_s3 }
   0x4   :  { %9649 = sst [smem:[#allocation84_spill]] %s9535_s5 }
   0x5   :  { %9650 = sst [smem:[#allocation85_spill]] %s9537_s7 }
   0x6   :  { %14 = vsyncpa [#allocation5], 0 }
   0x7   :  { %16 = vsyncpa [#allocation5 + $0x1], 0 }
   0x8   :  { %17 = vsyncpa [#allocation8], 0 }
   0x9   :  { %18 = vsyncpa [#allocation11], 0 }
   0xa   :  { %19 = vsyncpa [#allocation14], 0 }
   0xb   :  { %20 = vsyncpa [#allocation6], 0 }
   0xc   :  { %22 = vsyncpa [#allocation6 + $0x1], 0  ;;  %s6680_s30 = smov 0   ;;  %s6682_s10 = smov 0  }
   0xd   :  { %s6684_s11 = smov 0   ;;  %s6686_s12 = smov 0  }
   0xe   :  { %s6688_s13 = smov 0   ;;  %s6690_s14 = smov 0  }
   0xf LB: > { %s9543_s15 = sadd.s32 4294967295, %s6615_s14   ;;  %p5415_p0 = scmp.ge.s32.totalorder %s6615_s14, 1  ;;  %s6615_s14 = sphi %s6690_s14, %s28_s14   ;;  %s6611_s13 = sphi %s6688_s13, %s10032_s13   ;;  %s6607_s12 = sphi %s6686_s12, %s10031_s12   ;;  %s6603_s11 = sphi %s6684_s11, %s10030_s11   ;;  %s6599_s10 = sphi %s6682_s10, %s10029_s10   ;;  %s6595_s30 = sphi %s6680_s30, %s10028_s30  }
  0x10   : > { %p6714_p1 = scmp.eq.s32.totalorder %s9543_s15, 0  ;;  %p290_p2 = scmp.lt.s32.totalorder %s6615_s14, 3 }
  0x11   : > { %s6617_s18 = smov [#allocation7]   ;;  %s6618_s20 = smov [#allocation10]  }
  0x12   : > { %s9651_s16 = scalar_select %p6714_p1, 1, 0 }
  0x13   : > { %p6719_p3 = pnand %p5415_p0, %p290_p2  ;;  %s303_s19 = sshll.u32 %s6617_s18, 4  ;;  %s304_s19 = int_to_ptr.vmem [resolvable:$true] %s303_s19 }
  0x14   : > { %s327_s21 = sshll.u32 %s6618_s20, 4  ;;  %s6619_s23 = smov [#allocation9]   ;;  %s328_s21 = int_to_ptr.vmem [resolvable:$true] %s327_s21 }
  0x15   : > { %s9652_s17 = scalar_select %p6719_p3, 1, 0 }
  0x16   : > { %p5790_p5 = pneg %p6719_p3  ;;  %s314_s24 = sshll.u32 %s6619_s23, 4  ;;  %s315_s24 = int_to_ptr.vmem [resolvable:$true] %s314_s24 }
  0x17   : > { %s6376_s26 = scalar_lea.vmem %s304_s19, 32  ;;  %p6384_p11 = scmp.lt.s32.totalorder %s304_s19, %s304_s19 }
  0x18   : > { %p6728_p6 = pnand %p5790_p5, %p6714_p1  ;;  %p6377_p8 = scmp.ne.s32.totalorder %s304_s19, %s6376_s26 }
  0x19   : > { %p6385_p12 = scmp.lt.s32.totalorder %s6376_s26, %s6376_s26 }
  0x1a   : > { %p6734_p7 = pneg %p6728_p6 }
  0x1b   : > { %p6386_p13 = por %p6385_p12, %p6384_p11 }
  0x1c   : > { %p6379_p9 = pnand %p6377_p8, %p6734_p7 }
  0x1e   : > { %p6380_p10 = pneg %p6379_p9 }
  0x20   : > { %p6387_p0 = pnand %p6386_p13, %p6380_p10 }
  0x22   : > { %6390 = shalt.err (!%p6387_p0)
}
  0x23   : > { %s9655_s1 = sld [smem:[#allocation81_spill]]  ;;  %s6402_s29 = scalar_lea.vmem %s328_s21, 8192 }
  0x24   : > { %p6403_p2 = scmp.ne.s32.totalorder %s328_s21, %s6402_s29  ;;  %p6410_p3 = scmp.lt.s32.totalorder %s328_s21, %s328_s21 }
  0x25   : > { %p6411_p8 = scmp.lt.s32.totalorder %s6402_s29, %s6402_s29 }
  0x26   : > { %p6405_p5 = pnand %p6403_p2, %p6734_p7 }
  0x27   : > { %p6412_p9 = por %p6411_p8, %p6410_p3 }
  0x28   : > { %p6406_p4 = pneg %p6405_p5 }
  0x29   : > { %5793 = dma.hbm_to_vmem [thread:$0]  (!%p6728_p6), %s9655_s1, 32, %s304_s19, [#allocation8]  }
  0x2a   : > { %p6413_p1 = pnand %p6412_p9, %p6406_p4 }
  0x2c   : > { %6416 = shalt.err (!%p6413_p1)
}
  0x2d   : > { %s9544_s18 = smov 256   ;;  %s9545_s20 = smov 16  }
  0x2e   : > { %s9656_s3 = sld [smem:[#allocation83_spill]]  ;;  %s6428_s26 = scalar_lea.vmem %s315_s24, 32 }
  0x2f   : > { %p6429_p10 = scmp.ne.s32.totalorder %s315_s24, %s6428_s26  ;;  %p6436_p4 = scmp.lt.s32.totalorder %s315_s24, %s315_s24 }
  0x30   : > { %p6437_p1 = scmp.lt.s32.totalorder %s6428_s26, %s6428_s26 }
  0x31   : > { %p6431_p11 = pnand %p6429_p10, %p6734_p7 }
  0x32   : > { %p6438_p12 = por %p6437_p1, %p6436_p4 }
  0x33   : > { %p6432_p3 = pneg %p6431_p11 }
  0x34   : > { %5799 = dma.hbm_to_vmem [thread:$0]  (!%p6728_p6), %s9656_s3, 8192, %s328_s21, [#allocation11], %s9544_s18, %s9544_s18, %s9545_s20  }
  0x35   : > { %p6439_p13 = pnand %p6438_p12, %p6432_p3 }
  0x37   : > { %6442 = shalt.err (!%p6439_p13)
}
  0x38   : > { %s9657_s2 = sld [smem:[#allocation82_spill]]  ;;  %s6622_s29 = smov [#allocation12]  }
  0x39   : > { %s351_s21 = sshll.u32 %s6622_s29, 4  ;;  %s6623_s23 = smov [#allocation13]   ;;  %s352_s21 = int_to_ptr.vmem [resolvable:$true] %s351_s21 }
  0x3a   : > { %s376_s19 = sshll.u32 %s6623_s23, 4  ;;  %s6454_s15 = scalar_lea.vmem %s352_s21, 8192  ;;  %s377_s19 = int_to_ptr.vmem [resolvable:$true] %s376_s19 }
  0x3b   : > { %p6455_p0 = scmp.ne.s32.totalorder %s352_s21, %s6454_s15  ;;  %p6462_p8 = scmp.lt.s32.totalorder %s352_s21, %s352_s21 }
  0x3c   : > { %p6463_p9 = scmp.lt.s32.totalorder %s6454_s15, %s6454_s15 }
  0x3d   : > { %p6457_p2 = pnand %p6455_p0, %p6734_p7 }
  0x3e   : > { %5796 = dma.hbm_to_vmem [thread:$0]  (!%p6728_p6), %s9657_s2, 32, %s315_s24, [#allocation8]  }
  0x3f   : > { %p6458_p5 = pneg %p6457_p2  ;;  %p6464_p10 = por %p6463_p9, %p6462_p8 }
  0x41   : > { %p6465_p11 = pnand %p6464_p10, %p6458_p5 }
  0x43   : > { %6468 = shalt.err (!%p6465_p11)
}
  0x44   : > { %s9658_s5 = sld [smem:[#allocation84_spill]]  ;;  %s6480_s27 = scalar_lea.vmem %s377_s19, 8192 }
  0x45   : > { %p6481_p3 = scmp.ne.s32.totalorder %s377_s19, %s6480_s27  ;;  %p6488_p12 = scmp.lt.s32.totalorder %s377_s19, %s377_s19 }
  0x46   : > { %p6489_p13 = scmp.lt.s32.totalorder %s6480_s27, %s6480_s27 }
  0x47   : > { %p6483_p4 = pnand %p6481_p3, %p6734_p7 }
  0x48   : > { %p6490_p0 = por %p6489_p13, %p6488_p12 }
  0x49   : > { %p6484_p1 = pneg %p6483_p4 }
  0x4a   : > { %5802 = dma.hbm_to_vmem [thread:$0]  (!%p6728_p6), %s9658_s5, 8192, %s352_s21, [#allocation11], %s9544_s18, %s9544_s18, %s9545_s20  }
  0x4b   : > { %p6491_p2 = pnand %p6490_p0, %p6484_p1 }
  0x4d   : > { %6494 = shalt.err (!%p6491_p2)
}
  0x4e   : > { %s6624_s15 = smov 128   ;;  %s6625_s25 = smov 8  }
  0x4f   : > { %s9659_s7 = sld [smem:[#allocation85_spill]]  ;;  %s5414_s21 = sadd.s32 4294967294, %s6615_s14  }
  0x50   : > { %s40_s23 = sadd.s32 1, %s6611_s13  ;;  %s47_s24 = sadd.s32 1, %s6603_s11 }
  0x51   : > { %p42_p7 = scmp.ge.s32.totalorder %s40_s23, 2  ;;  %p54_p5 = scmp.ne.s32.totalorder %s6603_s11, %s6599_s10 }
  0x52   : > { %p55_p8 = scmp.eq.s32.totalorder %s6615_s14, 0  ;;  %p60_p9 = scmp.ne.s32.totalorder %s6599_s10, %s6595_s30 }
  0x53   : > { %s10034_s23 = smov (%p42_p7, %s40_s23), 0  ;;  %p9662_p11 = scmp.ne.s32.totalorder %s9651_s16, 0 }
  0x54   : > { %9660 = sst [smem:[#allocation21_spill]] %s10034_s23  ;;  %p6789_p10 = por %p55_p8, %p54_p5 }
  0x55   : > { %5805 = dma.hbm_to_vmem [thread:$0]  (!%p6728_p6), %s9659_s7, 8192, %s377_s19, [#allocation14], %s6624_s15, %s6624_s15, %s6625_s25  }
  0x56   : > { %p6795_p6 = por %p9662_p11, %p60_p9  ;;  %s44_s26 = ssub.s32 %s6611_s13, %s10034_s23 }
  0x57   : > { %s9664_s27 = sadd.s32 4294967295, %s6615_s14   ;;  %p45_p4 = scmp.eq.s32.totalorder %s44_s26, 0 }
  0x58   : > { %p277_p3 = scmp.eq.s32.totalorder %s9664_s27, 1  ;;  %p283_p1 = scmp.eq.s32.totalorder %s5414_s21, 1 }
  0x59   : > { %p5819_p13 = scmp.lt.s32.totalorder %s6615_s14, 2  ;;  %s393_s29 = sand.u32 1, %s6603_s11  }
  0x5a   : > { %p6803_p12 = por %p277_p3, %p54_p5  ;;  %p6811_p0 = por %p283_p1, %p60_p9 }
  0x5b   : > { %s6809_s25 = scalar_select %p45_p4, %s6603_s11, %s47_s24  }
  0x5c   : > { %s5424_s18 = sshll.u32 %s393_s29, 9  ;;  %s5699_s20 = sshll.u32 %s6611_s13, 13 }
  0x5d   : > { %s404_s27 = scalar_lea.hbm %s9530_s0, %s5699_s20  ;;  %s397_s26 = scalar_lea.vmem [#allocation4], %s5424_s18 }
  0x5e   : > { %s405_s21 = sshll.u32 %s397_s26, 4  ;;  %p6822_p2 = pnand %p5819_p13, %p6789_p10  ;;  %s406_s21 = int_to_ptr.vmem [resolvable:$true] %s405_s21 }
  0x5f   : > { %s394_s24 = scalar_lea.sflag [#allocation5], %s393_s29  ;;  %s6508_s5 = scalar_lea.vmem %s406_s21, 8192 }
  0x60   : > { %p6497_p7 = pneg %p6822_p2  ;;  %p6509_p5 = scmp.ne.s32.totalorder %s406_s21, %s6508_s5 }
  0x61   : > { %s6626_s7 = smov [#allocation4]  }
  0x62   : > { %p6511_p8 = pnand %p6509_p5, %p6497_p7  ;;  %s6513_s23 = sshll.u32 %s6626_s7, 4  ;;  %s6514_s23 = int_to_ptr.vmem [resolvable:$false] %s6513_s23 }
  0x63   : > { %s6515_s1 = scalar_lea.vmem %s6514_s23, 16384  ;;  %p6516_p11 = scmp.lt.s32.totalorder %s406_s21, %s6514_s23 }
  0x64   : > { %p6512_p9 = pneg %p6511_p8  ;;  %p6517_p3 = scmp.lt.s32.totalorder %s6515_s1, %s6508_s5 }
  0x66   : > { %p6518_p4 = por %p6517_p3, %p6516_p11 }
  0x68   : > { %p6519_p1 = pnand %p6518_p4, %p6512_p9 }
  0x6a   : > { %6522 = shalt.err (!%p6519_p1)
}
  0x6b   : > { %s9668_s2 = smov 16   ;;  %s9669_s18 = smov 256  }
  0x6c   : > { %5809 = dma.hbm_to_vmem [thread:$0]  (!%p6822_p2), %s404_s27, 8192, %s406_s21, %s394_s24, %s9669_s18, %s9669_s18, %s9668_s2  }
  0x6d   : > { %p9670_p10 = scmp.ne.s32.totalorder %s9652_s17, 0 }
  0x6f   : > { %417 = sbr.rel (%p9670_p10) target bundleno = 1194 (0x4aa), region = 56 }
  0x74   : > { %s6836_s20 = sand.u32 1, %s6599_s10  }
  0x75   : > { %s5429_s5 = sshll.u32 %s6836_s20, 9  ;;  %s420_s7 = scalar_lea.sflag [#allocation5], %s6836_s20 }
  0x76   : > { %s6842_s23 = scalar_lea.vmem [#allocation4], %s5429_s5 }
  0x77   : > { %6574 = dma.done.wait (%p6795_p6), %s420_s7, 8192  }
  0x78   : > { %6576 = vsyncadd (%p6795_p6), %s420_s7, 4294959104  ;;  %p9671_p13 = scmp.ne.s32.totalorder %s9651_s16, 0 }
  0x7a   : > { %6578 = dma.done.wait (%p9671_p13), [#allocation8], 64  }
  0x7b   : > { %6580 = vsyncadd (%p9671_p13), [#allocation8], 4294967232 }
  0x7c   : > { %6582 = dma.done.wait (%p9671_p13), [#allocation11], 16384  }
  0x7d   : > { %6584 = vsyncadd (%p9671_p13), [#allocation11], 4294950912 }
  0x7e   : > { %6586 = dma.done.wait (%p9671_p13), [#allocation14], 8192  }
  0x7f   : > { %6588 = vsyncadd (%p9671_p13), [#allocation14], 4294959104  ;;  %v6861_v0 = vld [vmem:[%s6842_s23] sm:$0xff]  ;;  %v6864_v1 = vld [vmem:[%s6842_s23 + $0x8] sm:$0xff]  ;;  %s9346_s27 = scalar_lea.vmem [#allocation15], %s5429_s5  ;;  %s5733_s26 = sshll.u32 %s6607_s12, 13 }
  0x80   : > { %v6867_v2 = vld [vmem:[%s6842_s23 + $0x10] sm:$0xff]  ;;  %v573_v3 = vadd.f32 %v6864_v1, %v6861_v0  ;;  %v6872_v4 = vld [vmem:[%s6842_s23 + $0x18] sm:$0xff]  ;;  %v6875_v5 = vld [vmem:[%s6842_s23 + $0x20] sm:$0xff]  ;;  %s5254_s21 = sshll.u32 %s9346_s27, 4  ;;  %s9477_s2 = scalar_lea.hbm %s9539_s9, %s5733_s26  ;;  %s9479_s21 = int_to_ptr.vmem [resolvable:$true] %s5254_s21 }
  0x81   : > { %v6878_v6 = vld [vmem:[%s6842_s23 + $0x28] sm:$0xff]  ;;  %v6883_v8 = vld [vmem:[%s6842_s23 + $0x30] sm:$0xff]  ;;  %v6886_v9 = vld [vmem:[%s6842_s23 + $0x38] sm:$0xff]  ;;  %v576_v10 = vadd.f32 %v6872_v4, %v6867_v2  ;;  %s5240_s12 = scalar_lea.sflag [#allocation6], %s6836_s20  ;;  %s6523_s18 = scalar_lea.vmem %s9479_s21, 8192 }
  0x82   : > { %v579_v7 = vadd.f32 %v6878_v6, %v6875_v5  ;;  %574 = vadd.xlane.f32.xlu0 %v573_v3  ;;  %v582_v11 = vadd.f32 %v6886_v9, %v6883_v8  ;;  %v6893_v12 = vld [vmem:[%s6842_s23 + $0x40] sm:$0xff]  ;;  %v6896_v13 = vld [vmem:[%s6842_s23 + $0x48] sm:$0xff]  ;;  %v6899_v14 = vld [vmem:[%s6842_s23 + $0x50] sm:$0xff]  ;;  %p6524_p6 = scmp.ne.s32.totalorder %s9479_s21, %s6523_s18  ;;  %s6627_s5 = smov [#allocation15]  }
  0x83   : > { %v6902_v15 = vld [vmem:[%s6842_s23 + $0x58] sm:$0xff]  ;;  %v585_v16 = vadd.f32 %v6896_v13, %v6893_v12  ;;  %v6909_v18 = vld [vmem:[%s6842_s23 + $0x60] sm:$0xff]  ;;  %v6912_v19 = vld [vmem:[%s6842_s23 + $0x68] sm:$0xff]  ;;  %s6527_s7 = sshll.u32 %s6627_s5, 4  ;;  %s6528_s7 = int_to_ptr.vmem [resolvable:$false] %s6527_s7 }
  0x84   : > { %580 = vadd.xlane.f32.xlu1 %v579_v7  ;;  %v588_v17 = vadd.f32 %v6902_v15, %v6899_v14  ;;  %v6915_v20 = vld [vmem:[%s6842_s23 + $0x70] sm:$0xff]  ;;  %v6918_v21 = vld [vmem:[%s6842_s23 + $0x78] sm:$0xff]  ;;  %v591_v22 = vadd.f32 %v6912_v19, %v6909_v18  ;;  %v6925_v24 = vld [vmem:[%s6842_s23 + $0x80] sm:$0xff]  ;;  %p6525_p2 = pnand %p6524_p6, %p6803_p12  ;;  %p6530_p5 = scmp.lt.s32.totalorder %s9479_s21, %s6528_s7 }
  0x85   : > { %v594_v23 = vadd.f32 %v6918_v21, %v6915_v20  ;;  %v6928_v25 = vld [vmem:[%s6842_s23 + $0x88] sm:$0xff]  ;;  %v6931_v26 = vld [vmem:[%s6842_s23 + $0x90] sm:$0xff]  ;;  %v6934_v27 = vld [vmem:[%s6842_s23 + $0x98] sm:$0xff] }
  0x86   : > { %577 = vadd.xlane.f32.xlu0 %v576_v10  ;;  %v6937_v28 = vld [vmem:[%s6842_s23 + $0xa0] sm:$0xff]  ;;  %v6940_v29 = vld [vmem:[%s6842_s23 + $0xa8] sm:$0xff]  ;;  %v597_v30 = vadd.f32 %v6928_v25, %v6925_v24  ;;  %v6945_v31 = vld [vmem:[%s6842_s23 + $0xb0] sm:$0xff]  ;;  %v600_v33 = vadd.f32 %v6934_v27, %v6931_v26  ;;  %p6526_p7 = pneg %p6525_p2 }
  0x87   : > { %v6948_v32 = vld [vmem:[%s6842_s23 + $0xb8] sm:$0xff]  ;;  %v6953_v34 = vld [vmem:[%s6842_s23 + $0xc0] sm:$0xff]  ;;  %v6956_v35 = vld [vmem:[%s6842_s23 + $0xc8] sm:$0xff]  ;;  %v603_v36 = vadd.f32 %v6940_v29, %v6937_v28 }
  0x88   : > { %583 = vadd.xlane.f32.xlu1 %v582_v11  ;;  %v606_v37 = vadd.f32 %v6948_v32, %v6945_v31  ;;  %v6963_v38 = vld [vmem:[%s6842_s23 + $0xd0] sm:$0xff]  ;;  %v6966_v39 = vld [vmem:[%s6842_s23 + $0xd8] sm:$0xff]  ;;  %v6969_v40 = vld [vmem:[%s6842_s23 + $0xe0] sm:$0xff]  ;;  %v609_v42 = vadd.f32 %v6956_v35, %v6953_v34 }
  0x89   : > { %v6972_v41 = vld [vmem:[%s6842_s23 + $0xe8] sm:$0xff]  ;;  %v6977_v43 = vld [vmem:[%s6842_s23 + $0xf0] sm:$0xff]  ;;  %v6980_v44 = vld [vmem:[%s6842_s23 + $0xf8] sm:$0xff]  ;;  %v612_v45 = vadd.f32 %v6966_v39, %v6963_v38 }
  0x8a   : > { %586 = vadd.xlane.f32.xlu0 %v585_v16  ;;  %v6985_v46 = vld [vmem:[%s6842_s23 + $0x100] sm:$0xff]  ;;  %v6988_v47 = vld [vmem:[%s6842_s23 + $0x108] sm:$0xff]  ;;  %v615_v48 = vadd.f32 %v6972_v41, %v6969_v40  ;;  %v618_v49 = vadd.f32 %v6980_v44, %v6977_v43  ;;  %v6995_v50 = vld [vmem:[%s6842_s23 + $0x110] sm:$0xff] }
  0x8b   : > { %v6998_v51 = vld [vmem:[%s6842_s23 + $0x118] sm:$0xff]  ;;  %v7001_v52 = vld [vmem:[%s6842_s23 + $0x120] sm:$0xff]  ;;  %v7004_v53 = vld [vmem:[%s6842_s23 + $0x128] sm:$0xff]  ;;  %v621_v54 = vadd.f32 %v6988_v47, %v6985_v46 }
  0x8c   : > { %589 = vadd.xlane.f32.xlu1 %v588_v17  ;;  %v624_v55 = vadd.f32 %v6998_v51, %v6995_v50  ;;  %v7011_v56 = vld [vmem:[%s6842_s23 + $0x130] sm:$0xff]  ;;  %v7014_v57 = vld [vmem:[%s6842_s23 + $0x138] sm:$0xff]  ;;  %v627_v58 = vadd.f32 %v7004_v53, %v7001_v52 }
  0x8d   : > { %v630_v59 = vadd.f32 %v7014_v57, %v7011_v56  ;;  %v5885_v60 = vld [vmem:[#allocation10 + $0xe4] ss:$16 sps:$4 sm:$0xff]   ;;  %v5887_v61 = vld [vmem:[#allocation10 + $0xec] ss:$16 sps:$4 sm:$0xff]   ;;  %v5889_v62 = vld [vmem:[#allocation10 + $0xe0] ss:$16 sps:$4 sm:$0xff]  }
  0x8e   : > { %592 = vadd.xlane.f32.xlu0 %v591_v22  ;;  %v5890_v63 = vld [vmem:[#allocation10 + $0xe8] ss:$16 sps:$4 sm:$0xff]   ;;  %v5891_v3 = vld [vmem:[#allocation10 + $0xc4] ss:$16 sps:$4 sm:$0xff]   ;;  %v5893_v7 = vld [vmem:[#allocation10 + $0xcc] ss:$16 sps:$4 sm:$0xff]   ;;  %2124 = vmatprep.subr.bf16.mxu0 %v5885_v60 }
  0x8f   : > { %2317 = vmatprep.subr.bf16.mxu1 %v5887_v61  ;;  %2125 = vmatpush1.bf16.msra.mxu0 %v5889_v62  ;;  %v5895_v10 = vld [vmem:[#allocation10 + $0xc0] ss:$16 sps:$4 sm:$0xff]   ;;  %v5896_v11 = vld [vmem:[#allocation10 + $0xc8] ss:$16 sps:$4 sm:$0xff]   ;;  %v5897_v16 = vld [vmem:[#allocation10 + $0xa4] ss:$16 sps:$4 sm:$0xff]  }
  0x90   : > { %595 = vadd.xlane.f32.xlu1 %v594_v23  ;;  %2318 = vmatpush1.bf16.msra.mxu1 %v5890_v63  ;;  %v5899_v17 = vld [vmem:[#allocation10 + $0xac] ss:$16 sps:$4 sm:$0xff]   ;;  %v5901_v22 = vld [vmem:[#allocation10 + $0xa0] ss:$16 sps:$4 sm:$0xff]   ;;  %v5902_v23 = vld [vmem:[#allocation10 + $0xa8] ss:$16 sps:$4 sm:$0xff]  }
  0x91   : > { %2126 = vmatprep.subr.bf16.mxu0 %v5891_v3  ;;  %2319 = vmatprep.subr.bf16.mxu1 %v5893_v7  ;;  %v5921_v60 = vld [vmem:[#allocation10 + $0x24] ss:$16 sps:$4 sm:$0xff]   ;;  %v5923_v61 = vld [vmem:[#allocation10 + $0x2c] ss:$16 sps:$4 sm:$0xff]   ;;  %v5925_v62 = vld [vmem:[#allocation10 + $0x20] ss:$16 sps:$4 sm:$0xff]  }
  0x92   : > { %598 = vadd.xlane.f32.xlu0 %v597_v30  ;;  %v5903_v30 = vld [vmem:[#allocation10 + $0x84] ss:$16 sps:$4 sm:$0xff]   ;;  %v5926_v63 = vld [vmem:[#allocation10 + $0x28] ss:$16 sps:$4 sm:$0xff]   ;;  %v5929_v7 = vld [vmem:[#allocation10 + $0xc] ss:$16 sps:$4 sm:$0xff]  }
  0x93   : > { %2127 = vmatpush1.bf16.msra.mxu0 %v5895_v10  ;;  %v5927_v3 = vld [vmem:[#allocation10 + $0x4] ss:$16 sps:$4 sm:$0xff]   ;;  %v5931_v10 = vld [vmem:[#allocation10] ss:$16 sps:$4 sm:$0xff]  }
  0x94   : > { %601 = vadd.xlane.f32.xlu1 %v600_v33  ;;  %2320 = vmatpush1.bf16.msra.mxu1 %v5896_v11  ;;  %v5905_v33 = vld [vmem:[#allocation10 + $0x8c] ss:$16 sps:$4 sm:$0xff]   ;;  %v5932_v11 = vld [vmem:[#allocation10 + $0x8] ss:$16 sps:$4 sm:$0xff]  }
  0x95   : > { %2128 = vmatprep.subr.bf16.mxu0 %v5897_v16  ;;  %2321 = vmatprep.subr.bf16.mxu1 %v5899_v17  ;;  %v5933_v16 = vld [vmem:[#allocation10 + $0x1e4] ss:$16 sps:$4 sm:$0xff]   ;;  %v5935_v17 = vld [vmem:[#allocation10 + $0x1ec] ss:$16 sps:$4 sm:$0xff]  }
  0x96   : > { %604 = vadd.xlane.f32.xlu0 %v603_v36  ;;  %v5907_v36 = vld [vmem:[#allocation10 + $0x80] ss:$16 sps:$4 sm:$0xff]  }
  0x97   : > { %2129 = vmatpush1.bf16.msra.mxu0 %v5901_v22 }
  0x98   : > { %607 = vadd.xlane.f32.xlu1 %v606_v37  ;;  %2322 = vmatpush1.bf16.msra.mxu1 %v5902_v23  ;;  %v5908_v37 = vld [vmem:[#allocation10 + $0x88] ss:$16 sps:$4 sm:$0xff]  }
  0x99   : > { %2130 = vmatprep.subr.bf16.mxu0 %v5903_v30  ;;  %2323 = vmatprep.subr.bf16.mxu1 %v5905_v33 }
  0x9a   : > { %610 = vadd.xlane.f32.xlu0 %v609_v42  ;;  %v5909_v42 = vld [vmem:[#allocation10 + $0x64] ss:$16 sps:$4 sm:$0xff]  }
  0x9b   : > { %2131 = vmatpush1.bf16.msra.mxu0 %v5907_v36 }
  0x9c   : > { %613 = vadd.xlane.f32.xlu1 %v612_v45  ;;  %v5911_v45 = vld [vmem:[#allocation10 + $0x6c] ss:$16 sps:$4 sm:$0xff]   ;;  %2324 = vmatpush1.bf16.msra.mxu1 %v5908_v37 }
  0x9d   : > { %2132 = vmatprep.subr.bf16.mxu0 %v5909_v42  ;;  %2325 = vmatprep.subr.bf16.mxu1 %v5911_v45 }
  0x9e   : > { %616 = vadd.xlane.f32.xlu0 %v615_v48  ;;  %v5913_v48 = vld [vmem:[#allocation10 + $0x60] ss:$16 sps:$4 sm:$0xff]  }
  0x9f   : > { %2133 = vmatpush1.bf16.msra.mxu0 %v5913_v48 }
  0xa0   : > { %619 = vadd.xlane.f32.xlu1 %v618_v49  ;;  %v5914_v49 = vld [vmem:[#allocation10 + $0x68] ss:$16 sps:$4 sm:$0xff]  }
  0xa1   : > { %2326 = vmatpush1.bf16.msra.mxu1 %v5914_v49 }
  0xa2   : > { %622 = vadd.xlane.f32.xlu0 %v621_v54  ;;  %v5915_v54 = vld [vmem:[#allocation10 + $0x44] ss:$16 sps:$4 sm:$0xff]  }
  0xa3   : > { %2134 = vmatprep.subr.bf16.mxu0 %v5915_v54 }
  0xa4   : > { %625 = vadd.xlane.f32.xlu1 %v624_v55  ;;  %v5917_v55 = vld [vmem:[#allocation10 + $0x4c] ss:$16 sps:$4 sm:$0xff]  }
  0xa5   : > { %2327 = vmatprep.subr.bf16.mxu1 %v5917_v55 }
  0xa6   : > { %628 = vadd.xlane.f32.xlu0 %v627_v58  ;;  %v5919_v58 = vld [vmem:[#allocation10 + $0x40] ss:$16 sps:$4 sm:$0xff]  }
  0xa7   : > { %2135 = vmatpush1.bf16.msra.mxu0 %v5919_v58 }
  0xa8   : > { %631 = vadd.xlane.f32.xlu1 %v630_v59  ;;  %v5920_v59 = vld [vmem:[#allocation10 + $0x48] ss:$16 sps:$4 sm:$0xff]   ;;  %2136 = vmatprep.subr.bf16.mxu0 %v5921_v60 }
  0xa9   : > { %2328 = vmatpush1.bf16.msra.mxu1 %v5920_v59 }
  0xaa   : > { %2329 = vmatprep.subr.bf16.mxu1 %v5923_v61 }
  0xab   : > { %2137 = vmatpush1.bf16.msra.mxu0 %v5925_v62 }
  0xac   : > { %2138 = vmatprep.subr.bf16.mxu0 %v5927_v3 }
  0xad   : > { %2330 = vmatpush1.bf16.msra.mxu1 %v5926_v63 }
  0xae   : > { %2331 = vmatprep.subr.bf16.mxu1 %v5929_v7 }
  0xaf   : > { %2139 = vmatpush1.bf16.msra.mxu0 %v5931_v10 }
  0xb0   : > { %2140 = vmatprep.subr.bf16.mxu0 %v5933_v16  ;;  %v7068_v16 = vld [vmem:[%s6842_s23 + $0x158] sm:$0xff] }
  0xb1   : > { %2332 = vmatpush1.bf16.msra.mxu1 %v5932_v11  ;;  %v7065_v11 = vld [vmem:[%s6842_s23 + $0x150] sm:$0xff] }
  0xb2   : > { %2333 = vmatprep.subr.bf16.mxu1 %v5935_v17 }
 0x10b   : > { %v575_v22 = vpop.xlane.xlu0 %574 }
 0x10c   : > { %v670_v23 = vmul.f32 0.00390625, %v575_v22 }
 0x10d   : > { %v581_v30 = vpop.xlane.xlu1 %580 }
 0x10e   : > { %v672_v33 = vmul.f32 0.00390625, %v581_v30  ;;  %v7021_v36 = vsub.f32 %v6861_v0, %v670_v23  ;;  %v7024_v37 = vsub.f32 %v6864_v1, %v670_v23  ;;  %v7037_v0 = vld [vmem:[%s6842_s23 + $0x140] sm:$0xff]  ;;  %v7040_v1 = vld [vmem:[%s6842_s23 + $0x148] sm:$0xff] }
 0x10f   : > { %v578_v42 = vpop.xlane.xlu0 %577  ;;  %v633_v62 = vadd.f32 %v7040_v1, %v7037_v0 }
 0x110   : > { %v7027_v45 = vsub.f32 %v6875_v5, %v672_v33  ;;  %v7030_v48 = vsub.f32 %v6878_v6, %v672_v33  ;;  %v671_v49 = vmul.f32 0.00390625, %v578_v42  ;;  %v766_v54 = vmul.f32 %v7021_v36, %v7021_v36 }
 0x111   : > { %v767_v55 = vmul.f32 %v7024_v37, %v7024_v37  ;;  %v584_v58 = vpop.xlane.xlu1 %583 }
 0x112   : > { %v673_v59 = vmul.f32 0.00390625, %v584_v58  ;;  %v7043_v5 = vsub.f32 %v6867_v2, %v671_v49  ;;  %v7046_v6 = vsub.f32 %v6872_v4, %v671_v49  ;;  %v770_v3 = vmul.f32 %v7027_v45, %v7027_v45 }
 0x113   : > { %v830_v60 = vadd.f32 %v767_v55, %v766_v54  ;;  %v587_v63 = vpop.xlane.xlu0 %586  ;;  %v771_v7 = vmul.f32 %v7030_v48, %v7030_v48  ;;  %v7081_v54 = vld [vmem:[%s6842_s23 + $0x160] sm:$0xff]  ;;  %v7084_v55 = vld [vmem:[%s6842_s23 + $0x168] sm:$0xff] }
 0x114   : > { %v7049_v61 = vsub.f32 %v6883_v8, %v673_v59  ;;  %v7058_v2 = vsub.f32 %v6886_v9, %v673_v59  ;;  %v768_v4 = vmul.f32 %v7043_v5, %v7043_v5  ;;  %v769_v8 = vmul.f32 %v7046_v6, %v7046_v6 }
 0x115   : > { %831 = vadd.xlane.f32.xlu0 %v830_v60  ;;  %v674_v10 = vmul.f32 0.00390625, %v587_v63  ;;  %v590_v17 = vpop.xlane.xlu1 %589  ;;  %v836_v23 = vadd.f32 %v771_v7, %v770_v3  ;;  %v636_v9 = vadd.f32 %v7068_v16, %v7065_v11  ;;  %v7097_v63 = vld [vmem:[%s6842_s23 + $0x170] sm:$0xff]  ;;  %v7100_v7 = vld [vmem:[%s6842_s23 + $0x178] sm:$0xff] }
 0x116   : > { %9672 = vst [vmem:[#allocation22_spill] sm:$0xff] %v7049_v61  ;;  %v833_v22 = vadd.f32 %v769_v8, %v768_v4  ;;  %v675_v30 = vmul.f32 0.00390625, %v590_v17  ;;  %v772_v33 = vmul.f32 %v7049_v61, %v7049_v61  ;;  %v773_v58 = vmul.f32 %v7058_v2, %v7058_v2  ;;  %v5937_v8 = vld [vmem:[#allocation10 + $0x1e0] ss:$16 sps:$4 sm:$0xff]  }
 0x117   : > { %v7075_v42 = vsub.f32 %v6893_v12, %v674_v10  ;;  %v7078_v49 = vsub.f32 %v6896_v13, %v674_v10  ;;  %v593_v59 = vpop.xlane.xlu0 %592  ;;  %v639_v12 = vadd.f32 %v7084_v55, %v7081_v54  ;;  %v5938_v10 = vld [vmem:[#allocation10 + $0x1e8] ss:$16 sps:$4 sm:$0xff]   ;;  %2141 = vmatpush2.bf16.msra.mxu0 %v5937_v8  ;;  %v642_v17 = vadd.f32 %v7100_v7, %v7097_v63 }
 0x118   : > { %834 = vadd.xlane.f32.xlu1 %v833_v22  ;;  %v7089_v60 = vsub.f32 %v6899_v14, %v675_v30  ;;  %v839_v13 = vadd.f32 %v773_v58, %v772_v33  ;;  %v676_v3 = vmul.f32 0.00390625, %v593_v59  ;;  %2334 = vmatpush2.bf16.msra.mxu1 %v5938_v10  ;;  %v5939_v33 = vld [vmem:[#allocation10 + $0x1c4] ss:$16 sps:$4 sm:$0xff]   ;;  %v5941_v58 = vld [vmem:[#allocation10 + $0x1cc] ss:$16 sps:$4 sm:$0xff]  }
 0x119   : > { %634 = vadd.xlane.f32.xlu0 %v633_v62  ;;  %9673 = vst [vmem:[#allocation23_spill] sm:$0xff] %v7075_v42  ;;  %9674 = vst [vmem:[#allocation24_spill] sm:$0xff] %v7078_v49  ;;  %v7092_v62 = vsub.f32 %v6902_v15, %v675_v30  ;;  %v774_v4 = vmul.f32 %v7075_v42, %v7075_v42  ;;  %v775_v14 = vmul.f32 %v7078_v49, %v7078_v49  ;;  %v596_v15 = vpop.xlane.xlu1 %595  ;;  %v7113_v30 = vld [vmem:[%s6842_s23 + $0x180] sm:$0xff]  ;;  %v7122_v10 = vld [vmem:[%s6842_s23 + $0x188] sm:$0xff] }
 0x11a   : > { %9675 = vst [vmem:[#allocation25_spill] sm:$0xff] %v7089_v60  ;;  %v677_v22 = vmul.f32 0.00390625, %v596_v15  ;;  %v7116_v59 = vsub.f32 %v6909_v18, %v676_v3  ;;  %v7119_v8 = vsub.f32 %v6912_v19, %v676_v3  ;;  %v5944_v42 = vld [vmem:[#allocation10 + $0x1c8] ss:$16 sps:$4 sm:$0xff]   ;;  %2142 = vmatprep.subr.bf16.mxu0 %v5939_v33  ;;  %2335 = vmatprep.subr.bf16.mxu1 %v5941_v58  ;;  %v5945_v3 = vld [vmem:[#allocation10 + $0x1a4] ss:$16 sps:$4 sm:$0xff]  }
 0x11b   : > { %9676 = vst [vmem:[#allocation26_spill] sm:$0xff] %v7092_v62  ;;  %v842_v15 = vadd.f32 %v775_v14, %v774_v4  ;;  %v645_v19 = vadd.f32 %v7122_v10, %v7113_v30  ;;  %v5947_v4 = vld [vmem:[#allocation10 + $0x1ac] ss:$16 sps:$4 sm:$0xff]   ;;  %v5950_v58 = vld [vmem:[#allocation10 + $0x1a8] ss:$16 sps:$4 sm:$0xff]  }
 0x11c   : > { %637 = vadd.xlane.f32.xlu1 %v636_v9  ;;  %v777_v9 = vmul.f32 %v7092_v62, %v7092_v62  ;;  %9677 = vst [vmem:[#allocation27_spill] sm:$0xff] %v7116_v59  ;;  %9678 = vst [vmem:[#allocation28_spill] sm:$0xff] %v7119_v8  ;;  %v599_v62 = vpop.xlane.xlu0 %598  ;;  %2336 = vmatpush2.bf16.msra.mxu1 %v5944_v42  ;;  %v7128_v18 = vsub.f32 %v6918_v21, %v677_v22  ;;  %v5953_v49 = vld [vmem:[#allocation10 + $0x18c] ss:$16 sps:$4 sm:$0xff]  }
 0x11d   : > { %837 = vadd.xlane.f32.xlu0 %v836_v23  ;;  %v776_v23 = vmul.f32 %v7089_v60, %v7089_v60  ;;  %v5943_v60 = vld [vmem:[#allocation10 + $0x1c0] ss:$16 sps:$4 sm:$0xff]   ;;  %v678_v33 = vmul.f32 0.00390625, %v599_v62  ;;  %v779_v21 = vmul.f32 %v7119_v8, %v7119_v8  ;;  %v602_v42 = vpop.xlane.xlu1 %601  ;;  %2337 = vmatprep.subr.bf16.mxu1 %v5947_v4  ;;  %v5951_v8 = vld [vmem:[#allocation10 + $0x184] ss:$16 sps:$4 sm:$0xff]  }
 0x11e   : > { %2143 = vmatpush2.bf16.msra.mxu0 %v5943_v60  ;;  %9680 = vst [vmem:[#allocation30_spill] sm:$0xff] %v7128_v18  ;;  %v7136_v60 = vld [vmem:[%s6842_s23 + $0x198] sm:$0xff]  ;;  %v679_v62 = vmul.f32 0.00390625, %v602_v42 }
 0x11f   : > { %v845_v14 = vadd.f32 %v777_v9, %v776_v23  ;;  %2144 = vmatprep.subr.bf16.mxu0 %v5945_v3  ;;  %v781_v9 = vmul.f32 %v7128_v18, %v7128_v18  ;;  %v7152_v3 = vsub.f32 %v6925_v24, %v678_v33  ;;  %v7155_v4 = vsub.f32 %v6928_v25, %v678_v33 }
 0x120   : > { %840 = vadd.xlane.f32.xlu1 %v839_v13  ;;  %v7133_v13 = vld [vmem:[%s6842_s23 + $0x190] sm:$0xff]  ;;  %2338 = vmatpush2.bf16.msra.mxu1 %v5950_v58  ;;  %v7164_v24 = vsub.f32 %v6934_v27, %v679_v62 }
 0x121   : > { %640 = vadd.xlane.f32.xlu0 %v639_v12  ;;  %v7125_v12 = vsub.f32 %v6915_v20, %v677_v22  ;;  %v778_v20 = vmul.f32 %v7116_v59, %v7116_v59  ;;  %v5949_v22 = vld [vmem:[#allocation10 + $0x1a0] ss:$16 sps:$4 sm:$0xff]   ;;  %v605_v59 = vpop.xlane.xlu0 %604  ;;  %9681 = vst [vmem:[#allocation31_spill] sm:$0xff] %v7152_v3  ;;  %9682 = vst [vmem:[#allocation32_spill] sm:$0xff] %v7155_v4  ;;  %2339 = vmatprep.subr.bf16.mxu1 %v5953_v49  ;;  %v608_v18 = vpop.xlane.xlu1 %607 }
 0x122   : > { %2145 = vmatpush2.bf16.msra.mxu0 %v5949_v22  ;;  %v7158_v22 = vld [vmem:[%s6842_s23 + $0x1a8] sm:$0xff]  ;;  %v5955_v58 = vld [vmem:[#allocation10 + $0x180] ss:$16 sps:$4 sm:$0xff]   ;;  %9684 = vst [vmem:[#allocation34_spill] sm:$0xff] %v7164_v24  ;;  %v680_v49 = vmul.f32 0.00390625, %v605_v59  ;;  %v783_v27 = vmul.f32 %v7155_v4, %v7155_v4  ;;  %v681_v59 = vmul.f32 0.00390625, %v608_v18 }
 0x123   : > { %9679 = vst [vmem:[#allocation29_spill] sm:$0xff] %v7125_v12  ;;  %v780_v23 = vmul.f32 %v7125_v12, %v7125_v12  ;;  %v848_v42 = vadd.f32 %v779_v21, %v778_v20  ;;  %v5956_v12 = vld [vmem:[#allocation10 + $0x188] ss:$16 sps:$4 sm:$0xff]   ;;  %2146 = vmatprep.subr.bf16.mxu0 %v5951_v8  ;;  %v5959_v21 = vld [vmem:[#allocation10 + $0x16c] ss:$16 sps:$4 sm:$0xff]  }
 0x124   : > { %643 = vadd.xlane.f32.xlu1 %v642_v17  ;;  %v648_v17 = vadd.f32 %v7136_v60, %v7133_v13  ;;  %2340 = vmatpush2.bf16.msra.mxu1 %v5956_v12  ;;  %v7172_v8 = vld [vmem:[%s6842_s23 + $0x1b8] sm:$0xff]  ;;  %v7194_v18 = vld [vmem:[%s6842_s23 + $0x1c8] sm:$0xff] }
 0x125   : > { %843 = vadd.xlane.f32.xlu0 %v842_v15  ;;  %v7149_v15 = vld [vmem:[%s6842_s23 + $0x1a0] sm:$0xff]  ;;  %v611_v33 = vpop.xlane.xlu0 %610  ;;  %v851_v20 = vadd.f32 %v781_v9, %v780_v23  ;;  %9686 = vst [vmem:[#allocation36_spill] sm:$0xff] %v7172_v8  ;;  %v5957_v12 = vld [vmem:[#allocation10 + $0x164] ss:$16 sps:$4 sm:$0xff]   ;;  %v614_v61 = vpop.xlane.xlu1 %613  ;;  %2341 = vmatprep.subr.bf16.mxu1 %v5959_v21  ;;  %v785_v9 = vmul.f32 %v7164_v24, %v7164_v24 }
 0x126   : > { %2147 = vmatpush2.bf16.msra.mxu0 %v5955_v58  ;;  %v651_v25 = vadd.f32 %v7158_v22, %v7149_v15  ;;  %v5962_v58 = vld [vmem:[#allocation10 + $0x168] ss:$16 sps:$4 sm:$0xff]   ;;  %v5963_v4 = vld [vmem:[#allocation10 + $0x144] ss:$16 sps:$4 sm:$0xff]   ;;  %v5967_v24 = vld [vmem:[#allocation10 + $0x140] ss:$16 sps:$4 sm:$0xff]  }
 0x127   : > { %2148 = vmatprep.subr.bf16.mxu0 %v5957_v12  ;;  %v7191_v12 = vsub.f32 %v6940_v29, %v680_v49 }
 0x128   : > { %846 = vadd.xlane.f32.xlu1 %v845_v14  ;;  %v7161_v14 = vsub.f32 %v6931_v26, %v679_v62  ;;  %v782_v26 = vmul.f32 %v7152_v3, %v7152_v3  ;;  %v5961_v62 = vld [vmem:[#allocation10 + $0x160] ss:$16 sps:$4 sm:$0xff]   ;;  %2342 = vmatpush2.bf16.msra.mxu1 %v5962_v58  ;;  %v7188_v3 = vsub.f32 %v6937_v28, %v680_v49 }
 0x129   : > { %646 = vadd.xlane.f32.xlu0 %v645_v19  ;;  %v7169_v19 = vld [vmem:[%s6842_s23 + $0x1b0] sm:$0xff]  ;;  %9688 = vst [vmem:[#allocation38_spill] sm:$0xff] %v7191_v12  ;;  %v7200_v28 = vsub.f32 %v6948_v32, %v681_v59  ;;  %v620_v32 = vpop.xlane.xlu1 %619 }
 0x12a   : > { %9683 = vst [vmem:[#allocation33_spill] sm:$0xff] %v7161_v14  ;;  %9685 = vst [vmem:[#allocation35_spill] sm:$0xff] %v7169_v19  ;;  %v784_v23 = vmul.f32 %v7161_v14, %v7161_v14  ;;  %2149 = vmatpush2.bf16.msra.mxu0 %v5961_v62  ;;  %v854_v21 = vadd.f32 %v783_v27, %v782_v26  ;;  %v5965_v14 = vld [vmem:[#allocation10 + $0x14c] ss:$16 sps:$4 sm:$0xff]   ;;  %v7212_v62 = vld [vmem:[%s6842_s23 + $0x1d8] sm:$0xff] }
 0x12b   : > { %9687 = vst [vmem:[#allocation37_spill] sm:$0xff] %v7188_v3  ;;  %2150 = vmatprep.subr.bf16.mxu0 %v5963_v4  ;;  %2343 = vmatprep.subr.bf16.mxu1 %v5965_v14  ;;  %9690 = vst [vmem:[#allocation40_spill] sm:$0xff] %v7200_v28  ;;  %v7205_v26 = vld [vmem:[%s6842_s23 + $0x1d0] sm:$0xff]  ;;  %v786_v4 = vmul.f32 %v7188_v3, %v7188_v3  ;;  %v5969_v14 = vld [vmem:[#allocation10 + $0x124] ss:$16 sps:$4 sm:$0xff]  }
 0x12c   : > { %649 = vadd.xlane.f32.xlu1 %v648_v17  ;;  %v654_v17 = vadd.f32 %v7172_v8, %v7169_v19  ;;  %v617_v8 = vpop.xlane.xlu0 %616  ;;  %v5968_v19 = vld [vmem:[#allocation10 + $0x148] ss:$16 sps:$4 sm:$0xff]   ;;  %v857_v49 = vadd.f32 %v785_v9, %v784_v23  ;;  %v5971_v27 = vld [vmem:[#allocation10 + $0x12c] ss:$16 sps:$4 sm:$0xff]  }
 0x12d   : > { %849 = vadd.xlane.f32.xlu0 %v848_v42  ;;  %v7185_v42 = vld [vmem:[%s6842_s23 + $0x1c0] sm:$0xff]  ;;  %2344 = vmatpush2.bf16.msra.mxu1 %v5968_v19  ;;  %v5974_v19 = vld [vmem:[#allocation10 + $0x128] ss:$16 sps:$4 sm:$0xff]  }
 0x12e   : > { %v657_v29 = vadd.f32 %v7194_v18, %v7185_v42  ;;  %2151 = vmatpush2.bf16.msra.mxu0 %v5967_v24  ;;  %v5973_v24 = vld [vmem:[#allocation10 + $0x120] ss:$16 sps:$4 sm:$0xff]   ;;  %2345 = vmatprep.subr.bf16.mxu1 %v5971_v27  ;;  %v7230_v27 = vld [vmem:[%s6842_s23 + $0x1e8] sm:$0xff]  ;;  %v5977_v3 = vld [vmem:[#allocation10 + $0x10c] ss:$16 sps:$4 sm:$0xff]  }
 0x12f   : > { %2152 = vmatprep.subr.bf16.mxu0 %v5969_v14  ;;  %v7222_v23 = vld [vmem:[%s6842_s23 + $0x1e0] sm:$0xff]  ;;  %v684_v14 = vmul.f32 0.00390625, %v617_v8 }
 0x130   : > { %852 = vadd.xlane.f32.xlu1 %v851_v20  ;;  %v682_v20 = vmul.f32 0.00390625, %v611_v33  ;;  %v683_v33 = vmul.f32 0.00390625, %v614_v61  ;;  %v623_v9 = vpop.xlane.xlu0 %622  ;;  %v663_v8 = vadd.f32 %v7230_v27, %v7222_v23 }
 0x131   : > { %652 = vadd.xlane.f32.xlu0 %v651_v25  ;;  %v7197_v25 = vsub.f32 %v6945_v31, %v681_v59  ;;  %v787_v31 = vmul.f32 %v7191_v12, %v7191_v12  ;;  %v789_v59 = vmul.f32 %v7200_v28, %v7200_v28  ;;  %2346 = vmatpush2.bf16.msra.mxu1 %v5974_v19  ;;  %v5979_v12 = vld [vmem:[#allocation10 + $0x100] ss:$16 sps:$4 sm:$0xff]  }
 0x132   : > { %v7215_v58 = vsub.f32 %v6953_v34, %v682_v20  ;;  %2153 = vmatpush2.bf16.msra.mxu0 %v5973_v24  ;;  %v7225_v61 = vsub.f32 %v6956_v35, %v682_v20  ;;  %v660_v34 = vadd.f32 %v7212_v62, %v7205_v26  ;;  %v7233_v28 = vsub.f32 %v6963_v38, %v683_v33  ;;  %v5980_v24 = vld [vmem:[#allocation10 + $0x108] ss:$16 sps:$4 sm:$0xff]   ;;  %v626_v20 = vpop.xlane.xlu1 %625 }
 0x133   : > { %9689 = vst [vmem:[#allocation39_spill] sm:$0xff] %v7197_v25  ;;  %v685_v35 = vmul.f32 0.00390625, %v620_v32  ;;  %2347 = vmatprep.subr.bf16.mxu1 %v5977_v3  ;;  %v7252_v3 = vld [vmem:[%s6842_s23 + $0x1f8] sm:$0xff] }
 0x134   : > { %655 = vadd.xlane.f32.xlu1 %v654_v17  ;;  %v788_v17 = vmul.f32 %v7197_v25, %v7197_v25  ;;  %v5975_v25 = vld [vmem:[#allocation10 + $0x104] ss:$16 sps:$4 sm:$0xff]   ;;  %v790_v38 = vmul.f32 %v7215_v58, %v7215_v58  ;;  %v791_v32 = vmul.f32 %v7225_v61, %v7225_v61 }
 0x135   : > { %855 = vadd.xlane.f32.xlu0 %v854_v21  ;;  %v860_v21 = vadd.f32 %v787_v31, %v786_v4  ;;  %2154 = vmatprep.subr.bf16.mxu0 %v5975_v25  ;;  %v686_v4 = vmul.f32 0.00390625, %v623_v9  ;;  %v7246_v31 = vsub.f32 %v6972_v41, %v684_v14  ;;  %v7249_v25 = vld [vmem:[%s6842_s23 + $0x1f0] sm:$0xff]  ;;  %v7259_v19 = vsub.f32 %v6977_v43, %v685_v35  ;;  %s6529_s23 = scalar_lea.vmem %s6528_s7, 16384 }
 0x136   : > { %2155 = vmatpush2.bf16.msra.mxu0 %v5979_v12  ;;  %2348 = vmatpush2.bf16.msra.mxu1 %v5980_v24  ;;  %v792_v12 = vmul.f32 %v7233_v28, %v7233_v28  ;;  %v866_v43 = vadd.f32 %v791_v32, %v790_v38  ;;  %v632_v24 = vpop.xlane.xlu1 %631  ;;  %p6531_p8 = scmp.lt.s32.totalorder %s6529_s23, %s6523_s18 }
 0x137   : > { %v7270_v9 = vsub.f32 %v6988_v47, %v686_v4  ;;  %v796_v47 = vmul.f32 %v7259_v19, %v7259_v19 }
 0x138   : > { %858 = vadd.xlane.f32.xlu1 %v857_v49  ;;  %v863_v49 = vadd.f32 %v789_v59, %v788_v17  ;;  %v687_v17 = vmul.f32 0.00390625, %v626_v20  ;;  %v7267_v59 = vsub.f32 %v6985_v46, %v686_v4  ;;  %p6532_p9 = por %p6531_p8, %p6530_p5 }
 0x139   : > { %658 = vadd.xlane.f32.xlu0 %v657_v29  ;;  %v7236_v29 = vsub.f32 %v6966_v39, %v683_v33  ;;  %v7243_v39 = vsub.f32 %v6969_v40, %v684_v14  ;;  %v629_v33 = vpop.xlane.xlu0 %628  ;;  %v7262_v40 = vsub.f32 %v6980_v44, %v685_v35  ;;  %v795_v14 = vmul.f32 %v7246_v31, %v7246_v31 }
 0x13a   : > { %v7279_v46 = vsub.f32 %v6995_v50, %v687_v17  ;;  %v798_v4 = vmul.f32 %v7267_v59, %v7267_v59  ;;  %v799_v38 = vmul.f32 %v7270_v9, %v7270_v9  ;;  %p6533_p11 = pnand %p6532_p9, %p6526_p7 }
 0x13b   : > { %v793_v41 = vmul.f32 %v7236_v29, %v7236_v29  ;;  %v794_v44 = vmul.f32 %v7243_v39, %v7243_v39  ;;  %v797_v20 = vmul.f32 %v7262_v40, %v7262_v40 }
 0x13c   : > { %661 = vadd.xlane.f32.xlu1 %v660_v34  ;;  %v666_v34 = vadd.f32 %v7252_v3, %v7249_v25 }
 0x13d   : > { %861 = vadd.xlane.f32.xlu0 %v860_v21  ;;  %v688_v21 = vmul.f32 0.00390625, %v629_v33  ;;  %v869_v35 = vadd.f32 %v793_v41, %v792_v12  ;;  %v872_v33 = vadd.f32 %v795_v14, %v794_v44  ;;  %v875_v12 = vadd.f32 %v797_v20, %v796_v47  ;;  %v5983_v14 = vld [vmem:[#allocation12 + $0xe4] ss:$16 sps:$4 sm:$0xff]  }
 0x13e   : > { %v800_v41 = vmul.f32 %v7279_v46, %v7279_v46  ;;  %2916 = vmatprep.subr.bf16.mxu0 %v5983_v14 }
 0x13f   : > { %v7293_v50 = vsub.f32 %v7001_v52, %v688_v21  ;;  %v7296_v32 = vsub.f32 %v7004_v53, %v688_v21 }
 0x140   : > { %864 = vadd.xlane.f32.xlu1 %v863_v49  ;;  %v7286_v49 = vsub.f32 %v6998_v51, %v687_v17  ;;  %v878_v17 = vadd.f32 %v799_v38, %v798_v4 }
 0x141   : > { %664 = vadd.xlane.f32.xlu0 %v663_v8  ;;  %v689_v8 = vmul.f32 0.00390625, %v632_v24  ;;  %v802_v53 = vmul.f32 %v7293_v50, %v7293_v50 }
 0x142   : > { %v801_v24 = vmul.f32 %v7286_v49, %v7286_v49 }
 0x143   : > { %v7299_v51 = vsub.f32 %v7011_v56, %v689_v8  ;;  %v7306_v52 = vsub.f32 %v7014_v57, %v689_v8 }
 0x144   : > { %667 = vadd.xlane.f32.xlu1 %v666_v34  ;;  %v803_v34 = vmul.f32 %v7296_v32, %v7296_v32  ;;  %v881_v56 = vadd.f32 %v801_v24, %v800_v41 }
 0x145   : > { %867 = vadd.xlane.f32.xlu0 %v866_v43  ;;  %v804_v21 = vmul.f32 %v7299_v51, %v7299_v51  ;;  %v805_v44 = vmul.f32 %v7306_v52, %v7306_v52 }
 0x146   : > { %v884_v43 = vadd.f32 %v803_v34, %v802_v53 }
 0x147   : > { %v887_v57 = vadd.f32 %v805_v44, %v804_v21 }
 0x148   : > { %870 = vadd.xlane.f32.xlu1 %v869_v35  ;;  %v5986_v35 = vld [vmem:[#allocation12 + $0xec] ss:$16 sps:$4 sm:$0xff]  }
 0x149   : > { %873 = vadd.xlane.f32.xlu0 %v872_v33  ;;  %3109 = vmatprep.subr.bf16.mxu1 %v5986_v35 }
 0x14c   : > { %876 = vadd.xlane.f32.xlu1 %v875_v12 }
 0x14d   : > { %879 = vadd.xlane.f32.xlu0 %v878_v17  ;;  %v1088_v17 = vlaneseq }
 0x14f   : > { %v7326_v14 = vshrl.u32 %v1088_v17, 7 }
 0x150   : > { %882 = vadd.xlane.f32.xlu1 %v881_v56 }
 0x151   : > { %885 = vadd.xlane.f32.xlu0 %v884_v43  ;;  %9691 = vst [vmem:[#allocation41_spill] sm:$0xff] %v7326_v14 }
 0x154   : > { %888 = vadd.xlane.f32.xlu1 %v887_v57 }
 0x19e   : > { %v832_v47 = vpop.xlane.xlu0 %831 }
 0x19f   : > { %v926_v20 = vmul.f32 0.00390625, %v832_v47 }
 0x1a1   : > { %v958_v8 = vadd.f32 1e-06, %v926_v20  ;;  %v835_v4 = vpop.xlane.xlu1 %834 }
 0x1a2   : > { %v635_v38 = vpop.xlane.xlu0 %634  ;;  %v927_v33 = vmul.f32 0.00390625, %v835_v4 }
 0x1a3   : > { %6173 = vrsqrt.f32 %v958_v8  ;;  %v690_v12 = vmul.f32 0.00390625, %v635_v38 }
 0x1a4   : > { %v959_v41 = vadd.f32 1e-06, %v927_v33 }
 0x1a5   : > { %v7317_v24 = vsub.f32 %v7037_v0, %v690_v12  ;;  %v7320_v53 = vsub.f32 %v7040_v1, %v690_v12  ;;  %v638_v34 = vpop.xlane.xlu1 %637 }
 0x1a6   : > { %v838_v56 = vpop.xlane.xlu0 %837  ;;  %6175 = vrsqrt.f32 %v959_v41  ;;  %v691_v43 = vmul.f32 0.00390625, %v638_v34 }
 0x1a7   : > { %v928_v21 = vmul.f32 0.00390625, %v838_v56  ;;  %v806_v44 = vmul.f32 %v7317_v24, %v7317_v24  ;;  %v807_v57 = vmul.f32 %v7320_v53, %v7320_v53  ;;  %v1086_v56 = vld [vmem:[#allocation7] sm:$0x3] }
 0x1a8   : > { %v7329_v35 = vsub.f32 %v7065_v11, %v691_v43  ;;  %v7332_v0 = vsub.f32 %v7068_v16, %v691_v43  ;;  %v7339_v11 = vsub.s32 1, %v7326_v14  ;;  %v7342_v16 = vsub.s32 0, %v7326_v14 }
 0x1a9   : > { %v960_v1 = vadd.f32 1e-06, %v928_v21  ;;  %v841_v47 = vpop.xlane.xlu1 %840  ;;  %v890_v8 = vadd.f32 %v807_v57, %v806_v44 }
 0x1aa   : > { %9692 = vst [vmem:[#allocation42_spill] sm:$0xff] %v7329_v35  ;;  %v641_v20 = vpop.xlane.xlu0 %640  ;;  %v929_v4 = vmul.f32 0.00390625, %v841_v47  ;;  %v808_v33 = vmul.f32 %v7329_v35, %v7329_v35  ;;  %v809_v12 = vmul.f32 %v7332_v0, %v7332_v0  ;;  %9693 = vst [vmem:[#allocation43_spill] sm:$0xff] %v7339_v11 }
 0x1ab   : > { %6177 = vrsqrt.f32 %v960_v1  ;;  %v692_v38 = vmul.f32 0.00390625, %v641_v20  ;;  %891 = vadd.xlane.f32.xlu0 %v890_v8  ;;  %9694 = vst [vmem:[#allocation44_spill] sm:$0xff] %v7342_v16  ;;  %v1162_v20 = vld [vmem:[#allocation9] sm:$0x3] }
 0x1ac   : > { %v961_v17 = vadd.f32 1e-06, %v929_v4  ;;  %v893_v44 = vadd.f32 %v809_v12, %v808_v33  ;;  %v7355_v4 = vrot.slane %v1086_v56, %v7339_v11  ;;  %v7368_v14 = vrot.slane %v1162_v20, %v7339_v11 }
 0x1ad   : > { %v7345_v41 = vsub.f32 %v7081_v54, %v692_v38  ;;  %v7348_v34 = vsub.f32 %v7084_v55, %v692_v38  ;;  %v644_v43 = vpop.xlane.xlu1 %643  ;;  %v7358_v55 = vrot.slane %v1086_v56, %v7342_v16 }
 0x1ae   : > { %v844_v21 = vpop.xlane.xlu0 %843  ;;  %6179 = vrsqrt.f32 %v961_v17  ;;  %v693_v57 = vmul.f32 0.00390625, %v644_v43  ;;  %894 = vadd.xlane.f32.xlu1 %v893_v44 }
 0x1af   : > { %9695 = vst [vmem:[#allocation45_spill] sm:$0xff] %v7345_v41  ;;  %9696 = vst [vmem:[#allocation46_spill] sm:$0xff] %v7348_v34  ;;  %v930_v1 = vmul.f32 0.00390625, %v844_v21  ;;  %v810_v47 = vmul.f32 %v7345_v41, %v7345_v41  ;;  %v811_v54 = vmul.f32 %v7348_v34, %v7348_v34 }
 0x1b0   : > { %v6174_v8 = vpop.eup %6173  ;;  %v7361_v38 = vsub.f32 %v7097_v63, %v693_v57  ;;  %v7364_v33 = vsub.f32 %v7100_v7, %v693_v57 }
 0x1b1   : > { %v962_v12 = vadd.f32 1e-06, %v930_v1  ;;  %v1023_v17 = vmul.f32 %v6174_v8, %v7024_v37  ;;  %v847_v43 = vpop.xlane.xlu1 %846  ;;  %v896_v44 = vadd.f32 %v811_v54, %v810_v47  ;;  %v1022_v41 = vmul.f32 %v6174_v8, %v7021_v36 }
 0x1b2   : > { %v647_v21 = vpop.xlane.xlu0 %646  ;;  %v931_v56 = vmul.f32 0.00390625, %v847_v43  ;;  %v812_v63 = vmul.f32 %v7361_v38, %v7361_v38  ;;  %v813_v7 = vmul.f32 %v7364_v33, %v7364_v33  ;;  %v7378_v1 = vrot.slane %v1162_v20, %v7342_v16 }
 0x1b3   : > { %6181 = vrsqrt.f32 %v962_v12  ;;  %v694_v34 = vmul.f32 0.00390625, %v647_v21  ;;  %v6176_v35 = vpop.eup %6175  ;;  %897 = vadd.xlane.f32.xlu0 %v896_v44  ;;  %v1099_v37 = vmul.f32 %v7355_v4, %v1023_v17  ;;  %v1098_v57 = vmul.f32 %v7358_v55, %v1022_v41 }
 0x1b4   : > { %v963_v47 = vadd.f32 1e-06, %v931_v56  ;;  %v1025_v54 = vmul.f32 %v6176_v35, %v7046_v6  ;;  %v899_v21 = vadd.f32 %v813_v7, %v812_v63  ;;  %v1024_v17 = vmul.f32 %v6176_v35, %v7043_v5 }
 0x1b5   : > { %v7381_v36 = vsub.f32 %v7113_v30, %v694_v34  ;;  %v7384_v8 = vsub.f32 %v7122_v10, %v694_v34  ;;  %v650_v12 = vpop.xlane.xlu1 %649  ;;  %v1175_v44 = vadd.f32 %v7368_v14, %v1099_v37  ;;  %v1174_v63 = vadd.f32 %v7378_v1, %v1098_v57 }
 0x1b6   : > { %v850_v43 = vpop.xlane.xlu0 %849  ;;  %6183 = vrsqrt.f32 %v963_v47  ;;  %v695_v41 = vmul.f32 0.00390625, %v650_v12  ;;  %900 = vadd.xlane.f32.xlu1 %v899_v21  ;;  %v1101_v6 = vmul.f32 %v7355_v4, %v1025_v54  ;;  %v1100_v34 = vmul.f32 %v7358_v55, %v1024_v17 }
 0x1b7   : > { %v932_v20 = vmul.f32 0.00390625, %v850_v43  ;;  %v814_v56 = vmul.f32 %v7381_v36, %v7381_v36  ;;  %v815_v10 = vmul.f32 %v7384_v8, %v7384_v8 }
 0x1b8   : > { %v6178_v30 = vpop.eup %6177  ;;  %v7397_v7 = vsub.f32 %v7133_v13, %v695_v41  ;;  %v7400_v5 = vsub.f32 %v7136_v60, %v695_v41  ;;  %v1177_v21 = vadd.f32 %v7368_v14, %v1101_v6  ;;  %v1176_v54 = vadd.f32 %v7378_v1, %v1100_v34  ;;  %v5981_v34 = vld [vmem:[#allocation12 + $0xe0] ss:$16 sps:$4 sm:$0xff]  }
 0x1b9   : > { %v964_v35 = vadd.f32 1e-06, %v932_v20  ;;  %v1027_v37 = vmul.f32 %v6178_v30, %v7030_v48  ;;  %v853_v47 = vpop.xlane.xlu1 %852  ;;  %v902_v43 = vadd.f32 %v815_v10, %v814_v56  ;;  %v1026_v17 = vmul.f32 %v6178_v30, %v7027_v45 }
 0x1ba   : > { %v653_v12 = vpop.xlane.xlu0 %652  ;;  %v933_v57 = vmul.f32 0.00390625, %v853_v47  ;;  %v816_v13 = vmul.f32 %v7397_v7, %v7397_v7  ;;  %v7408_v41 = vpack.c.bf16 %v1177_v21, %v1175_v44  ;;  %v7410_v48 = vpack.c.bf16 %v1176_v54, %v1174_v63 }
 0x1bb   : > { %6185 = vrsqrt.f32 %v964_v35  ;;  %v696_v11 = vmul.f32 0.00390625, %v653_v12  ;;  %v6180_v60 = vpop.eup %6179  ;;  %903 = vadd.xlane.f32.xlu0 %v902_v43  ;;  %v817_v20 = vmul.f32 %v7400_v5, %v7400_v5  ;;  %v1103_v56 = vmul.f32 %v7355_v4, %v1027_v37  ;;  %v5984_v35 = vld [vmem:[#allocation12 + $0xe8] ss:$16 sps:$4 sm:$0xff]   ;;  %v9701_v12 = vld [vmem:[#allocation22_spill] sm:$0xff] }
 0x1bc   : > { %9697 = vst [vmem:[#allocation47_spill] sm:$0xff] %v7408_v41  ;;  %9698 = vst [vmem:[#allocation48_spill] sm:$0xff] %v7410_v48  ;;  %v965_v10 = vadd.f32 1e-06, %v933_v57  ;;  %v1029_v6 = vmul.f32 %v6180_v60, %v7058_v2  ;;  %2156 = vmatprep.mubr.bf16.mxu0 %v7408_v41  ;;  %2349 = vmatprep.mubr.bf16.mxu1 %v7408_v41  ;;  %v1028_v43 = vmul.f32 %v6180_v60, %v9701_v12  ;;  %v5990_v41 = vld [vmem:[#allocation12 + $0xc8] ss:$16 sps:$4 sm:$0xff]  }
 0x1bd   : > { %v7416_v45 = vsub.f32 %v7149_v15, %v696_v11  ;;  %v7419_v30 = vsub.f32 %v7158_v22, %v696_v11  ;;  %v656_v44 = vpop.xlane.xlu1 %655  ;;  %v905_v47 = vadd.f32 %v817_v20, %v816_v13  ;;  %v1179_v37 = vadd.f32 %v7368_v14, %v1103_v56  ;;  %v5989_v15 = vld [vmem:[#allocation12 + $0xc4] ss:$16 sps:$4 sm:$0xff]   ;;  %2157 = vmatmul.mubr.bf16.vlgmr.msra.gmra.mxu0 %v7410_v48  ;;  %v5992_v11 = vld [vmem:[#allocation12 + $0xcc] ss:$16 sps:$4 sm:$0xff]  }
 0x1be   : > { %v856_v63 = vpop.xlane.xlu0 %855  ;;  %6187 = vrsqrt.f32 %v965_v10  ;;  %v697_v21 = vmul.f32 0.00390625, %v656_v44  ;;  %2350 = vmatmul.mubr.bf16.vlgmr.msra.gmra.mxu1 %v7410_v48  ;;  %v1105_v13 = vmul.f32 %v7355_v4, %v1029_v6  ;;  %v1102_v60 = vmul.f32 %v7358_v55, %v1026_v17  ;;  %v9702_v56 = vld [vmem:[#allocation35_spill] sm:$0xff]  ;;  %v9703_v44 = vld [vmem:[#allocation36_spill] sm:$0xff]  ;;  %2917 = vmatpush1.bf16.msra.mxu0 %v5981_v34 }
 0x1bf   : > { %9699 = vst [vmem:[#allocation49_spill] sm:$0xff] %v7416_v45  ;;  %9700 = vst [vmem:[#allocation50_spill] sm:$0xff] %v7419_v30  ;;  %v934_v2 = vmul.f32 0.00390625, %v856_v63  ;;  %v818_v22 = vmul.f32 %v7416_v45, %v7416_v45  ;;  %906 = vadd.xlane.f32.xlu1 %v905_v47  ;;  %v819_v57 = vmul.f32 %v7419_v30, %v7419_v30  ;;  %v9704_v48 = vld [vmem:[#allocation24_spill] sm:$0xff]  ;;  %3110 = vmatpush1.bf16.msra.mxu1 %v5984_v35 }
 0x1c0   : > { %v6182_v54 = vpop.eup %6181  ;;  %v1104_v20 = vmul.f32 %v7358_v55, %v1028_v43  ;;  %v7436_v10 = vsub.f32 %v9702_v56, %v697_v21  ;;  %v7439_v63 = vsub.f32 %v9703_v44, %v697_v21  ;;  %v5987_v47 = vld [vmem:[#allocation12 + $0xc0] ss:$16 sps:$4 sm:$0xff]   ;;  %v1181_v17 = vadd.f32 %v7368_v14, %v1105_v13  ;;  %2918 = vmatprep.subr.bf16.mxu0 %v5989_v15 }
 0x1c1   : > { %v966_v12 = vadd.f32 1e-06, %v934_v2  ;;  %v1031_v16 = vmul.f32 %v6182_v54, %v9704_v48  ;;  %v859_v45 = vpop.xlane.xlu1 %858  ;;  %v908_v6 = vadd.f32 %v819_v57, %v818_v22  ;;  %v1178_v43 = vadd.f32 %v7378_v1, %v1102_v60  ;;  %3111 = vmatprep.subr.bf16.mxu1 %v5992_v11  ;;  %v5998_v60 = vld [vmem:[#allocation12 + $0xac] ss:$16 sps:$4 sm:$0xff]  }
 0x1c2   : > { %v659_v30 = vpop.xlane.xlu0 %658  ;;  %v1180_v56 = vadd.f32 %v7378_v1, %v1104_v20  ;;  %v935_v21 = vmul.f32 0.00390625, %v859_v45  ;;  %v820_v48 = vmul.f32 %v7436_v10, %v7436_v10  ;;  %v7447_v35 = vpack.c.bf16 %v1181_v17, %v1179_v37  ;;  %2919 = vmatpush1.bf16.msra.mxu0 %v5987_v47  ;;  %v5995_v37 = vld [vmem:[#allocation12 + $0xa4] ss:$16 sps:$4 sm:$0xff]  }
 0x1c3   : > { %6189 = vrsqrt.f32 %v966_v12  ;;  %v698_v44 = vmul.f32 0.00390625, %v659_v30  ;;  %v6184_v34 = vpop.eup %6183  ;;  %909 = vadd.xlane.f32.xlu0 %v908_v6  ;;  %v821_v22 = vmul.f32 %v7439_v63, %v7439_v63  ;;  %v1107_v57 = vmul.f32 %v7355_v4, %v1031_v16  ;;  %v9709_v30 = vld [vmem:[#allocation26_spill] sm:$0xff]  ;;  %3112 = vmatpush1.bf16.msra.mxu1 %v5990_v41 }
 0x1c4   : > { %9705 = vst [vmem:[#allocation22_spill] sm:$0xff] %v7447_v35  ;;  %v7449_v2 = vpack.c.bf16 %v1180_v56, %v1178_v43  ;;  %v967_v13 = vadd.f32 1e-06, %v935_v21  ;;  %v1033_v11 = vmul.f32 %v6184_v34, %v9709_v30  ;;  %2166 = vmatprep.mubr.bf16.mxu0 %v7447_v35  ;;  %2359 = vmatprep.mubr.bf16.mxu1 %v7447_v35  ;;  %v5993_v43 = vld [vmem:[#allocation12 + $0xa0] ss:$16 sps:$4 sm:$0xff]  }
 0x1c5   : > { %v7455_v15 = vsub.f32 %v7185_v42, %v698_v44  ;;  %v7458_v45 = vsub.f32 %v7194_v18, %v698_v44  ;;  %v662_v20 = vpop.xlane.xlu1 %661  ;;  %v911_v16 = vadd.f32 %v821_v22, %v820_v48  ;;  %v1183_v6 = vadd.f32 %v7368_v14, %v1107_v57  ;;  %v9710_v42 = vld [vmem:[#allocation23_spill] sm:$0xff]  ;;  %v6001_v21 = vld [vmem:[#allocation12 + $0x84] ss:$16 sps:$4 sm:$0xff]   ;;  %v9711_v22 = vld [vmem:[#allocation25_spill] sm:$0xff]  ;;  %2920 = vmatprep.subr.bf16.mxu0 %v5995_v37 }
 0x1c6   : > { %9706 = vst [vmem:[#allocation35_spill] sm:$0xff] %v7449_v2  ;;  %v862_v12 = vpop.xlane.xlu0 %861  ;;  %v1030_v17 = vmul.f32 %v6182_v54, %v9710_v42  ;;  %6191 = vrsqrt.f32 %v967_v13  ;;  %v699_v18 = vmul.f32 0.00390625, %v662_v20  ;;  %2167 = vmatmul.mubr.bf16.gmra.mxu0 %v7449_v2  ;;  %2360 = vmatmul.mubr.bf16.gmra.mxu1 %v7449_v2  ;;  %v5996_v56 = vld [vmem:[#allocation12 + $0xa8] ss:$16 sps:$4 sm:$0xff]   ;;  %v1109_v54 = vmul.f32 %v7355_v4, %v1033_v11  ;;  %v9712_v42 = vld [vmem:[#allocation28_spill] sm:$0xff] }
 0x1c7   : > { %9707 = vst [vmem:[#allocation36_spill] sm:$0xff] %v7455_v15  ;;  %9708 = vst [vmem:[#allocation24_spill] sm:$0xff] %v7458_v45  ;;  %v936_v41 = vmul.f32 0.00390625, %v862_v12  ;;  %v822_v47 = vmul.f32 %v7455_v15, %v7455_v15  ;;  %912 = vadd.xlane.f32.xlu1 %v911_v16  ;;  %v823_v48 = vmul.f32 %v7458_v45, %v7458_v45  ;;  %3113 = vmatprep.subr.bf16.mxu1 %v5998_v60  ;;  %v6004_v16 = vld [vmem:[#allocation12 + $0x8c] ss:$16 sps:$4 sm:$0xff]  }
 0x1c8   : > { %v6186_v44 = vpop.eup %6185  ;;  %v1032_v57 = vmul.f32 %v6184_v34, %v9711_v22  ;;  %v1106_v13 = vmul.f32 %v7358_v55, %v1030_v17  ;;  %v7475_v30 = vsub.f32 %v7205_v26, %v699_v18  ;;  %v7478_v20 = vsub.f32 %v7212_v62, %v699_v18  ;;  %2921 = vmatpush1.bf16.msra.mxu0 %v5993_v43  ;;  %v5999_v37 = vld [vmem:[#allocation12 + $0x80] ss:$16 sps:$4 sm:$0xff]   ;;  %v6002_v60 = vld [vmem:[#allocation12 + $0x88] ss:$16 sps:$4 sm:$0xff]  }
 0x1c9   : > { %v968_v12 = vadd.f32 1e-06, %v936_v41  ;;  %v1035_v2 = vmul.f32 %v6186_v44, %v9712_v42  ;;  %v865_v35 = vpop.xlane.xlu1 %864  ;;  %v914_v45 = vadd.f32 %v823_v48, %v822_v47  ;;  %v1185_v11 = vadd.f32 %v7368_v14, %v1109_v54  ;;  %3114 = vmatpush1.bf16.msra.mxu1 %v5996_v56  ;;  %2922 = vmatprep.subr.bf16.mxu0 %v6001_v21  ;;  %v9714_v21 = vld [vmem:[#allocation30_spill] sm:$0xff] }
 0x1ca   : > { %v665_v15 = vpop.xlane.xlu0 %664  ;;  %v1108_v34 = vmul.f32 %v7358_v55, %v1032_v57  ;;  %v1182_v17 = vadd.f32 %v7378_v1, %v1106_v13  ;;  %v937_v26 = vmul.f32 0.00390625, %v865_v35  ;;  %v824_v18 = vmul.f32 %v7475_v30, %v7475_v30  ;;  %3115 = vmatprep.subr.bf16.mxu1 %v6004_v16  ;;  %v6005_v16 = vld [vmem:[#allocation12 + $0x60] ss:$16 sps:$4 sm:$0xff]  }
 0x1cb   : > { %6193 = vrsqrt.f32 %v968_v12  ;;  %v700_v62 = vmul.f32 0.00390625, %v665_v15  ;;  %v6188_v41 = vpop.eup %6187  ;;  %915 = vadd.xlane.f32.xlu0 %v914_v45  ;;  %v7486_v47 = vpack.c.bf16 %v1185_v11, %v1183_v6  ;;  %v825_v54 = vmul.f32 %v7478_v20, %v7478_v20  ;;  %v6007_v45 = vld [vmem:[#allocation12 + $0x64] ss:$16 sps:$4 sm:$0xff]  }
 0x1cc   : > { %v1184_v48 = vadd.f32 %v7378_v1, %v1108_v34  ;;  %v1111_v43 = vmul.f32 %v7355_v4, %v1035_v2  ;;  %v969_v35 = vadd.f32 1e-06, %v937_v26  ;;  %v1037_v22 = vmul.f32 %v6188_v41, %v9714_v21  ;;  %2923 = vmatpush1.bf16.msra.mxu0 %v5999_v37  ;;  %v6008_v34 = vld [vmem:[#allocation12 + $0x68] ss:$16 sps:$4 sm:$0xff]   ;;  %v6013_v21 = vld [vmem:[#allocation12 + $0x44] ss:$16 sps:$4 sm:$0xff]  }
 0x1cd   : > { %9713 = vst [vmem:[#allocation26_spill] sm:$0xff] %v7486_v47  ;;  %v7493_v15 = vsub.f32 %v7222_v23, %v700_v62  ;;  %v7496_v56 = vsub.f32 %v7230_v27, %v700_v62  ;;  %2176 = vmatprep.mubr.bf16.mxu0 %v7486_v47  ;;  %2369 = vmatprep.mubr.bf16.mxu1 %v7486_v47  ;;  %v668_v6 = vpop.xlane.xlu1 %667  ;;  %v6010_v23 = vld [vmem:[#allocation12 + $0x6c] ss:$16 sps:$4 sm:$0xff]  }
 0x1ce   : > { %v7501_v57 = vpack.c.bf16 %v1184_v48, %v1182_v17  ;;  %v868_v13 = vpop.xlane.xlu0 %867  ;;  %v917_v2 = vadd.f32 %v825_v54, %v824_v18  ;;  %v1187_v12 = vadd.f32 %v7368_v14, %v1111_v43  ;;  %6195 = vrsqrt.f32 %v969_v35  ;;  %3116 = vmatpush1.bf16.msra.mxu1 %v6002_v60  ;;  %v9716_v18 = vld [vmem:[#allocation27_spill] sm:$0xff]  ;;  %v9717_v43 = vld [vmem:[#allocation29_spill] sm:$0xff]  ;;  %2924 = vmatprep.subr.bf16.mxu0 %v6007_v45 }
 0x1cf   : > { %v701_v42 = vmul.f32 0.00390625, %v668_v6  ;;  %v938_v27 = vmul.f32 0.00390625, %v868_v13  ;;  %v826_v11 = vmul.f32 %v7493_v15, %v7493_v15  ;;  %v827_v17 = vmul.f32 %v7496_v56, %v7496_v56  ;;  %v6016_v6 = vld [vmem:[#allocation12 + $0x4c] ss:$16 sps:$4 sm:$0xff]   ;;  %3117 = vmatprep.subr.bf16.mxu1 %v6010_v23  ;;  %v6014_v45 = vld [vmem:[#allocation12 + $0x48] ss:$16 sps:$4 sm:$0xff]  }
 0x1d0   : > { %9715 = vst [vmem:[#allocation23_spill] sm:$0xff] %v7501_v57  ;;  %v6190_v26 = vpop.eup %6189  ;;  %2177 = vmatmul.mubr.bf16.gmra.mxu0 %v7501_v57  ;;  %2370 = vmatmul.mubr.bf16.gmra.mxu1 %v7501_v57  ;;  %v1113_v62 = vmul.f32 %v7355_v4, %v1037_v22  ;;  %v1034_v48 = vmul.f32 %v6186_v44, %v9716_v18  ;;  %v9718_v18 = vld [vmem:[#allocation32_spill] sm:$0xff] }
 0x1d1   : > { %v7513_v54 = vsub.f32 %v7249_v25, %v701_v42  ;;  %v7516_v37 = vsub.f32 %v7252_v3, %v701_v42  ;;  %v970_v60 = vadd.f32 1e-06, %v938_v27  ;;  %918 = vadd.xlane.f32.xlu1 %v917_v2  ;;  %v1036_v35 = vmul.f32 %v6188_v41, %v9717_v43  ;;  %v871_v13 = vpop.xlane.xlu1 %870  ;;  %2925 = vmatpush1.bf16.msra.mxu0 %v6005_v16  ;;  %v6011_v41 = vld [vmem:[#allocation12 + $0x40] ss:$16 sps:$4 sm:$0xff]  }
 0x1d2   : > { %v874_v57 = vpop.xlane.xlu0 %873  ;;  %v920_v47 = vadd.f32 %v827_v17, %v826_v11  ;;  %v1189_v22 = vadd.f32 %v7368_v14, %v1113_v62  ;;  %v1110_v44 = vmul.f32 %v7358_v55, %v1034_v48  ;;  %v1039_v25 = vmul.f32 %v6190_v26, %v9718_v18  ;;  %3118 = vmatpush1.bf16.msra.mxu1 %v6008_v34  ;;  %v6019_v62 = vld [vmem:[#allocation12 + $0x24] ss:$16 sps:$4 sm:$0xff]   ;;  %v6022_v18 = vld [vmem:[#allocation12 + $0x2c] ss:$16 sps:$4 sm:$0xff]  }
 0x1d3   : > { %6197 = vrsqrt.f32 %v970_v60  ;;  %v939_v3 = vmul.f32 0.00390625, %v871_v13  ;;  %v940_v42 = vmul.f32 0.00390625, %v874_v57  ;;  %v1112_v2 = vmul.f32 %v7358_v55, %v1036_v35  ;;  %v6192_v27 = vpop.eup %6191  ;;  %v9720_v34 = vld [vmem:[#allocation34_spill] sm:$0xff]  ;;  %2926 = vmatprep.subr.bf16.mxu0 %v6013_v21  ;;  %3119 = vmatprep.subr.bf16.mxu1 %v6016_v6  ;;  %v6020_v6 = vld [vmem:[#allocation12 + $0x28] ss:$16 sps:$4 sm:$0xff]  }
 0x1d4   : > { %921 = vadd.xlane.f32.xlu0 %v920_v47  ;;  %v7523_v43 = vpack.c.bf16 %v1189_v22, %v1187_v12  ;;  %v1186_v11 = vadd.f32 %v7378_v1, %v1110_v44  ;;  %v828_v17 = vmul.f32 %v7513_v54, %v7513_v54  ;;  %v829_v23 = vmul.f32 %v7516_v37, %v7516_v37  ;;  %v9721_v22 = vld [vmem:[#allocation31_spill] sm:$0xff]  ;;  %v6017_v21 = vld [vmem:[#allocation12 + $0x20] ss:$16 sps:$4 sm:$0xff]  }
 0x1d5   : > { %v971_v57 = vadd.f32 1e-06, %v939_v3  ;;  %v972_v48 = vadd.f32 1e-06, %v940_v42  ;;  %v1188_v16 = vadd.f32 %v7378_v1, %v1112_v2  ;;  %v1041_v60 = vmul.f32 %v6192_v27, %v9720_v34  ;;  %v877_v47 = vpop.xlane.xlu1 %876  ;;  %2927 = vmatpush1.bf16.msra.mxu0 %v6011_v41 }
 0x1d6   : > { %9719 = vst [vmem:[#allocation25_spill] sm:$0xff] %v7523_v43  ;;  %2186 = vmatprep.mubr.bf16.mxu0 %v7523_v43  ;;  %2379 = vmatprep.mubr.bf16.mxu1 %v7523_v43  ;;  %v880_v12 = vpop.xlane.xlu0 %879  ;;  %v923_v35 = vadd.f32 %v829_v23, %v828_v17  ;;  %v1115_v13 = vmul.f32 %v7355_v4, %v1039_v25  ;;  %v941_v3 = vmul.f32 0.00390625, %v877_v47  ;;  %v9722_v17 = vld [vmem:[#allocation33_spill] sm:$0xff]  ;;  %v6025_v25 = vld [vmem:[#allocation12 + $0x4] ss:$16 sps:$4 sm:$0xff]  }
 0x1d7   : > { %v1038_v44 = vmul.f32 %v6190_v26, %v9721_v22  ;;  %6199 = vrsqrt.f32 %v971_v57  ;;  %v7536_v42 = vpack.c.bf16 %v1188_v16, %v1186_v11  ;;  %v942_v2 = vmul.f32 0.00390625, %v880_v12  ;;  %3120 = vmatpush1.bf16.msra.mxu1 %v6014_v45  ;;  %2928 = vmatprep.subr.bf16.mxu0 %v6019_v62  ;;  %v6028_v26 = vld [vmem:[#allocation12 + $0xc] ss:$16 sps:$4 sm:$0xff]   ;;  %v9723_v11 = vld [vmem:[#allocation38_spill] sm:$0xff] }
 0x1d8   : > { %v6194_v34 = vpop.eup %6193  ;;  %6201 = vrsqrt.f32 %v972_v48  ;;  %924 = vadd.xlane.f32.xlu1 %v923_v35  ;;  %v1117_v43 = vmul.f32 %v7355_v4, %v1041_v60  ;;  %v1040_v23 = vmul.f32 %v6192_v27, %v9722_v17  ;;  %v973_v22 = vadd.f32 1e-06, %v941_v3  ;;  %v9724_v62 = vld [vmem:[#allocation37_spill] sm:$0xff]  ;;  %3121 = vmatprep.subr.bf16.mxu1 %v6022_v18 }
 0x1d9   : > { %2187 = vmatmul.mubr.bf16.gmra.mxu0 %v7536_v42  ;;  %2380 = vmatmul.mubr.bf16.gmra.mxu1 %v7536_v42  ;;  %v1191_v41 = vadd.f32 %v7368_v14, %v1115_v13  ;;  %v1114_v45 = vmul.f32 %v7358_v55, %v1038_v44  ;;  %v1043_v57 = vmul.f32 %v6194_v34, %v9723_v11  ;;  %v974_v48 = vadd.f32 1e-06, %v942_v2  ;;  %v883_v16 = vpop.xlane.xlu1 %882  ;;  %v6023_v13 = vld [vmem:[#allocation12] ss:$16 sps:$4 sm:$0xff]   ;;  %v6026_v44 = vld [vmem:[#allocation12 + $0x8] ss:$16 sps:$4 sm:$0xff]  }
 0x1da   : > { %v1193_v60 = vadd.f32 %v7368_v14, %v1117_v43  ;;  %v1116_v27 = vmul.f32 %v7358_v55, %v1040_v23  ;;  %v1042_v47 = vmul.f32 %v6194_v34, %v9724_v62  ;;  %6203 = vrsqrt.f32 %v973_v22  ;;  %v886_v35 = vpop.xlane.xlu0 %885  ;;  %2929 = vmatpush1.bf16.msra.mxu0 %v6017_v21  ;;  %v6031_v34 = vld [vmem:[#allocation12 + $0x1e4] ss:$16 sps:$4 sm:$0xff]   ;;  %v6034_v18 = vld [vmem:[#allocation12 + $0x1ec] ss:$16 sps:$4 sm:$0xff]  }
 0x1db   : > { %v943_v12 = vmul.f32 0.00390625, %v883_v16  ;;  %v1190_v3 = vadd.f32 %v7378_v1, %v1114_v45  ;;  %3122 = vmatpush1.bf16.msra.mxu1 %v6020_v6  ;;  %v6196_v17 = vpop.eup %6195  ;;  %v1119_v43 = vmul.f32 %v7355_v4, %v1043_v57  ;;  %2930 = vmatprep.subr.bf16.mxu0 %v6025_v25  ;;  %v9725_v22 = vld [vmem:[#allocation40_spill] sm:$0xff]  ;;  %v9726_v62 = vld [vmem:[#allocation39_spill] sm:$0xff]  ;;  %6205 = vrsqrt.f32 %v974_v48 }
 0x1dc   : > { %v7549_v11 = vpack.c.bf16 %v1193_v60, %v1191_v41  ;;  %v1192_v2 = vadd.f32 %v7378_v1, %v1116_v27  ;;  %3123 = vmatprep.subr.bf16.mxu1 %v6028_v26  ;;  %v1045_v16 = vmul.f32 %v6196_v17, %v9725_v22  ;;  %v1044_v45 = vmul.f32 %v6196_v17, %v9726_v62  ;;  %v6029_v27 = vld [vmem:[#allocation12 + $0x1e0] ss:$16 sps:$4 sm:$0xff]   ;;  %v6032_v48 = vld [vmem:[#allocation12 + $0x1e8] ss:$16 sps:$4 sm:$0xff]   ;;  %v6037_v17 = vld [vmem:[#allocation12 + $0x1c4] ss:$16 sps:$4 sm:$0xff]  }
 0x1dd   : > { %v975_v23 = vadd.f32 1e-06, %v943_v12  ;;  %v944_v21 = vmul.f32 0.00390625, %v886_v35  ;;  %v889_v6 = vpop.xlane.xlu1 %888  ;;  %v1118_v57 = vmul.f32 %v7358_v55, %v1042_v47  ;;  %v1195_v35 = vadd.f32 %v7368_v14, %v1119_v43 }
 0x1de   : > { %2196 = vmatprep.mubr.bf16.mxu0 %v7549_v11  ;;  %2389 = vmatprep.mubr.bf16.mxu1 %v7549_v11  ;;  %v7557_v41 = vpack.c.bf16 %v1192_v2, %v1190_v3  ;;  %v945_v25 = vmul.f32 0.00390625, %v889_v6  ;;  %v1121_v26 = vmul.f32 %v7355_v4, %v1045_v16  ;;  %v1120_v60 = vmul.f32 %v7358_v55, %v1044_v45  ;;  %v6040_v3 = vld [vmem:[#allocation12 + $0x1cc] ss:$16 sps:$4 sm:$0xff]   ;;  %v6038_v16 = vld [vmem:[#allocation12 + $0x1c8] ss:$16 sps:$4 sm:$0xff]  }
 0x1df   : > { %6207 = vrsqrt.f32 %v975_v23  ;;  %2931 = vmatpush1.bf16.msra.mxu0 %v6023_v13  ;;  %3124 = vmatpush1.bf16.msra.mxu1 %v6026_v44  ;;  %v976_v44 = vadd.f32 1e-06, %v944_v21  ;;  %v1194_v43 = vadd.f32 %v7378_v1, %v1118_v57  ;;  %v6043_v6 = vld [vmem:[#allocation12 + $0x1a4] ss:$16 sps:$4 sm:$0xff]  }
 0x1e0   : > { %v6198_v12 = vpop.eup %6197  ;;  %2932 = vmatprep.subr.bf16.mxu0 %v6031_v34  ;;  %3125 = vmatprep.subr.bf16.mxu1 %v6034_v18  ;;  %v977_v2 = vadd.f32 1e-06, %v945_v25  ;;  %v1197_v47 = vadd.f32 %v7368_v14, %v1121_v26  ;;  %v1196_v23 = vadd.f32 %v7378_v1, %v1120_v60  ;;  %v6035_v18 = vld [vmem:[#allocation12 + $0x1c0] ss:$16 sps:$4 sm:$0xff]   ;;  %v6046_v25 = vld [vmem:[#allocation12 + $0x1ac] ss:$16 sps:$4 sm:$0xff]  }
 0x1e1   : > { %2197 = vmatmul.mubr.bf16.gmra.mxu0 %v7557_v41  ;;  %2390 = vmatmul.mubr.bf16.gmra.mxu1 %v7557_v41  ;;  %v1047_v13 = vmul.f32 %v6198_v12, %v7225_v61  ;;  %v1046_v34 = vmul.f32 %v6198_v12, %v7215_v58  ;;  %v6041_v12 = vld [vmem:[#allocation12 + $0x1a0] ss:$16 sps:$4 sm:$0xff]  }
 0x1e2   : > { %v7568_v22 = vpack.c.bf16 %v1197_v47, %v1195_v35  ;;  %6209 = vrsqrt.f32 %v977_v2  ;;  %v7575_v21 = vpack.c.bf16 %v1196_v23, %v1194_v43  ;;  %v6052_v23 = vld [vmem:[#allocation12 + $0x18c] ss:$16 sps:$4 sm:$0xff]  }
 0x1e3   : > { %2933 = vmatpush2.bf16.msra.mxu0 %v6029_v27  ;;  %3126 = vmatpush2.bf16.msra.mxu1 %v6032_v48  ;;  %v1123_v45 = vmul.f32 %v7355_v4, %v1047_v13  ;;  %6211 = vrsqrt.f32 %v976_v44  ;;  %v1122_v27 = vmul.f32 %v7358_v55, %v1046_v34 }
 0x1e4   : > { %v6200_v62 = vpop.eup %6199  ;;  %2934 = vmatprep.subr.bf16.mxu0 %v6037_v17  ;;  %3127 = vmatprep.subr.bf16.mxu1 %v6040_v3 }
 0x1e5   : > { %v6202_v61 = vpop.eup %6201  ;;  %2206 = vmatprep.mubr.bf16.mxu0 %v7568_v22  ;;  %2399 = vmatprep.mubr.bf16.mxu1 %v7568_v22  ;;  %v1049_v58 = vmul.f32 %v6200_v62, %v7236_v29  ;;  %v1048_v57 = vmul.f32 %v6200_v62, %v7233_v28  ;;  %v1199_v17 = vadd.f32 %v7368_v14, %v1123_v45  ;;  %v6044_v29 = vld [vmem:[#allocation12 + $0x1a8] ss:$16 sps:$4 sm:$0xff]   ;;  %v6049_v28 = vld [vmem:[#allocation12 + $0x184] ss:$16 sps:$4 sm:$0xff]  }
 0x1e6   : > { %v1051_v26 = vmul.f32 %v6202_v61, %v7246_v31  ;;  %v1198_v43 = vadd.f32 %v7378_v1, %v1122_v27  ;;  %v6058_v27 = vld [vmem:[#allocation12 + $0x16c] ss:$16 sps:$4 sm:$0xff]  }
 0x1e7   : > { %v1125_v60 = vmul.f32 %v7355_v4, %v1049_v58  ;;  %v1124_v48 = vmul.f32 %v7358_v55, %v1048_v57  ;;  %2935 = vmatpush2.bf16.msra.mxu0 %v6035_v18  ;;  %3128 = vmatpush2.bf16.msra.mxu1 %v6038_v16  ;;  %v6204_v35 = vpop.eup %6203  ;;  %v6047_v16 = vld [vmem:[#allocation12 + $0x180] ss:$16 sps:$4 sm:$0xff]  }
 0x1e8   : > { %v1127_v3 = vmul.f32 %v7355_v4, %v1051_v26  ;;  %2936 = vmatprep.subr.bf16.mxu0 %v6043_v6  ;;  %3129 = vmatprep.subr.bf16.mxu1 %v6046_v25  ;;  %v1053_v47 = vmul.f32 %v6204_v35, %v7262_v40  ;;  %v6206_v13 = vpop.eup %6205  ;;  %v1052_v18 = vmul.f32 %v6204_v35, %v7259_v19  ;;  %v6050_v40 = vld [vmem:[#allocation12 + $0x188] ss:$16 sps:$4 sm:$0xff]   ;;  %v6055_v25 = vld [vmem:[#allocation12 + $0x164] ss:$16 sps:$4 sm:$0xff]  }
 0x1e9   : > { %2207 = vmatmul.mubr.bf16.gmra.mxu0 %v7575_v21  ;;  %2400 = vmatmul.mubr.bf16.gmra.mxu1 %v7575_v21  ;;  %v1201_v31 = vadd.f32 %v7368_v14, %v1125_v60  ;;  %v1200_v2 = vadd.f32 %v7378_v1, %v1124_v48  ;;  %v1050_v6 = vmul.f32 %v6202_v61, %v7243_v39  ;;  %v6053_v61 = vld [vmem:[#allocation12 + $0x160] ss:$16 sps:$4 sm:$0xff]   ;;  %v6061_v35 = vld [vmem:[#allocation12 + $0x144] ss:$16 sps:$4 sm:$0xff]  }
 0x1ea   : > { %v1129_v34 = vmul.f32 %v7355_v4, %v1053_v47  ;;  %v1203_v45 = vadd.f32 %v7368_v14, %v1127_v3  ;;  %v1055_v26 = vmul.f32 %v6206_v13, %v7270_v9  ;;  %v1128_v39 = vmul.f32 %v7358_v55, %v1052_v18 }
 0x1eb   : > { %v7590_v44 = vpack.c.bf16 %v1201_v31, %v1199_v17  ;;  %2937 = vmatpush2.bf16.msra.mxu0 %v6041_v12  ;;  %3130 = vmatpush2.bf16.msra.mxu1 %v6044_v29  ;;  %v7599_v58 = vpack.c.bf16 %v1200_v2, %v1198_v43  ;;  %v6056_v12 = vld [vmem:[#allocation12 + $0x168] ss:$16 sps:$4 sm:$0xff]   ;;  %v1126_v9 = vmul.f32 %v7358_v55, %v1050_v6  ;;  %v6059_v2 = vld [vmem:[#allocation12 + $0x140] ss:$16 sps:$4 sm:$0xff]  }
 0x1ec   : > { %v6208_v62 = vpop.eup %6207  ;;  %2938 = vmatprep.subr.bf16.mxu0 %v6049_v28  ;;  %v1205_v57 = vadd.f32 %v7368_v14, %v1129_v34  ;;  %3131 = vmatprep.subr.bf16.mxu1 %v6052_v23  ;;  %v1131_v3 = vmul.f32 %v7355_v4, %v1055_v26  ;;  %v1204_v28 = vadd.f32 %v7378_v1, %v1128_v39  ;;  %v6062_v43 = vld [vmem:[#allocation12 + $0x148] ss:$16 sps:$4 sm:$0xff]  }
 0x1ed   : > { %2216 = vmatprep.mubr.bf16.mxu0 %v7590_v44  ;;  %2409 = vmatprep.mubr.bf16.mxu1 %v7590_v44  ;;  %v1057_v19 = vmul.f32 %v6208_v62, %v7286_v49  ;;  %v6064_v49 = vld [vmem:[#allocation12 + $0x14c] ss:$16 sps:$4 sm:$0xff]   ;;  %v1056_v31 = vmul.f32 %v6208_v62, %v7279_v46  ;;  %v1202_v34 = vadd.f32 %v7378_v1, %v1126_v9 }
 0x1ee   : > { %v7604_v60 = vpack.c.bf16 %v1205_v57, %v1203_v45  ;;  %v1054_v18 = vmul.f32 %v6206_v13, %v7267_v59  ;;  %v1207_v45 = vadd.f32 %v7368_v14, %v1131_v3  ;;  %v6068_v59 = vld [vmem:[#allocation12 + $0x128] ss:$16 sps:$4 sm:$0xff]   ;;  %v6076_v9 = vld [vmem:[#allocation12 + $0x10c] ss:$16 sps:$4 sm:$0xff]  }
 0x1ef   : > { %2939 = vmatpush2.bf16.msra.mxu0 %v6047_v16  ;;  %v1133_v48 = vmul.f32 %v7355_v4, %v1057_v19  ;;  %3132 = vmatpush2.bf16.msra.mxu1 %v6050_v40  ;;  %v6210_v17 = vpop.eup %6209  ;;  %v6067_v16 = vld [vmem:[#allocation12 + $0x124] ss:$16 sps:$4 sm:$0xff]   ;;  %v7622_v62 = vpack.c.bf16 %v1204_v28, %v1202_v34  ;;  %v1132_v6 = vmul.f32 %v7358_v55, %v1056_v31  ;;  %v6065_v40 = vld [vmem:[#allocation12 + $0x120] ss:$16 sps:$4 sm:$0xff]  }
 0x1f0   : > { %2940 = vmatprep.subr.bf16.mxu0 %v6055_v25  ;;  %v6212_v29 = vpop.eup %6211  ;;  %3133 = vmatprep.subr.bf16.mxu1 %v6058_v27  ;;  %v1061_v23 = vmul.f32 %v6210_v17, %v7306_v52  ;;  %v6070_v52 = vld [vmem:[#allocation12 + $0x12c] ss:$16 sps:$4 sm:$0xff]   ;;  %v1060_v26 = vmul.f32 %v6210_v17, %v7299_v51  ;;  %v6073_v27 = vld [vmem:[#allocation12 + $0x104] ss:$16 sps:$4 sm:$0xff]  }
 0x1f1   : > { %2217 = vmatmul.mubr.bf16.gmra.mxu0 %v7599_v58  ;;  %2410 = vmatmul.mubr.bf16.gmra.mxu1 %v7599_v58  ;;  %v1209_v47 = vadd.f32 %v7368_v14, %v1133_v48  ;;  %v1059_v46 = vmul.f32 %v6212_v29, %v7296_v32  ;;  %v1130_v32 = vmul.f32 %v7358_v55, %v1054_v18  ;;  %v6074_v48 = vld [vmem:[#allocation12 + $0x108] ss:$16 sps:$4 sm:$0xff]  }
 0x1f2   : > { %2226 = vmatprep.mubr.bf16.mxu0 %v7604_v60  ;;  %2419 = vmatprep.mubr.bf16.mxu1 %v7604_v60  ;;  %v1137_v57 = vmul.f32 %v7355_v4, %v1061_v23  ;;  %v1208_v19 = vadd.f32 %v7378_v1, %v1132_v6  ;;  %v1136_v51 = vmul.f32 %v7358_v55, %v1060_v26 }
 0x1f3   : > { %2941 = vmatpush2.bf16.msra.mxu0 %v6053_v61  ;;  %3134 = vmatpush2.bf16.msra.mxu1 %v6056_v12  ;;  %v7625_v25 = vpack.c.bf16 %v1209_v47, %v1207_v45  ;;  %v1135_v13 = vmul.f32 %v7355_v4, %v1059_v46  ;;  %v6071_v61 = vld [vmem:[#allocation12 + $0x100] ss:$16 sps:$4 sm:$0xff]   ;;  %v1206_v12 = vadd.f32 %v7378_v1, %v1130_v32 }
 0x1f4   : > { %2942 = vmatprep.subr.bf16.mxu0 %v6061_v35  ;;  %3135 = vmatprep.subr.bf16.mxu1 %v6064_v49  ;;  %v1213_v39 = vadd.f32 %v7368_v14, %v1137_v57  ;;  %v1058_v35 = vmul.f32 %v6212_v29, %v7293_v50  ;;  %v1212_v50 = vadd.f32 %v7378_v1, %v1136_v51 }
 0x1f5   : > { %v1211_v49 = vadd.f32 %v7368_v14, %v1135_v13  ;;  %v7640_v3 = vpack.c.bf16 %v1208_v19, %v1206_v12 }
 0x1f6   : > { %v1134_v28 = vmul.f32 %v7358_v55, %v1058_v35 }
 0x1f7   : > { %2943 = vmatpush2.bf16.msra.mxu0 %v6059_v2  ;;  %3136 = vmatpush2.bf16.msra.mxu1 %v6062_v43  ;;  %v7643_v17 = vpack.c.bf16 %v1213_v39, %v1211_v49  ;;  %v9727_v49 = vld [vmem:[#allocation42_spill] sm:$0xff] }
 0x1f8   : > { %2944 = vmatprep.subr.bf16.mxu0 %v6067_v16  ;;  %3137 = vmatprep.subr.bf16.mxu1 %v6070_v52  ;;  %v1210_v29 = vadd.f32 %v7378_v1, %v1134_v28 }
 0x1f9   : > { %2227 = vmatmul.mubr.bf16.gmra.mxu0 %v7622_v62  ;;  %2420 = vmatmul.mubr.bf16.gmra.mxu1 %v7622_v62 }
 0x1fa   : > { %2236 = vmatprep.mubr.bf16.mxu0 %v7625_v25  ;;  %2429 = vmatprep.mubr.bf16.mxu1 %v7625_v25  ;;  %v7652_v31 = vpack.c.bf16 %v1212_v50, %v1210_v29 }
 0x1fb   : > { %2945 = vmatpush2.bf16.msra.mxu0 %v6065_v40  ;;  %3138 = vmatpush2.bf16.msra.mxu1 %v6068_v59 }
 0x1fc   : > { %2946 = vmatprep.subr.bf16.mxu0 %v6073_v27  ;;  %3139 = vmatprep.subr.bf16.mxu1 %v6076_v9 }
 0x1ff   : > { %2947 = vmatpush2.bf16.msra.mxu0 %v6071_v61  ;;  %3140 = vmatpush2.bf16.msra.mxu1 %v6074_v48 }
 0x201   : > { %2237 = vmatmul.mubr.bf16.gmra.mxu0 %v7640_v3  ;;  %2430 = vmatmul.mubr.bf16.gmra.mxu1 %v7640_v3 }
 0x202   : > { %2246 = vmatprep.mubr.bf16.mxu0 %v7643_v17  ;;  %2439 = vmatprep.mubr.bf16.mxu1 %v7643_v17 }
 0x209   : > { %2247 = vmatmul.mubr.bf16.gmra.mxu0 %v7652_v31  ;;  %2440 = vmatmul.mubr.bf16.gmra.mxu1 %v7652_v31 }
 0x234   : > { %v892_v2 = vpop.xlane.xlu0 %891 }
 0x235   : > { %v946_v47 = vmul.f32 0.00390625, %v892_v2 }
 0x237   : > { %v978_v23 = vadd.f32 1e-06, %v946_v47  ;;  %v895_v43 = vpop.xlane.xlu1 %894 }
 0x238   : > { %v947_v34 = vmul.f32 0.00390625, %v895_v43 }
 0x239   : > { %6213 = vrsqrt.f32 %v978_v23 }
 0x23a   : > { %v979_v18 = vadd.f32 1e-06, %v947_v34 }
 0x23c   : > { %v898_v16 = vpop.xlane.xlu0 %897  ;;  %6215 = vrsqrt.f32 %v979_v18 }
 0x23d   : > { %v948_v45 = vmul.f32 0.00390625, %v898_v16 }
 0x23f   : > { %v980_v46 = vadd.f32 1e-06, %v948_v45  ;;  %v901_v6 = vpop.xlane.xlu1 %900  ;;  %v9729_v45 = vld [vmem:[#allocation45_spill] sm:$0xff] }
 0x240   : > { %v949_v40 = vmul.f32 0.00390625, %v901_v6 }
 0x241   : > { %6217 = vrsqrt.f32 %v980_v46 }
 0x242   : > { %v981_v52 = vadd.f32 1e-06, %v949_v40 }
 0x244   : > { %v904_v57 = vpop.xlane.xlu0 %903  ;;  %6219 = vrsqrt.f32 %v981_v52 }
 0x245   : > { %v950_v59 = vmul.f32 0.00390625, %v904_v57 }
 0x246   : > { %v6214_v32 = vpop.eup %6213 }
 0x247   : > { %v982_v13 = vadd.f32 1e-06, %v950_v59  ;;  %v1063_v19 = vmul.f32 %v6214_v32, %v7320_v53  ;;  %v1062_v26 = vmul.f32 %v6214_v32, %v7317_v24 }
 0x248   : > { %v907_v39 = vpop.xlane.xlu1 %906 }
 0x249   : > { %6221 = vrsqrt.f32 %v982_v13  ;;  %v951_v61 = vmul.f32 0.00390625, %v907_v39  ;;  %v6216_v27 = vpop.eup %6215  ;;  %v1139_v48 = vmul.f32 %v7355_v4, %v1063_v19  ;;  %v1138_v12 = vmul.f32 %v7358_v55, %v1062_v26 }
 0x24a   : > { %v1065_v9 = vmul.f32 %v6216_v27, %v7332_v0  ;;  %v1064_v51 = vmul.f32 %v6216_v27, %v9727_v49  ;;  %v9728_v0 = vld [vmem:[#allocation46_spill] sm:$0xff] }
 0x24b   : > { %v983_v35 = vadd.f32 1e-06, %v951_v61  ;;  %v1215_v2 = vadd.f32 %v7368_v14, %v1139_v48  ;;  %v1214_v47 = vadd.f32 %v7378_v1, %v1138_v12  ;;  %v6079_v12 = vld [vmem:[#allocation13 + $0x74] ss:$8 sps:$4 sm:$0xff]  }
 0x24c   : > { %v910_v28 = vpop.xlane.xlu0 %909  ;;  %v1141_v53 = vmul.f32 %v7355_v4, %v1065_v9  ;;  %v1140_v24 = vmul.f32 %v7358_v55, %v1064_v51  ;;  %4518 = vmatprep.subr.bf16.mxu0 %v6079_v12 }
 0x24d   : > { %6223 = vrsqrt.f32 %v983_v35  ;;  %v952_v50 = vmul.f32 0.00390625, %v910_v28 }
 0x24e   : > { %v6218_v29 = vpop.eup %6217  ;;  %v1217_v43 = vadd.f32 %v7368_v14, %v1141_v53  ;;  %v1216_v34 = vadd.f32 %v7378_v1, %v1140_v24 }
 0x24f   : > { %v984_v23 = vadd.f32 1e-06, %v952_v50  ;;  %v1067_v18 = vmul.f32 %v6218_v29, %v9728_v0  ;;  %v1066_v46 = vmul.f32 %v6218_v29, %v9729_v45 }
 0x250   : > { %v913_v16 = vpop.xlane.xlu1 %912  ;;  %v7670_v40 = vpack.c.bf16 %v1217_v43, %v1215_v2  ;;  %v7672_v52 = vpack.c.bf16 %v1216_v34, %v1214_v47 }
 0x251   : > { %6225 = vrsqrt.f32 %v984_v23  ;;  %v953_v6 = vmul.f32 0.00390625, %v913_v16  ;;  %v6220_v57 = vpop.eup %6219  ;;  %v1143_v59 = vmul.f32 %v7355_v4, %v1067_v18  ;;  %v1142_v32 = vmul.f32 %v7358_v55, %v1066_v46 }
 0x252   : > { %2256 = vmatprep.mubr.bf16.mxu0 %v7670_v40  ;;  %2449 = vmatprep.mubr.bf16.mxu1 %v7670_v40  ;;  %v1069_v19 = vmul.f32 %v6220_v57, %v7364_v33  ;;  %v1068_v26 = vmul.f32 %v6220_v57, %v7361_v38  ;;  %v6082_v33 = vld [vmem:[#allocation13 + $0x174] ss:$8 sps:$4 sm:$0xff]  }
 0x253   : > { %v985_v13 = vadd.f32 1e-06, %v953_v6  ;;  %2257 = vmatmul.mubr.bf16.gmra.mxu0 %v7672_v52  ;;  %2450 = vmatmul.mubr.bf16.gmra.mxu1 %v7672_v52  ;;  %v1219_v9 = vadd.f32 %v7368_v14, %v1143_v59  ;;  %v1218_v49 = vadd.f32 %v7378_v1, %v1142_v32 }
 0x254   : > { %v916_v39 = vpop.xlane.xlu0 %915  ;;  %v1145_v27 = vmul.f32 %v7355_v4, %v1069_v19  ;;  %v1144_v48 = vmul.f32 %v7358_v55, %v1068_v26  ;;  %4711 = vmatprep.subr.bf16.mxu1 %v6082_v33 }
 0x255   : > { %6227 = vrsqrt.f32 %v985_v13  ;;  %v954_v61 = vmul.f32 0.00390625, %v916_v39  ;;  %v9730_v13 = vld [vmem:[#allocation50_spill] sm:$0xff]  ;;  %v9731_v39 = vld [vmem:[#allocation49_spill] sm:$0xff] }
 0x256   : > { %v6222_v35 = vpop.eup %6221  ;;  %v1221_v38 = vadd.f32 %v7368_v14, %v1145_v27  ;;  %v1220_v28 = vadd.f32 %v7378_v1, %v1144_v48 }
 0x257   : > { %v986_v51 = vadd.f32 1e-06, %v954_v61  ;;  %v1071_v50 = vmul.f32 %v6222_v35, %v7384_v8  ;;  %v1070_v53 = vmul.f32 %v6222_v35, %v7381_v36 }
 0x258   : > { %v7690_v29 = vpack.c.bf16 %v1221_v38, %v1219_v9  ;;  %v7692_v2 = vpack.c.bf16 %v1220_v28, %v1218_v49 }
 0x259   : > { %6229 = vrsqrt.f32 %v986_v51  ;;  %v1147_v43 = vmul.f32 %v7355_v4, %v1071_v50  ;;  %v1146_v34 = vmul.f32 %v7358_v55, %v1070_v53 }
 0x25a   : > { %v919_v24 = vpop.xlane.xlu1 %918  ;;  %v6224_v47 = vpop.eup %6223  ;;  %2266 = vmatprep.mubr.bf16.mxu0 %v7690_v29  ;;  %2459 = vmatprep.mubr.bf16.mxu1 %v7690_v29 }
 0x25b   : > { %v955_v23 = vmul.f32 0.00390625, %v919_v24  ;;  %v1073_v8 = vmul.f32 %v6224_v47, %v7400_v5  ;;  %v1072_v36 = vmul.f32 %v6224_v47, %v7397_v7  ;;  %2267 = vmatmul.mubr.bf16.gmra.mxu0 %v7692_v2  ;;  %2460 = vmatmul.mubr.bf16.gmra.mxu1 %v7692_v2  ;;  %v1223_v57 = vadd.f32 %v7368_v14, %v1147_v43 }
 0x25c   : > { %v1222_v59 = vadd.f32 %v7378_v1, %v1146_v34  ;;  %v9733_v34 = vld [vmem:[#allocation36_spill] sm:$0xff] }
 0x25d   : > { %v987_v0 = vadd.f32 1e-06, %v955_v23  ;;  %v922_v18 = vpop.xlane.xlu0 %921  ;;  %v1149_v45 = vmul.f32 %v7355_v4, %v1073_v8  ;;  %v1148_v46 = vmul.f32 %v7358_v55, %v1072_v36  ;;  %v9732_v23 = vld [vmem:[#allocation24_spill] sm:$0xff] }
 0x25e   : > { %v956_v16 = vmul.f32 0.00390625, %v922_v18  ;;  %v6226_v6 = vpop.eup %6225 }
 0x25f   : > { %6231 = vrsqrt.f32 %v987_v0  ;;  %v1225_v7 = vadd.f32 %v7368_v14, %v1149_v45  ;;  %v1224_v32 = vadd.f32 %v7378_v1, %v1148_v46  ;;  %v1075_v19 = vmul.f32 %v6226_v6, %v9730_v13 }
 0x260   : > { %v988_v5 = vadd.f32 1e-06, %v956_v16  ;;  %v1074_v61 = vmul.f32 %v6226_v6, %v9731_v39 }
 0x261   : > { %v925_v26 = vpop.xlane.xlu1 %924  ;;  %v7710_v48 = vpack.c.bf16 %v1225_v7, %v1223_v57  ;;  %v7712_v12 = vpack.c.bf16 %v1224_v32, %v1222_v59  ;;  %v1151_v9 = vmul.f32 %v7355_v4, %v1075_v19 }
 0x262   : > { %6233 = vrsqrt.f32 %v988_v5  ;;  %v957_v27 = vmul.f32 0.00390625, %v925_v26  ;;  %v6228_v35 = vpop.eup %6227  ;;  %v1150_v38 = vmul.f32 %v7358_v55, %v1074_v61 }
 0x263   : > { %2276 = vmatprep.mubr.bf16.mxu0 %v7710_v48  ;;  %2469 = vmatprep.mubr.bf16.mxu1 %v7710_v48  ;;  %v1077_v33 = vmul.f32 %v6228_v35, %v7439_v63  ;;  %v1076_v51 = vmul.f32 %v6228_v35, %v7436_v10  ;;  %v1227_v24 = vadd.f32 %v7368_v14, %v1151_v9 }
 0x264   : > { %v989_v49 = vadd.f32 1e-06, %v957_v27  ;;  %2277 = vmatmul.mubr.bf16.gmra.mxu0 %v7712_v12  ;;  %2470 = vmatmul.mubr.bf16.gmra.mxu1 %v7712_v12  ;;  %v1226_v63 = vadd.f32 %v7378_v1, %v1150_v38 }
 0x265   : > { %v1153_v28 = vmul.f32 %v7355_v4, %v1077_v33  ;;  %v1152_v50 = vmul.f32 %v7358_v55, %v1076_v51 }
 0x266   : > { %6235 = vrsqrt.f32 %v989_v49  ;;  %v6230_v53 = vpop.eup %6229 }
 0x267   : > { %v1229_v47 = vadd.f32 %v7368_v14, %v1153_v28  ;;  %v1228_v10 = vadd.f32 %v7378_v1, %v1152_v50  ;;  %v1079_v43 = vmul.f32 %v6230_v53, %v9732_v23  ;;  %v1078_v8 = vmul.f32 %v6230_v53, %v9733_v34  ;;  %v9739_v50 = vld [vmem:[#allocation41_spill] sm:$0xff] }
 0x269   : > { %v7730_v36 = vpack.c.bf16 %v1229_v47, %v1227_v24  ;;  %v7732_v0 = vpack.c.bf16 %v1228_v10, %v1226_v63  ;;  %v1155_v16 = vmul.f32 %v7355_v4, %v1079_v43  ;;  %v1154_v6 = vmul.f32 %v7358_v55, %v1078_v8  ;;  %v9741_v24 = vld [vmem:[#allocation44_spill] sm:$0xff] }
 0x26b   : > { %9734 = vst [vmem:[#allocation28_spill] sm:$0xff] %v7732_v0  ;;  %2286 = vmatprep.mubr.bf16.mxu0 %v7730_v36  ;;  %2479 = vmatprep.mubr.bf16.mxu1 %v7730_v36  ;;  %v1231_v13 = vadd.f32 %v7368_v14, %v1155_v16  ;;  %v1230_v26 = vadd.f32 %v7378_v1, %v1154_v6 }
 0x26c   : > { %v6232_v18 = vpop.eup %6231  ;;  %2287 = vmatmul.mubr.bf16.gmra.mxu0 %v7732_v0  ;;  %2480 = vmatmul.mubr.bf16.gmra.mxu1 %v7732_v0 }
 0x26d   : > { %v1081_v45 = vmul.f32 %v6232_v18, %v7478_v20  ;;  %v1080_v46 = vmul.f32 %v6232_v18, %v7475_v30 }
 0x26f   : > { %v6234_v57 = vpop.eup %6233  ;;  %v1157_v59 = vmul.f32 %v7355_v4, %v1081_v45  ;;  %v1156_v5 = vmul.f32 %v7358_v55, %v1080_v46  ;;  %v6077_v46 = vld [vmem:[#allocation13 + $0x70] ss:$8 sps:$4 sm:$0xff]  }
 0x270   : > { %v1083_v7 = vmul.f32 %v6234_v57, %v7496_v56  ;;  %v1082_v32 = vmul.f32 %v6234_v57, %v7493_v15 }
 0x271   : > { %v1233_v19 = vadd.f32 %v7368_v14, %v1157_v59  ;;  %v1232_v20 = vadd.f32 %v7378_v1, %v1156_v5  ;;  %v6080_v59 = vld [vmem:[#allocation13 + $0x170] ss:$8 sps:$4 sm:$0xff]   ;;  %v6085_v5 = vld [vmem:[#allocation13 + $0x64] ss:$8 sps:$4 sm:$0xff]  }
 0x272   : > { %v1159_v35 = vmul.f32 %v7355_v4, %v1083_v7  ;;  %v1158_v15 = vmul.f32 %v7358_v55, %v1082_v32 }
 0x273   : > { %v6236_v30 = vpop.eup %6235  ;;  %v7750_v39 = vpack.c.bf16 %v1233_v19, %v1231_v13  ;;  %v7752_v61 = vpack.c.bf16 %v1232_v20, %v1230_v26  ;;  %v9744_v13 = vld [vmem:[#allocation48_spill] sm:$0xff]  ;;  %v6088_v19 = vld [vmem:[#allocation13 + $0x164] ss:$8 sps:$4 sm:$0xff]  }
 0x274   : > { %v1085_v27 = vmul.f32 %v6236_v30, %v7516_v37  ;;  %v1084_v56 = vmul.f32 %v6236_v30, %v7513_v54  ;;  %v1235_v37 = vadd.f32 %v7368_v14, %v1159_v35  ;;  %v1234_v54 = vadd.f32 %v7378_v1, %v1158_v15  ;;  %v9745_v26 = vld [vmem:[#allocation22_spill] sm:$0xff] }
 0x275   : > { %9735 = vst [vmem:[#allocation30_spill] sm:$0xff] %v7750_v39  ;;  %9736 = vst [vmem:[#allocation27_spill] sm:$0xff] %v7752_v61  ;;  %2296 = vmatprep.mubr.bf16.mxu0 %v7750_v39  ;;  %2489 = vmatprep.mubr.bf16.mxu1 %v7750_v39  ;;  %v6086_v15 = vld [vmem:[#allocation13 + $0x160] ss:$8 sps:$4 sm:$0xff]  }
 0x276   : > { %2297 = vmatmul.mubr.bf16.gmra.mxu0 %v7752_v61  ;;  %2490 = vmatmul.mubr.bf16.gmra.mxu1 %v7752_v61  ;;  %v1161_v9 = vmul.f32 %v7355_v4, %v1085_v27  ;;  %v1160_v49 = vmul.f32 %v7358_v55, %v1084_v56  ;;  %v9593_v4 = vsub.s32 2, %v9739_v50  ;;  %v7778_v55 = vld [vmem:[%s9534_s4] sm:$0xf]  ;;  %v6083_v27 = vld [vmem:[#allocation13 + $0x60] ss:$8 sps:$4 sm:$0xff]  }
 0x277   : > { %v7786_v47 = vrot.slane %v7778_v55, %v9741_v24 }
 0x278   : > { %v1237_v33 = vadd.f32 %v7368_v14, %v1161_v9  ;;  %v1236_v51 = vadd.f32 %v7378_v1, %v1160_v49  ;;  %v9740_v14 = vld [vmem:[#allocation47_spill] sm:$0xff]  ;;  %v7791_v63 = vrot.slane %v7778_v55, %v9593_v4  ;;  %v6091_v9 = vld [vmem:[#allocation13 + $0x54] ss:$8 sps:$4 sm:$0xff]  }
 0x279   : > { %9742 = vst [vmem:[#allocation34_spill] sm:$0xff] %v7786_v47  ;;  %v6094_v49 = vld [vmem:[#allocation13 + $0x154] ss:$8 sps:$4 sm:$0xff]  }
 0x27a   : > { %v7768_v38 = vpack.c.bf16 %v1237_v33, %v1235_v37  ;;  %v7770_v28 = vpack.c.bf16 %v1236_v51, %v1234_v54  ;;  %9743 = vst [vmem:[#allocation31_spill] sm:$0xff] %v7791_v63  ;;  %v6089_v51 = vld [vmem:[#allocation13 + $0x50] ss:$8 sps:$4 sm:$0xff]  }
 0x27c   : > { %9737 = vst [vmem:[#allocation29_spill] sm:$0xff] %v7768_v38  ;;  %9738 = vst [vmem:[#allocation32_spill] sm:$0xff] %v7770_v28  ;;  %2306 = vmatprep.mubr.bf16.mxu0 %v7768_v38  ;;  %2499 = vmatprep.mubr.bf16.mxu1 %v7768_v38 }
 0x27d   : > { %v2158_v1 = vpop.f32.mrf.mxu0 }
 0x27e   : > { %2307 = vmatmul.mubr.bf16.gmra.mxu0 %v7770_v28  ;;  %2500 = vmatmul.mubr.bf16.gmra.mxu1 %v7770_v28  ;;  %v2351_v53 = vpop.f32.mrf.mxu1  ;;  %v2159_v8 = vadd.f32 %v2158_v1, %v7786_v47 }
 0x27f   : > { %2948 = vmatprep.mubr.bf16.mxu0 %v9740_v14  ;;  %3141 = vmatprep.mubr.bf16.mxu1 %v9740_v14  ;;  %v7793_v10 = vpop.f32.mrf.mxu0  ;;  %v2352_v18 = vadd.f32 %v2351_v53, %v7791_v63 }
 0x280   : > { %v7795_v23 = vpop.f32.mrf.mxu1 }
 0x281   : > { %v2162_v43 = vpop.f32.mrf.mxu0 }
 0x282   : > { %v2355_v34 = vpop.f32.mrf.mxu1  ;;  %v2163_v16 = vadd.f32 %v2162_v43, %v7786_v47 }
 0x283   : > { %v2356_v45 = vadd.f32 %v2355_v34, %v7791_v63  ;;  %v7801_v6 = vpop.f32.mrf.mxu0 }
 0x284   : > { %v7803_v57 = vpop.f32.mrf.mxu1  ;;  %v7805_v7 = vpack.c.bf16 %v2163_v16, %v2159_v8  ;;  %v6092_v8 = vld [vmem:[#allocation13 + $0x150] ss:$8 sps:$4 sm:$0xff]   ;;  %v9746_v16 = vld [vmem:[#allocation35_spill] sm:$0xff] }
 0x285   : > { %v7807_v32 = vpack.c.bf16 %v2356_v45, %v2352_v18  ;;  %v6097_v18 = vld [vmem:[#allocation13 + $0x44] ss:$8 sps:$4 sm:$0xff]  }
 0x286   : > { %2949 = vmatmul.mubr.bf16.vlgmr.msra.gmra.mxu0 %v9744_v13  ;;  %3142 = vmatmul.mubr.bf16.vlgmr.msra.gmra.mxu1 %v9744_v13  ;;  %v2168_v20 = vpop.f32.mrf.mxu0  ;;  %v2361_v30 = vpop.f32.mrf.mxu1  ;;  %v6100_v45 = vld [vmem:[#allocation13 + $0x144] ss:$8 sps:$4 sm:$0xff]  }
 0x287   : > { %2958 = vmatprep.mubr.bf16.mxu0 %v9745_v26  ;;  %3151 = vmatprep.mubr.bf16.mxu1 %v9745_v26  ;;  %v2169_v54 = vadd.f32 %v2168_v20, %v7786_v47  ;;  %v2362_v14 = vadd.f32 %v2361_v30, %v7791_v63  ;;  %v6095_v26 = vld [vmem:[#allocation13 + $0x40] ss:$8 sps:$4 sm:$0xff]  }
 0x288   : > { %4519 = vmatpush1.bf16.msra.mxu0 %v6077_v46  ;;  %v7813_v35 = vpop.f32.mrf.mxu0  ;;  %v7815_v56 = vpop.f32.mrf.mxu1  ;;  %4712 = vmatpush1.bf16.msra.mxu1 %v6080_v59  ;;  %v6098_v20 = vld [vmem:[#allocation13 + $0x140] ss:$8 sps:$4 sm:$0xff]  }
 0x289   : > { %4520 = vmatprep.subr.bf16.mxu0 %v6085_v5  ;;  %4713 = vmatprep.subr.bf16.mxu1 %v6088_v19  ;;  %v9747_v5 = vld [vmem:[#allocation26_spill] sm:$0xff] }
 0x28a   : > { %v2172_v37 = vpop.f32.mrf.mxu0  ;;  %v2365_v33 = vpop.f32.mrf.mxu1 }
 0x28b   : > { %v2173_v1 = vadd.f32 %v2172_v37, %v7786_v47  ;;  %v2366_v53 = vadd.f32 %v2365_v33, %v7791_v63 }
 0x28c   : > { %4521 = vmatpush1.bf16.msra.mxu0 %v6083_v27  ;;  %v7821_v43 = vpop.f32.mrf.mxu0  ;;  %v7823_v34 = vpop.f32.mrf.mxu1  ;;  %4714 = vmatpush1.bf16.msra.mxu1 %v6086_v15  ;;  %v6103_v15 = vld [vmem:[#allocation13 + $0x34] ss:$8 sps:$4 sm:$0xff]  }
 0x28d   : > { %4522 = vmatprep.subr.bf16.mxu0 %v6091_v9  ;;  %4715 = vmatprep.subr.bf16.mxu1 %v6094_v49  ;;  %v7826_v46 = vpack.c.bf16 %v2173_v1, %v2169_v54  ;;  %v7828_v59 = vpack.c.bf16 %v2366_v53, %v2362_v14  ;;  %v6101_v14 = vld [vmem:[#allocation13 + $0x30] ss:$8 sps:$4 sm:$0xff]   ;;  %v6106_v1 = vld [vmem:[#allocation13 + $0x134] ss:$8 sps:$4 sm:$0xff]  }
 0x28e   : > { %2959 = vmatmul.mubr.bf16.gmra.mxu0 %v9746_v16  ;;  %3152 = vmatmul.mubr.bf16.gmra.mxu1 %v9746_v16  ;;  %v6104_v16 = vld [vmem:[#allocation13 + $0x130] ss:$8 sps:$4 sm:$0xff]  }
 0x28f   : > { %2968 = vmatprep.mubr.bf16.mxu0 %v9747_v5  ;;  %3161 = vmatprep.mubr.bf16.mxu1 %v9747_v5 }
 0x290   : > { %v2178_v13 = vpop.f32.mrf.mxu0  ;;  %v2371_v19 = vpop.f32.mrf.mxu1  ;;  %4523 = vmatpush1.bf16.msra.mxu0 %v6089_v51  ;;  %4716 = vmatpush1.bf16.msra.mxu1 %v6092_v8 }
 0x291   : > { %4524 = vmatprep.subr.bf16.mxu0 %v6097_v18  ;;  %4717 = vmatprep.subr.bf16.mxu1 %v6100_v45  ;;  %v2179_v37 = vadd.f32 %v2178_v13, %v7786_v47  ;;  %v2372_v33 = vadd.f32 %v2371_v19, %v7791_v63  ;;  %v9748_v18 = vld [vmem:[#allocation23_spill] sm:$0xff] }
 0x292   : > { %v7833_v30 = vpop.f32.mrf.mxu0  ;;  %v7835_v27 = vpop.f32.mrf.mxu1  ;;  %v6109_v45 = vld [vmem:[#allocation13 + $0x24] ss:$8 sps:$4 sm:$0xff]  }
 0x293   : > { %v6112_v19 = vld [vmem:[#allocation13 + $0x124] ss:$8 sps:$4 sm:$0xff]  }
 0x294   : > { %v2182_v9 = vpop.f32.mrf.mxu0  ;;  %v2375_v49 = vpop.f32.mrf.mxu1  ;;  %4525 = vmatpush1.bf16.msra.mxu0 %v6095_v26  ;;  %4718 = vmatpush1.bf16.msra.mxu1 %v6098_v20  ;;  %v9749_v26 = vld [vmem:[#allocation25_spill] sm:$0xff] }
 0x295   : > { %v2183_v54 = vadd.f32 %v2182_v9, %v7786_v47  ;;  %v2376_v51 = vadd.f32 %v2375_v49, %v7791_v63  ;;  %4526 = vmatprep.subr.bf16.mxu0 %v6103_v15  ;;  %4719 = vmatprep.subr.bf16.mxu1 %v6106_v1  ;;  %v6107_v49 = vld [vmem:[#allocation13 + $0x20] ss:$8 sps:$4 sm:$0xff]  }
 0x296   : > { %v7841_v53 = vpop.f32.mrf.mxu0  ;;  %v7843_v8 = vpop.f32.mrf.mxu1  ;;  %2969 = vmatmul.mubr.bf16.gmra.mxu0 %v9748_v18  ;;  %3162 = vmatmul.mubr.bf16.gmra.mxu1 %v9748_v18  ;;  %v6110_v15 = vld [vmem:[#allocation13 + $0x120] ss:$8 sps:$4 sm:$0xff]   ;;  %v6115_v18 = vld [vmem:[#allocation13 + $0x14] ss:$8 sps:$4 sm:$0xff]  }
 0x297   : > { %v7846_v5 = vpack.c.bf16 %v2183_v54, %v2179_v37  ;;  %v7848_v13 = vpack.c.bf16 %v2376_v51, %v2372_v33  ;;  %2978 = vmatprep.mubr.bf16.mxu0 %v9749_v26  ;;  %3171 = vmatprep.mubr.bf16.mxu1 %v9749_v26  ;;  %v6118_v26 = vld [vmem:[#allocation13 + $0x114] ss:$8 sps:$4 sm:$0xff]  }
 0x298   : > { %4527 = vmatpush1.bf16.msra.mxu0 %v6101_v14  ;;  %4720 = vmatpush1.bf16.msra.mxu1 %v6104_v16  ;;  %v6113_v16 = vld [vmem:[#allocation13 + $0x10] ss:$8 sps:$4 sm:$0xff]  }
 0x299   : > { %v2188_v20 = vpop.f32.mrf.mxu0  ;;  %v2381_v9 = vpop.f32.mrf.mxu1  ;;  %4528 = vmatprep.subr.bf16.mxu0 %v6109_v45  ;;  %4721 = vmatprep.subr.bf16.mxu1 %v6112_v19  ;;  %v6116_v45 = vld [vmem:[#allocation13 + $0x110] ss:$8 sps:$4 sm:$0xff]  }
 0x29a   : > { %v2189_v33 = vadd.f32 %v2188_v20, %v7786_v47  ;;  %v2382_v24 = vadd.f32 %v2381_v9, %v7791_v63  ;;  %v6121_v20 = vld [vmem:[#allocation13 + $0x4] ss:$8 sps:$4 sm:$0xff]  }
 0x29b   : > { %v7853_v4 = vpop.f32.mrf.mxu0  ;;  %v7855_v37 = vpop.f32.mrf.mxu1 }
 0x29c   : > { %4529 = vmatpush1.bf16.msra.mxu0 %v6107_v49  ;;  %4722 = vmatpush1.bf16.msra.mxu1 %v6110_v15  ;;  %v6124_v49 = vld [vmem:[#allocation13 + $0x104] ss:$8 sps:$4 sm:$0xff]  }
 0x29d   : > { %v2192_v54 = vpop.f32.mrf.mxu0  ;;  %v2385_v51 = vpop.f32.mrf.mxu1  ;;  %4530 = vmatprep.subr.bf16.mxu0 %v6115_v18  ;;  %4723 = vmatprep.subr.bf16.mxu1 %v6118_v26 }
 0x29e   : > { %v2193_v14 = vadd.f32 %v2192_v54, %v7786_v47  ;;  %v2386_v1 = vadd.f32 %v2385_v51, %v7791_v63  ;;  %2979 = vmatmul.mubr.bf16.gmra.mxu0 %v7536_v42  ;;  %3172 = vmatmul.mubr.bf16.gmra.mxu1 %v7536_v42  ;;  %v6119_v42 = vld [vmem:[#allocation13] ss:$8 sps:$4 sm:$0xff]  }
 0x29f   : > { %v7862_v28 = vpop.f32.mrf.mxu0  ;;  %v7864_v19 = vpop.f32.mrf.mxu1  ;;  %2988 = vmatprep.mubr.bf16.mxu0 %v7549_v11  ;;  %3181 = vmatprep.mubr.bf16.mxu1 %v7549_v11  ;;  %v6130_v11 = vld [vmem:[#allocation13 + $0x1f4] ss:$8 sps:$4 sm:$0xff]  }
 0x2a0   : > { %v7868_v9 = vpack.c.bf16 %v2193_v14, %v2189_v33  ;;  %v7870_v54 = vpack.c.bf16 %v2386_v1, %v2382_v24  ;;  %4531 = vmatpush1.bf16.msra.mxu0 %v6113_v16  ;;  %4724 = vmatpush1.bf16.msra.mxu1 %v6116_v45  ;;  %v6122_v14 = vld [vmem:[#allocation13 + $0x100] ss:$8 sps:$4 sm:$0xff]   ;;  %v6127_v24 = vld [vmem:[#allocation13 + $0xf4] ss:$8 sps:$4 sm:$0xff]  }
 0x2a1   : > { %v2198_v51 = vpop.f32.mrf.mxu0  ;;  %v2391_v15 = vpop.f32.mrf.mxu1  ;;  %4532 = vmatprep.subr.bf16.mxu0 %v6121_v20  ;;  %4725 = vmatprep.subr.bf16.mxu1 %v6124_v49  ;;  %v6125_v49 = vld [vmem:[#allocation13 + $0xf0] ss:$8 sps:$4 sm:$0xff]  }
 0x2a2   : > { %9750 = vst [vmem:[#allocation33_spill] sm:$0xff] %v7868_v9  ;;  %v2199_v1 = vadd.f32 %v2198_v51, %v7786_v47  ;;  %v2392_v18 = vadd.f32 %v2391_v15, %v7791_v63 }
 0x2a3   : > { %v7873_v38 = vpop.f32.mrf.mxu0  ;;  %v7875_v61 = vpop.f32.mrf.mxu1 }
 0x2a4   : > { %9751 = vst [vmem:[#allocation38_spill] sm:$0xff] %v7873_v38  ;;  %9752 = vst [vmem:[#allocation37_spill] sm:$0xff] %v7875_v61  ;;  %4533 = vmatpush1.bf16.msra.mxu0 %v6119_v42  ;;  %4726 = vmatpush1.bf16.msra.mxu1 %v6122_v14  ;;  %v6133_v61 = vld [vmem:[#allocation13 + $0xe4] ss:$8 sps:$4 sm:$0xff]   ;;  %v6131_v42 = vld [vmem:[#allocation13 + $0xe0] ss:$8 sps:$4 sm:$0xff]  }
 0x2a5   : > { %v2202_v39 = vpop.f32.mrf.mxu0  ;;  %v2395_v33 = vpop.f32.mrf.mxu1  ;;  %4534 = vmatprep.subr.bf16.mxu0 %v6127_v24  ;;  %4727 = vmatprep.subr.bf16.mxu1 %v6130_v11  ;;  %v6134_v11 = vld [vmem:[#allocation13 + $0x1e0] ss:$8 sps:$4 sm:$0xff]  }
 0x2a6   : > { %2989 = vmatmul.mubr.bf16.gmra.mxu0 %v7557_v41  ;;  %v2203_v26 = vadd.f32 %v2202_v39, %v7786_v47  ;;  %v2396_v16 = vadd.f32 %v2395_v33, %v7791_v63  ;;  %3182 = vmatmul.mubr.bf16.gmra.mxu1 %v7557_v41  ;;  %v6128_v33 = vld [vmem:[#allocation13 + $0x1f0] ss:$8 sps:$4 sm:$0xff]  }
 0x2a7   : > { %v7882_v45 = vpop.f32.mrf.mxu0  ;;  %v7884_v20 = vpop.f32.mrf.mxu1  ;;  %2998 = vmatprep.mubr.bf16.mxu0 %v7568_v22  ;;  %3191 = vmatprep.mubr.bf16.mxu1 %v7568_v22 }
 0x2a8   : > { %9753 = vst [vmem:[#allocation40_spill] sm:$0xff] %v7884_v20  ;;  %v7889_v51 = vpack.c.bf16 %v2203_v26, %v2199_v1  ;;  %v7891_v0 = vpack.c.bf16 %v2396_v16, %v2392_v18  ;;  %4535 = vmatpush2.bf16.msra.mxu0 %v6125_v49  ;;  %4728 = vmatpush2.bf16.msra.mxu1 %v6128_v33  ;;  %v6136_v1 = vld [vmem:[#allocation13 + $0x1e4] ss:$8 sps:$4 sm:$0xff]   ;;  %v6139_v16 = vld [vmem:[#allocation13 + $0xd4] ss:$8 sps:$4 sm:$0xff]  }
 0x2a9   : > { %v2208_v15 = vpop.f32.mrf.mxu0  ;;  %v2401_v39 = vpop.f32.mrf.mxu1  ;;  %4536 = vmatprep.subr.bf16.mxu0 %v6133_v61  ;;  %v6142_v61 = vld [vmem:[#allocation13 + $0x1d4] ss:$8 sps:$4 sm:$0xff]   ;;  %4729 = vmatprep.subr.bf16.mxu1 %v6136_v1  ;;  %v6143_v1 = vld [vmem:[#allocation13 + $0xc0] ss:$8 sps:$4 sm:$0xff]  }
 0x2aa   : > { %9754 = vst [vmem:[#allocation39_spill] sm:$0xff] %v7889_v51  ;;  %9755 = vst [vmem:[#allocation42_spill] sm:$0xff] %v7891_v0  ;;  %v2209_v18 = vadd.f32 %v2208_v15, %v7786_v47  ;;  %v2402_v26 = vadd.f32 %v2401_v39, %v7791_v63 }
 0x2ab   : > { %v7893_v38 = vpop.f32.mrf.mxu0  ;;  %v7895_v41 = vpop.f32.mrf.mxu1 }
 0x2ac   : > { %9756 = vst [vmem:[#allocation46_spill] sm:$0xff] %v7893_v38  ;;  %9757 = vst [vmem:[#allocation45_spill] sm:$0xff] %v7895_v41  ;;  %4537 = vmatpush2.bf16.msra.mxu0 %v6131_v42  ;;  %4730 = vmatpush2.bf16.msra.mxu1 %v6134_v11 }
 0x2ad   : > { %v2212_v20 = vpop.f32.mrf.mxu0  ;;  %v2405_v22 = vpop.f32.mrf.mxu1  ;;  %4538 = vmatprep.subr.bf16.mxu0 %v6139_v16  ;;  %4731 = vmatprep.subr.bf16.mxu1 %v6142_v61 }
 0x2ae   : > { %v2213_v14 = vadd.f32 %v2212_v20, %v7786_v47  ;;  %v2406_v24 = vadd.f32 %v2405_v22, %v7791_v63  ;;  %2999 = vmatmul.mubr.bf16.gmra.mxu0 %v7575_v21  ;;  %3192 = vmatmul.mubr.bf16.gmra.mxu1 %v7575_v21  ;;  %v6137_v22 = vld [vmem:[#allocation13 + $0xd0] ss:$8 sps:$4 sm:$0xff]  }
 0x2af   : > { %v7902_v41 = vpop.f32.mrf.mxu0  ;;  %v7904_v49 = vpop.f32.mrf.mxu1  ;;  %3008 = vmatprep.mubr.bf16.mxu0 %v7590_v44  ;;  %3201 = vmatprep.mubr.bf16.mxu1 %v7590_v44  ;;  %v6140_v21 = vld [vmem:[#allocation13 + $0x1d0] ss:$8 sps:$4 sm:$0xff]  }
 0x2b0   : > { %9758 = vst [vmem:[#allocation50_spill] sm:$0xff] %v7902_v41  ;;  %9759 = vst [vmem:[#allocation49_spill] sm:$0xff] %v7904_v49  ;;  %v7908_v15 = vpack.c.bf16 %v2213_v14, %v2209_v18  ;;  %v7910_v39 = vpack.c.bf16 %v2406_v24, %v2402_v26  ;;  %4539 = vmatpush2.bf16.msra.mxu0 %v6137_v22  ;;  %v6145_v26 = vld [vmem:[#allocation13 + $0xc4] ss:$8 sps:$4 sm:$0xff]   ;;  %4732 = vmatpush2.bf16.msra.mxu1 %v6140_v21 }
 0x2b1   : > { %v2218_v20 = vpop.f32.mrf.mxu0  ;;  %v2411_v33 = vpop.f32.mrf.mxu1  ;;  %v6148_v14 = vld [vmem:[#allocation13 + $0x1c4] ss:$8 sps:$4 sm:$0xff]   ;;  %4540 = vmatprep.subr.bf16.mxu0 %v6145_v26  ;;  %v6149_v26 = vld [vmem:[#allocation13 + $0xb0] ss:$8 sps:$4 sm:$0xff]  }
 0x2b2   : > { %v2219_v44 = vadd.f32 %v2218_v20, %v7786_v47  ;;  %v2412_v42 = vadd.f32 %v2411_v33, %v7791_v63  ;;  %v6146_v20 = vld [vmem:[#allocation13 + $0x1c0] ss:$8 sps:$4 sm:$0xff]   ;;  %4733 = vmatprep.subr.bf16.mxu1 %v6148_v14  ;;  %v6152_v14 = vld [vmem:[#allocation13 + $0x1b0] ss:$8 sps:$4 sm:$0xff]  }
 0x2b3   : > { %v7913_v38 = vpop.f32.mrf.mxu0  ;;  %v7915_v49 = vpop.f32.mrf.mxu1 }
 0x2b4   : > { %9760 = vst [vmem:[#allocation24_spill] sm:$0xff] %v7913_v38  ;;  %9761 = vst [vmem:[#allocation36_spill] sm:$0xff] %v7915_v49  ;;  %4541 = vmatpush2.bf16.msra.mxu0 %v6143_v1  ;;  %4734 = vmatpush2.bf16.msra.mxu1 %v6146_v20 }
 0x2b5   : > { %v2222_v41 = vpop.f32.mrf.mxu0  ;;  %v2415_v18 = vpop.f32.mrf.mxu1 }
 0x2b6   : > { %3009 = vmatmul.mubr.bf16.gmra.mxu0 %v7599_v58  ;;  %v2223_v24 = vadd.f32 %v2222_v41, %v7786_v47  ;;  %v2416_v11 = vadd.f32 %v2415_v18, %v7791_v63  ;;  %3202 = vmatmul.mubr.bf16.gmra.mxu1 %v7599_v58 }
 0x2b7   : > { %v7922_v16 = vpop.f32.mrf.mxu0  ;;  %v7924_v61 = vpop.f32.mrf.mxu1  ;;  %3018 = vmatprep.mubr.bf16.mxu0 %v7604_v60  ;;  %3211 = vmatprep.mubr.bf16.mxu1 %v7604_v60  ;;  %v6154_v60 = vld [vmem:[#allocation13 + $0x1b4] ss:$8 sps:$4 sm:$0xff]  }
 0x2b8   : > { %9762 = vst [vmem:[#allocation47_spill] sm:$0xff] %v7922_v16  ;;  %9763 = vst [vmem:[#allocation48_spill] sm:$0xff] %v7924_v61  ;;  %v7929_v22 = vpack.c.bf16 %v2223_v24, %v2219_v44  ;;  %v7931_v49 = vpack.c.bf16 %v2416_v11, %v2412_v42  ;;  %v6151_v16 = vld [vmem:[#allocation13 + $0xb4] ss:$8 sps:$4 sm:$0xff]   ;;  %4735 = vmatprep.subr.bf16.mxu1 %v6154_v60 }
 0x2b9   : > { %v2228_v33 = vpop.f32.mrf.mxu0  ;;  %v2421_v41 = vpop.f32.mrf.mxu1  ;;  %4542 = vmatprep.subr.bf16.mxu0 %v6151_v16  ;;  %4736 = vmatpush2.bf16.msra.mxu1 %v6152_v14 }
 0x2ba   : > { %9764 = vst [vmem:[#allocation22_spill] sm:$0xff] %v7931_v49  ;;  %v2229_v21 = vadd.f32 %v2228_v33, %v7786_v47  ;;  %v2422_v44 = vadd.f32 %v2421_v41, %v7791_v63  ;;  %4543 = vmatpush2.bf16.msra.mxu0 %v6149_v26 }
 0x2bb   : > { %v7933_v18 = vpop.f32.mrf.mxu0  ;;  %v7935_v38 = vpop.f32.mrf.mxu1 }
 0x2bc   : > { %9765 = vst [vmem:[#allocation35_spill] sm:$0xff] %v7933_v18  ;;  %9766 = vst [vmem:[#allocation26_spill] sm:$0xff] %v7935_v38 }
 0x2bd   : > { %v2232_v58 = vpop.f32.mrf.mxu0  ;;  %v2425_v61 = vpop.f32.mrf.mxu1 }
 0x2be   : > { %v2233_v42 = vadd.f32 %v2232_v58, %v7786_v47  ;;  %v2426_v24 = vadd.f32 %v2425_v61, %v7791_v63  ;;  %3019 = vmatmul.mubr.bf16.gmra.mxu0 %v7622_v62  ;;  %3212 = vmatmul.mubr.bf16.gmra.mxu1 %v7622_v62  ;;  %v9606_v58 = vsub.s32 3, %v9739_v50  ;;  %v6157_v62 = vld [vmem:[#allocation13 + $0xa4] ss:$8 sps:$4 sm:$0xff]   ;;  %v6166_v50 = vld [vmem:[#allocation13 + $0x194] ss:$8 sps:$4 sm:$0xff]  }
 0x2bf   : > { %v7942_v1 = vpop.f32.mrf.mxu0  ;;  %v7944_v11 = vpop.f32.mrf.mxu1  ;;  %3028 = vmatprep.mubr.bf16.mxu0 %v7625_v25  ;;  %3221 = vmatprep.mubr.bf16.mxu1 %v7625_v25  ;;  %v6158_v25 = vld [vmem:[#allocation13 + $0x1a0] ss:$8 sps:$4 sm:$0xff]  }
 0x2c0   : > { %9767 = vst [vmem:[#allocation23_spill] sm:$0xff] %v7944_v11  ;;  %v7948_v20 = vpack.c.bf16 %v2233_v42, %v2229_v21  ;;  %v7950_v33 = vpack.c.bf16 %v2426_v24, %v2422_v44  ;;  %v6160_v11 = vld [vmem:[#allocation13 + $0x1a4] ss:$8 sps:$4 sm:$0xff]   ;;  %v3430_v21 = vmul.bf16 1027030327, %v7805_v7  ;;  %4544 = vmatprep.subr.bf16.mxu0 %v6157_v62  ;;  %v7966_v60 = vrot.slane %v7778_v55, %v9606_v58 }
 0x2c1   : > { %v2238_v41 = vpop.f32.mrf.mxu0  ;;  %v2431_v61 = vpop.f32.mrf.mxu1  ;;  %v6155_v24 = vld [vmem:[#allocation13 + $0xa0] ss:$8 sps:$4 sm:$0xff]   ;;  %4737 = vmatprep.subr.bf16.mxu1 %v6160_v11 }
 0x2c2   : > { %9768 = vst [vmem:[#allocation25_spill] sm:$0xff] %v7948_v20  ;;  %9769 = vst [vmem:[#allocation51_spill] sm:$0xff] %v7950_v33  ;;  %v9772_v33 = vld [vmem:[#allocation43_spill] sm:$0xff]  ;;  %v2239_v26 = vadd.f32 %v2238_v41, %v7786_v47  ;;  %v2432_v14 = vadd.f32 %v2431_v61, %v7791_v63  ;;  %v2358_v41 = vadd.f32 %v7803_v57, %v7966_v60  ;;  %4545 = vmatpush2.bf16.msra.mxu0 %v6155_v24 }
 0x2c3   : > { %v7954_v38 = vpop.f32.mrf.mxu0  ;;  %v7956_v18 = vpop.f32.mrf.mxu1  ;;  %v7961_v16 = vrot.slane %v7778_v55, %v9772_v33  ;;  %9774 = vst [vmem:[#allocation55_spill] sm:$0xff] %v7966_v60  ;;  %v3494_v61 = vmul.bf16 %v3430_v21, %v7805_v7  ;;  %4738 = vmatpush2.bf16.msra.mxu1 %v6158_v25  ;;  %v2354_v57 = vadd.f32 %v7795_v23, %v7966_v60 }
 0x2c4   : > { %9770 = vst [vmem:[#allocation52_spill] sm:$0xff] %v7954_v38  ;;  %9771 = vst [vmem:[#allocation53_spill] sm:$0xff] %v7956_v18  ;;  %4739 = vmatprep.subr.bf16.mxu1 %v6166_v50 }
 0x2c5   : > { %v2242_v44 = vpop.f32.mrf.mxu0  ;;  %v2435_v42 = vpop.f32.mrf.mxu1  ;;  %9773 = vst [vmem:[#allocation54_spill] sm:$0xff] %v7961_v16  ;;  %v2165_v55 = vadd.f32 %v7801_v6, %v7961_v16  ;;  %v2161_v6 = vadd.f32 %v7793_v10, %v7961_v16  ;;  %v3558_v21 = vmul.bf16 %v3494_v61, %v7805_v7  ;;  %v6161_v61 = vld [vmem:[#allocation13 + $0x90] ss:$8 sps:$4 sm:$0xff]  }
 0x2c6   : > { %3029 = vmatmul.mubr.bf16.gmra.mxu0 %v7640_v3  ;;  %v2243_v18 = vadd.f32 %v2242_v44, %v7786_v47  ;;  %v2436_v62 = vadd.f32 %v2435_v42, %v7791_v63  ;;  %3222 = vmatmul.mubr.bf16.gmra.mxu1 %v7640_v3  ;;  %v3432_v44 = vmul.bf16 1027030327, %v7807_v32 }
 0x2c7   : > { %v7973_v38 = vpop.f32.mrf.mxu0  ;;  %v7975_v20 = vpop.f32.mrf.mxu1  ;;  %3038 = vmatprep.mubr.bf16.mxu0 %v7643_v17  ;;  %3231 = vmatprep.mubr.bf16.mxu1 %v7643_v17 }
 0x2c8   : > { %v7986_v42 = vpack.c.bf16 %v2243_v18, %v2239_v26  ;;  %v7988_v58 = vpack.c.bf16 %v2436_v62, %v2432_v14  ;;  %v3496_v18 = vmul.bf16 %v3432_v44, %v7807_v32  ;;  %v8000_v26 = vpack.c.bf16 %v2165_v55, %v2161_v6  ;;  %v6163_v62 = vld [vmem:[#allocation13 + $0x94] ss:$8 sps:$4 sm:$0xff]   ;;  %v6164_v44 = vld [vmem:[#allocation13 + $0x190] ss:$8 sps:$4 sm:$0xff]  }
 0x2c9   : > { %v2248_v3 = vpop.f32.mrf.mxu0  ;;  %v2441_v33 = vpop.f32.mrf.mxu1  ;;  %v8002_v14 = vpack.c.bf16 %v2358_v41, %v2354_v57  ;;  %v3434_v55 = vmul.bf16 1027030327, %v7826_v46  ;;  %v3436_v41 = vmul.bf16 1027030327, %v7828_v59  ;;  %4546 = vmatprep.subr.bf16.mxu0 %v6163_v62  ;;  %4740 = vmatpush2.bf16.msra.mxu1 %v6164_v44  ;;  %v6170_v62 = vld [vmem:[#allocation13 + $0x180] ss:$8 sps:$4 sm:$0xff]  }
 0x2ca   : > { %9775 = vst [vmem:[#allocation56_spill] sm:$0xff] %v7986_v42  ;;  %9776 = vst [vmem:[#allocation57_spill] sm:$0xff] %v7988_v58  ;;  %v2249_v10 = vadd.f32 %v2248_v3, %v7786_v47  ;;  %v2442_v23 = vadd.f32 %v2441_v33, %v7791_v63  ;;  %v6169_v33 = vld [vmem:[#allocation13 + $0x84] ss:$8 sps:$4 sm:$0xff]   ;;  %v3560_v57 = vmul.bf16 %v3496_v18, %v7807_v32  ;;  %4547 = vmatpush2.bf16.msra.mxu0 %v6161_v61 }
 0x2cb   : > { %v7994_v17 = vpop.f32.mrf.mxu0  ;;  %v7996_v11 = vpop.f32.mrf.mxu1  ;;  %4548 = vmatprep.subr.bf16.mxu0 %v6169_v33 }
 0x2cc   : > { %9777 = vst [vmem:[#allocation58_spill] sm:$0xff] %v7994_v17  ;;  %9778 = vst [vmem:[#allocation59_spill] sm:$0xff] %v7996_v11 }
 0x2cd   : > { %v2252_v24 = vpop.f32.mrf.mxu0  ;;  %v2445_v25 = vpop.f32.mrf.mxu1 }
 0x2ce   : > { %v2253_v17 = vadd.f32 %v2252_v24, %v7786_v47  ;;  %v2446_v11 = vadd.f32 %v2445_v25, %v7791_v63  ;;  %3039 = vmatmul.mubr.bf16.gmra.mxu0 %v7652_v31  ;;  %3232 = vmatmul.mubr.bf16.gmra.mxu1 %v7652_v31  ;;  %v3431_v24 = vmul.bf16 1027030327, %v8000_v26  ;;  %v6172_v25 = vld [vmem:[#allocation13 + $0x184] ss:$8 sps:$4 sm:$0xff]   ;;  %v3433_v31 = vmul.bf16 1027030327, %v8002_v14 }
 0x2cf   : > { %3048 = vmatprep.mubr.bf16.mxu0 %v7670_v40  ;;  %3241 = vmatprep.mubr.bf16.mxu1 %v7670_v40  ;;  %v3622_v63 = vadd.bf16 %v3558_v21, %v7805_v7  ;;  %v3500_v40 = vmul.bf16 %v3436_v41, %v7828_v59  ;;  %v3438_v21 = vmul.bf16 1027030327, %v7846_v5  ;;  %v9806_v47 = vmul.bf16 1056980736, %v8002_v14 }
 0x2d0   : > { %v8013_v6 = vpack.c.bf16 %v2253_v17, %v2249_v10  ;;  %v8015_v3 = vpack.c.bf16 %v2446_v11, %v2442_v23  ;;  %v3498_v17 = vmul.bf16 %v3434_v55, %v7826_v46  ;;  %4741 = vmatprep.subr.bf16.mxu1 %v6172_v25  ;;  %v6167_v11 = vld [vmem:[#allocation13 + $0x80] ss:$8 sps:$4 sm:$0xff]   ;;  %v3495_v18 = vmul.bf16 %v3431_v24, %v8000_v26 }
 0x2d1   : > { %v3624_v10 = vadd.bf16 %v3560_v57, %v7807_v32  ;;  %v3497_v50 = vmul.bf16 %v3433_v31, %v8002_v14  ;;  %v3686_v23 = vmul.bf16 1061961548, %v3622_v63  ;;  %v3564_v44 = vmul.bf16 %v3500_v40, %v7828_v59  ;;  %4549 = vmatpush2.bf16.msra.mxu0 %v6167_v11  ;;  %4742 = vmatpush2.bf16.msra.mxu1 %v6170_v62 }
 0x2d2   : > { %9779 = vst [vmem:[#allocation60_spill] sm:$0xff] %v8013_v6  ;;  %9780 = vst [vmem:[#allocation61_spill] sm:$0xff] %v8015_v3  ;;  %v3562_v61 = vmul.bf16 %v3498_v17, %v7826_v46  ;;  %v3440_v55 = vmul.bf16 1027030327, %v7848_v13  ;;  %v3559_v33 = vmul.bf16 %v3495_v18, %v8000_v26  ;;  %v2175_v63 = vadd.f32 %v7821_v43, %v7961_v16 }
 0x2d3   : > { %v3688_v41 = vmul.bf16 1061961548, %v3624_v10  ;;  %6237 = vtanh.bf16 %v3686_v23  ;;  %v3561_v57 = vmul.bf16 %v3497_v50, %v8002_v14  ;;  %v2171_v25 = vadd.f32 %v7813_v35, %v7961_v16 }
 0x2d4   : > { %v3626_v24 = vadd.bf16 %v3562_v61, %v7826_v46  ;;  %v3628_v31 = vadd.bf16 %v3564_v44, %v7828_v59  ;;  %v3623_v17 = vadd.bf16 %v3559_v33, %v8000_v26  ;;  %v2368_v43 = vadd.f32 %v7823_v34, %v7966_v60 }
 0x2d5   : > { %6239 = vtanh.bf16 %v3688_v41  ;;  %v8046_v40 = vpack.c.bf16 %v2175_v63, %v2171_v25  ;;  %v3625_v11 = vadd.bf16 %v3561_v57, %v8002_v14  ;;  %v2364_v10 = vadd.f32 %v7815_v56, %v7966_v60 }
 0x2d6   : > { %3049 = vmatmul.mubr.bf16.gmra.mxu0 %v7672_v52  ;;  %3242 = vmatmul.mubr.bf16.gmra.mxu1 %v7672_v52  ;;  %v3502_v52 = vmul.bf16 %v3438_v21, %v7846_v5  ;;  %v3690_v35 = vmul.bf16 1061961548, %v3626_v24  ;;  %v3692_v50 = vmul.bf16 1061961548, %v3628_v31  ;;  %v2185_v34 = vadd.f32 %v7841_v53, %v7961_v16 }
 0x2d7   : > { %3058 = vmatprep.mubr.bf16.mxu0 %v7690_v29  ;;  %3251 = vmatprep.mubr.bf16.mxu1 %v7690_v29  ;;  %v3504_v29 = vmul.bf16 %v3440_v55, %v7848_v13  ;;  %v2378_v23 = vadd.f32 %v7843_v8, %v7966_v60  ;;  %v3687_v61 = vmul.bf16 1061961548, %v3623_v17  ;;  %v8064_v21 = vpack.c.bf16 %v2368_v43, %v2364_v10 }
 0x2d8   : > { %v3566_v18 = vmul.bf16 %v3502_v52, %v7846_v5  ;;  %v3689_v44 = vmul.bf16 1061961548, %v3625_v11  ;;  %v2181_v56 = vadd.f32 %v7833_v30, %v7961_v16  ;;  %v2374_v55 = vadd.f32 %v7835_v27, %v7966_v60 }
 0x2d9   : > { %v3568_v62 = vmul.bf16 %v3504_v29, %v7848_v13  ;;  %9781 = vst [vmem:[#allocation62_spill] sm:$0xff] %v8064_v21  ;;  %6241 = vtanh.bf16 %v3690_v35  ;;  %v3366_v53 = vmul.bf16 1056980736, %v7805_v7  ;;  %v2195_v63 = vadd.f32 %v7862_v28, %v7961_v16  ;;  %v9794_v35 = vld [vmem:[#allocation27_spill] sm:$0xff] }
 0x2da   : > { %6243 = vtanh.bf16 %v3692_v50  ;;  %v8073_v41 = vpack.c.bf16 %v2185_v34, %v2181_v56  ;;  %v8075_v33 = vpack.c.bf16 %v2378_v23, %v2374_v55  ;;  %v3437_v30 = vmul.bf16 1027030327, %v8064_v21 }
 0x2db   : > { %v3632_v8 = vadd.bf16 %v3568_v62, %v7848_v13  ;;  %6245 = vtanh.bf16 %v3687_v61  ;;  %v2388_v27 = vadd.f32 %v7864_v19, %v7966_v60  ;;  %v3368_v7 = vmul.bf16 1056980736, %v7807_v32  ;;  %v9783_v61 = vld [vmem:[#allocation40_spill] sm:$0xff] }
 0x2dc   : > { %9782 = vst [vmem:[#allocation63_spill] sm:$0xff] %v8075_v33  ;;  %6247 = vtanh.bf16 %v3689_v44  ;;  %v2191_v52 = vadd.f32 %v7853_v4, %v7961_v16  ;;  %v2384_v19 = vadd.f32 %v7855_v37, %v7966_v60  ;;  %v3442_v29 = vmul.bf16 1027030327, %v7868_v9 }
 0x2dd   : > { %v3696_v31 = vmul.bf16 1061961548, %v3632_v8  ;;  %v3439_v4 = vmul.bf16 1027030327, %v8073_v41  ;;  %v3444_v17 = vmul.bf16 1027030327, %v7870_v54  ;;  %v3501_v11 = vmul.bf16 %v3437_v30, %v8064_v21 }
 0x2de   : > { %3059 = vmatmul.mubr.bf16.gmra.mxu0 %v7692_v2  ;;  %3252 = vmatmul.mubr.bf16.gmra.mxu1 %v7692_v2  ;;  %v3435_v2 = vmul.bf16 1027030327, %v8046_v40  ;;  %v8098_v43 = vpack.c.bf16 %v2195_v63, %v2191_v52  ;;  %v3506_v34 = vmul.bf16 %v3442_v29, %v7868_v9  ;;  %v2205_v23 = vadd.f32 %v7882_v45, %v7961_v16  ;;  %v9784_v63 = vld [vmem:[#allocation38_spill] sm:$0xff]  ;;  %v9785_v30 = vld [vmem:[#allocation37_spill] sm:$0xff] }
 0x2df   : > { %3068 = vmatprep.mubr.bf16.mxu0 %v7710_v48  ;;  %3261 = vmatprep.mubr.bf16.mxu1 %v7710_v48  ;;  %v3630_v48 = vadd.bf16 %v3566_v18, %v7846_v5  ;;  %v8101_v18 = vpack.c.bf16 %v2388_v27, %v2384_v19  ;;  %v8113_v44 = vmul.bf16 %v3439_v4, %v8073_v41  ;;  %v3452_v32 = vmul.bf16 1027030327, %v7910_v39 }
 0x2e0   : > { %v3499_v57 = vmul.bf16 %v3435_v2, %v8046_v40  ;;  %v2398_v2 = vadd.f32 %v9783_v61, %v7966_v60  ;;  %v8119_v55 = vmul.bf16 %v3444_v17, %v7870_v54  ;;  %v2201_v45 = vadd.f32 %v9784_v63, %v7961_v16 }
 0x2e1   : > { %v3694_v24 = vmul.bf16 1061961548, %v3630_v48  ;;  %v6238_v25 = vpop.eup %6237  ;;  %v3443_v48 = vmul.bf16 1027030327, %v8098_v43  ;;  %v3445_v8 = vmul.bf16 1027030327, %v8101_v18  ;;  %v2394_v27 = vadd.f32 %v9785_v30, %v7966_v60 }
 0x2e2   : > { %v3814_v10 = vadd.bf16 1065369472, %v6238_v25  ;;  %v3563_v50 = vmul.bf16 %v3499_v57, %v8046_v40  ;;  %v9786_v57 = vld [vmem:[#allocation28_spill] sm:$0xff]  ;;  %v3570_v4 = vmul.bf16 %v3506_v34, %v7868_v9  ;;  %v3572_v63 = vmul.bf16 %v8119_v55, %v7870_v54 }
 0x2e3   : > { %6249 = vtanh.bf16 %v3694_v24  ;;  %v9787_v24 = vld [vmem:[#allocation30_spill] sm:$0xff]  ;;  %v8137_v17 = vpack.c.bf16 %v2398_v2, %v2394_v27  ;;  %v8145_v30 = vmul.bf16 %v3443_v48, %v8098_v43  ;;  %v3450_v25 = vmul.bf16 1027030327, %v7908_v15 }
 0x2e4   : > { %6251 = vtanh.bf16 %v3696_v31  ;;  %v3627_v29 = vadd.bf16 %v3563_v50, %v8046_v40  ;;  %v3565_v31 = vmul.bf16 %v3501_v11, %v8064_v21  ;;  %v3446_v50 = vmul.bf16 1027030327, %v7889_v51  ;;  %v9789_v2 = vld [vmem:[#allocation50_spill] sm:$0xff] }
 0x2e5   : > { %v3448_v11 = vmul.bf16 1027030327, %v7891_v0  ;;  %v3449_v19 = vmul.bf16 1027030327, %v8137_v17 }
 0x2e6   : > { %3069 = vmatmul.mubr.bf16.gmra.mxu0 %v7712_v12  ;;  %3262 = vmatmul.mubr.bf16.gmra.mxu1 %v7712_v12  ;;  %v3441_v12 = vmul.bf16 1027030327, %v8075_v33  ;;  %v3691_v55 = vmul.bf16 1061961548, %v3627_v29  ;;  %v8158_v48 = vadd.bf16 %v3565_v31, %v8064_v21  ;;  %v8169_v29 = vmul.bf16 %v3446_v50, %v7889_v51  ;;  %v9795_v50 = vld [vmem:[#allocation29_spill] sm:$0xff] }
 0x2e7   : > { %3078 = vmatprep.mubr.bf16.mxu0 %v7730_v36  ;;  %3271 = vmatprep.mubr.bf16.mxu1 %v7730_v36  ;;  %v6240_v36 = vpop.eup %6239  ;;  %v8172_v31 = vmul.bf16 %v3448_v11, %v7891_v0 }
 0x2e8   : > { %v8116_v56 = vmul.bf16 %v3441_v12, %v8075_v33  ;;  %v3816_v52 = vadd.bf16 1065369472, %v6240_v36  ;;  %v8135_v12 = vpack.c.bf16 %v2205_v23, %v2201_v45  ;;  %v8140_v36 = vmul.bf16 %v3814_v10, %v3366_v53  ;;  %v6242_v61 = vpop.eup %6241 }
 0x2e9   : > { %v6244_v34 = vpop.eup %6243  ;;  %v8150_v23 = vmul.bf16 %v3445_v8, %v8101_v18  ;;  %v2215_v45 = vadd.f32 %v9789_v2, %v7961_v16  ;;  %v9791_v2 = vld [vmem:[#allocation46_spill] sm:$0xff]  ;;  %6253 = vtanh.bf16 %v3691_v55  ;;  %v8205_v55 = vmul.bf16 %v3452_v32, %v7910_v39 }
 0x2ea   : > { %9788 = vst [vmem:[#allocation40_spill] sm:$0xff] %v8140_v36  ;;  %v8154_v53 = vmul.bf16 %v3816_v52, %v3368_v7  ;;  %v6246_v27 = vpop.eup %6245  ;;  %v3447_v8 = vmul.bf16 1027030327, %v8135_v12  ;;  %v2211_v7 = vadd.f32 %v9791_v2, %v7961_v16  ;;  %v9792_v52 = vld [vmem:[#allocation49_spill] sm:$0xff]  ;;  %v3818_v2 = vadd.bf16 1065369472, %v6242_v61 }
 0x2eb   : > { %v6248_v62 = vpop.eup %6247  ;;  %v2408_v10 = vadd.f32 %v9792_v52, %v7966_v60  ;;  %v3634_v52 = vadd.bf16 %v3570_v4, %v7868_v9  ;;  %v3820_v11 = vadd.bf16 1065369472, %v6244_v34  ;;  %v3815_v37 = vadd.bf16 1065369472, %v6246_v27  ;;  %v9797_v61 = vld [vmem:[#allocation48_spill] sm:$0xff] }
 0x2ec   : > { %9790 = vst [vmem:[#allocation38_spill] sm:$0xff] %v8154_v53  ;;  %v8178_v28 = vpack.c.bf16 %v2215_v45, %v2211_v7  ;;  %v3817_v53 = vadd.bf16 1065369472, %v6248_v62  ;;  %v9796_v45 = vld [vmem:[#allocation47_spill] sm:$0xff]  ;;  %v2418_v21 = vadd.f32 %v9797_v61, %v7966_v60  ;;  %v8199_v34 = vmul.bf16 %v3449_v19, %v8137_v17 }
 0x2ed   : > { %v2225_v7 = vadd.f32 %v9796_v45, %v7961_v16  ;;  %v9799_v45 = vld [vmem:[#allocation36_spill] sm:$0xff]  ;;  %v9800_v62 = vmul.bf16 1056980736, %v7826_v46  ;;  %v9802_v19 = vmul.bf16 1056980736, %v7828_v59 }
 0x2ee   : > { %3079 = vmatmul.mubr.bf16.gmra.mxu0 %v9786_v57  ;;  %3272 = vmatmul.mubr.bf16.gmra.mxu1 %v9786_v57  ;;  %v9793_v57 = vld [vmem:[#allocation45_spill] sm:$0xff]  ;;  %v2414_v61 = vadd.f32 %v9799_v45, %v7966_v60  ;;  %v9804_v9 = vmul.bf16 1056980736, %v8000_v26  ;;  %v8226_v3 = vmul.bf16 %v3817_v53, %v9806_v47  ;;  %v3456_v59 = vmul.bf16 1027030327, %v7931_v49  ;;  %v9809_v53 = vld [vmem:[#allocation23_spill] sm:$0xff] }
 0x2ef   : > { %3088 = vmatprep.mubr.bf16.mxu0 %v9787_v24  ;;  %3281 = vmatprep.mubr.bf16.mxu1 %v9787_v24  ;;  %v2404_v24 = vadd.f32 %v9793_v57, %v7966_v60  ;;  %v8185_v57 = vmul.bf16 %v3447_v8, %v8135_v12  ;;  %v9798_v8 = vld [vmem:[#allocation24_spill] sm:$0xff]  ;;  %v8214_v4 = vmul.bf16 %v3818_v2, %v9800_v62  ;;  %v3454_v2 = vmul.bf16 1027030327, %v7929_v22  ;;  %v9812_v47 = vld [vmem:[#allocation25_spill] sm:$0xff] }
 0x2f0   : > { %v8222_v32 = vmul.bf16 %v3815_v37, %v9804_v9  ;;  %9807 = vst [vmem:[#allocation50_spill] sm:$0xff] %v8226_v3  ;;  %v8231_v45 = vpack.c.bf16 %v2418_v21, %v2414_v61  ;;  %v3636_v26 = vadd.bf16 %v3572_v63, %v7870_v54  ;;  %v2235_v21 = vadd.f32 %v7942_v1, %v7961_v16  ;;  %v9808_v37 = vld [vmem:[#allocation32_spill] sm:$0xff] }
 0x2f1   : > { %v8187_v36 = vpack.c.bf16 %v2408_v10, %v2404_v24  ;;  %v8202_v10 = vmul.bf16 %v3450_v25, %v7908_v15  ;;  %v3451_v24 = vmul.bf16 1027030327, %v8178_v28  ;;  %9801 = vst [vmem:[#allocation37_spill] sm:$0xff] %v8214_v4  ;;  %v8218_v25 = vmul.bf16 %v3820_v11, %v9802_v19 }
 0x2f2   : > { %9805 = vst [vmem:[#allocation30_spill] sm:$0xff] %v8222_v32  ;;  %v3693_v63 = vmul.bf16 1061961548, %v8158_v48  ;;  %v3567_v62 = vmul.bf16 %v8113_v44, %v8073_v41  ;;  %v3569_v61 = vmul.bf16 %v8116_v56, %v8075_v33  ;;  %v8259_v19 = vmul.bf16 %v3454_v2, %v7929_v22  ;;  %v9811_v48 = vld [vmem:[#allocation26_spill] sm:$0xff] }
 0x2f3   : > { %9803 = vst [vmem:[#allocation28_spill] sm:$0xff] %v8218_v25  ;;  %v8241_v14 = vmul.bf16 %v3451_v24, %v8178_v28  ;;  %v3457_v24 = vmul.bf16 1027030327, %v8231_v45  ;;  %v3700_v44 = vmul.bf16 1061961548, %v3636_v26  ;;  %v9813_v25 = vld [vmem:[#allocation51_spill] sm:$0xff] }
 0x2f4   : > { %v3458_v9 = vmul.bf16 1027030327, %v9812_v47  ;;  %v9814_v2 = vmul.bf16 1056980736, %v7846_v5  ;;  %6255 = vtanh.bf16 %v3693_v63  ;;  %v9820_v5 = vld [vmem:[#allocation53_spill] sm:$0xff] }
 0x2f6   : > { %3089 = vmatmul.mubr.bf16.gmra.mxu0 %v9794_v35  ;;  %3282 = vmatmul.mubr.bf16.gmra.mxu1 %v9794_v35  ;;  %v6250_v35 = vpop.eup %6249  ;;  %v8296_v63 = vmul.bf16 %v3458_v9, %v9812_v47 }
 0x2f7   : > { %3098 = vmatprep.mubr.bf16.mxu0 %v9795_v50  ;;  %3291 = vmatprep.mubr.bf16.mxu1 %v9795_v50  ;;  %v6252_v27 = vpop.eup %6251  ;;  %v2221_v50 = vadd.f32 %v9798_v8, %v7961_v16  ;;  %v3453_v8 = vmul.bf16 1027030327, %v8187_v36  ;;  %v3822_v46 = vadd.bf16 1065369472, %v6250_v35  ;;  %v3698_v35 = vmul.bf16 1061961548, %v3634_v52 }
 0x2f8   : > { %v3824_v11 = vadd.bf16 1065369472, %v6252_v27  ;;  %v2424_v52 = vadd.f32 %v9811_v48, %v7966_v60 }
 0x2f9   : > { %v8229_v6 = vpack.c.bf16 %v2225_v7, %v2221_v50  ;;  %v2428_v7 = vadd.f32 %v9809_v53, %v7966_v60  ;;  %v9810_v50 = vld [vmem:[#allocation35_spill] sm:$0xff]  ;;  %v8267_v53 = vmul.bf16 %v3453_v8, %v8187_v36  ;;  %v8277_v3 = vmul.bf16 %v3822_v46, %v9814_v2 }
 0x2fa   : > { %v2231_v1 = vadd.f32 %v9810_v50, %v7961_v16  ;;  %v3460_v50 = vmul.bf16 1027030327, %v9813_v25  ;;  %v9816_v8 = vmul.bf16 1056980736, %v7848_v13  ;;  %6257 = vtanh.bf16 %v3698_v35 }
 0x2fb   : > { %v3455_v27 = vmul.bf16 1027030327, %v8229_v6  ;;  %v8273_v56 = vpack.c.bf16 %v2428_v7, %v2424_v52  ;;  %9815 = vst [vmem:[#allocation46_spill] sm:$0xff] %v8277_v3  ;;  %v8293_v46 = vmul.bf16 %v3457_v24, %v8231_v45  ;;  %6259 = vtanh.bf16 %v3700_v44 }
 0x2fc   : > { %v8271_v4 = vpack.c.bf16 %v2235_v21, %v2231_v1  ;;  %v8285_v48 = vmul.bf16 %v3824_v11, %v9816_v8  ;;  %v3633_v21 = vadd.bf16 %v3569_v61, %v8075_v33  ;;  %v6254_v1 = vpop.eup %6253  ;;  %v8299_v13 = vmul.bf16 %v3460_v50, %v9813_v25  ;;  %v9819_v8 = vld [vmem:[#allocation52_spill] sm:$0xff] }
 0x2fd   : > { %v8281_v26 = vmul.bf16 %v3455_v27, %v8229_v6  ;;  %v2245_v27 = vadd.f32 %v7973_v38, %v7961_v16  ;;  %v2438_v24 = vadd.f32 %v7975_v20, %v7966_v60  ;;  %v3819_v52 = vadd.bf16 1065369472, %v6254_v1 }
 0x2fe   : > { %3099 = vmatmul.mubr.bf16.gmra.mxu0 %v9808_v37  ;;  %3292 = vmatmul.mubr.bf16.gmra.mxu1 %v9808_v37  ;;  %v8262_v37 = vmul.bf16 %v3456_v59, %v7931_v49  ;;  %v3631_v59 = vadd.bf16 %v3567_v62, %v8073_v41  ;;  %9817 = vst [vmem:[#allocation49_spill] sm:$0xff] %v8285_v48  ;;  %v3459_v11 = vmul.bf16 1027030327, %v8271_v4  ;;  %v3461_v62 = vmul.bf16 1027030327, %v8273_v56 }
 0x2ff   : > { %v3697_v44 = vmul.bf16 1061961548, %v3633_v21  ;;  %v9818_v50 = vmul.bf16 %v8169_v29, %v7889_v51  ;;  %v2241_v35 = vadd.f32 %v9819_v8, %v7961_v16  ;;  %v2434_v7 = vadd.f32 %v9820_v5, %v7966_v60  ;;  %v2254_v21 = vpop.f32.mrf.mxu0 }
 0x300   : > { %v3695_v61 = vmul.bf16 1061961548, %v3631_v59  ;;  %v3571_v20 = vmul.bf16 %v8145_v30, %v8098_v43  ;;  %v8325_v29 = vmul.bf16 %v3459_v11, %v8271_v4  ;;  %v3573_v1 = vmul.bf16 %v8150_v23, %v8101_v18  ;;  %v8339_v30 = vld [vmem:[%s9536_s6] sm:$0xf]  ;;  %v2447_v59 = vpop.f32.mrf.mxu1 }
 0x301   : > { %v3638_v2 = vadd.bf16 %v9818_v50, %v7889_v51  ;;  %v8330_v50 = vmul.bf16 %v3461_v62, %v8273_v56  ;;  %v8332_v5 = vpack.c.bf16 %v2245_v27, %v2241_v35  ;;  %v8334_v8 = vpack.c.bf16 %v2438_v24, %v2434_v7 }
 0x302   : > { %6261 = vtanh.bf16 %v3695_v61  ;;  %v9822_v38 = vmul.bf16 1056980736, %v8046_v40  ;;  %v9824_v23 = vmul.bf16 %v8172_v31, %v7891_v0  ;;  %v3462_v7 = vmul.bf16 1027030327, %v7986_v42  ;;  %v9825_v61 = vld [vmem:[#allocation44_spill] sm:$0xff]  ;;  %v9832_v31 = vld [vmem:[#allocation59_spill] sm:$0xff]  ;;  %v8381_v32 = vpop.eup %6255 }
 0x303   : > { %9821 = vst [vmem:[#allocation45_spill] sm:$0xff] %v8334_v8  ;;  %6263 = vtanh.bf16 %v3697_v44  ;;  %v3702_v9 = vmul.bf16 1061961548, %v3638_v2  ;;  %v3464_v62 = vmul.bf16 1027030327, %v7988_v58  ;;  %v3635_v27 = vadd.bf16 %v3571_v20, %v8098_v43 }
 0x304   : > { %v8343_v11 = vmul.bf16 %v3819_v52, %v9822_v38  ;;  %v3640_v35 = vadd.bf16 %v9824_v23, %v7891_v0  ;;  %v3575_v24 = vmul.bf16 %v8185_v57, %v8135_v12  ;;  %v8356_v40 = vrot.slane %v8339_v30, %v9825_v61  ;;  %v9827_v52 = vld [vmem:[#allocation41_spill] sm:$0xff] }
 0x305   : > { %v9828_v44 = vsub.s32 2, %v9827_v52  ;;  %v3637_v38 = vadd.bf16 %v3573_v1, %v8101_v18  ;;  %v9830_v57 = vmul.bf16 %v8202_v10, %v7908_v15  ;;  %v3577_v48 = vmul.bf16 %v8199_v34, %v8137_v17 }
 0x306   : > { %9823 = vst [vmem:[#allocation27_spill] sm:$0xff] %v8343_v11  ;;  %9826 = vst [vmem:[#allocation29_spill] sm:$0xff] %v8356_v40  ;;  %v2444_v1 = vadd.f32 %v9832_v31, %v7966_v60  ;;  %v3704_v11 = vmul.bf16 1061961548, %v3640_v35  ;;  %v9833_v20 = vmul.bf16 %v8205_v55, %v7910_v39  ;;  %v8384_v10 = vmul.bf16 %v3462_v7, %v7986_v42  ;;  %v9834_v40 = vld [vmem:[#allocation43_spill] sm:$0xff] }
 0x307   : > { %v8361_v2 = vrot.slane %v8339_v30, %v9828_v44  ;;  %v3642_v61 = vadd.bf16 %v9830_v57, %v7908_v15  ;;  %v9831_v44 = vld [vmem:[#allocation58_spill] sm:$0xff]  ;;  %v8387_v57 = vmul.bf16 %v3464_v62, %v7988_v58  ;;  %v3699_v34 = vmul.bf16 1061961548, %v3635_v27 }
 0x308   : > { %v2251_v3 = vadd.f32 %v9831_v44, %v7961_v16  ;;  %v3644_v23 = vadd.bf16 %v9833_v20, %v7910_v39  ;;  %v3639_v44 = vadd.bf16 %v3575_v24, %v8135_v12  ;;  %v2255_v35 = vadd.f32 %v2254_v21, %v7961_v16 }
 0x309   : > { %9829 = vst [vmem:[#allocation47_spill] sm:$0xff] %v8361_v2  ;;  %v8390_v2 = vpop.eup %6257  ;;  %v2448_v31 = vadd.f32 %v2447_v59, %v7966_v60  ;;  %v8396_v55 = vrot.slane %v8339_v30, %v9834_v40  ;;  %v3701_v20 = vmul.bf16 1061961548, %v3637_v38  ;;  %6265 = vtanh.bf16 %v3702_v9 }
 0x30a   : > { %v8398_v0 = vpop.eup %6259  ;;  %v3706_v7 = vmul.bf16 1061961548, %v3642_v61  ;;  %v3641_v62 = vadd.bf16 %v3577_v48, %v8137_v17  ;;  %v3579_v27 = vmul.bf16 %v8241_v14, %v8178_v28  ;;  %6267 = vtanh.bf16 %v3704_v11 }
 0x30b   : > { %9835 = vst [vmem:[#allocation48_spill] sm:$0xff] %v8396_v55  ;;  %v3708_v24 = vmul.bf16 1061961548, %v3644_v23  ;;  %v9836_v59 = vmul.bf16 %v8259_v19, %v7929_v22  ;;  %v9837_v38 = vmul.bf16 %v8262_v37, %v7931_v49  ;;  %v3590_v9 = vmul.bf16 %v8384_v10, %v7986_v42  ;;  %v9838_v19 = vld [vmem:[#allocation60_spill] sm:$0xff] }
 0x30c   : > { %6269 = vtanh.bf16 %v3699_v34  ;;  %v3703_v55 = vmul.bf16 1061961548, %v3639_v44  ;;  %v3581_v14 = vmul.bf16 %v8267_v53, %v8187_v36  ;;  %v3466_v23 = vmul.bf16 1027030327, %v9838_v19 }
 0x30d   : > { %v3646_v21 = vadd.bf16 %v9836_v59, %v7929_v22  ;;  %v3648_v40 = vadd.bf16 %v9837_v38, %v7931_v49  ;;  %v9839_v59 = vld [vmem:[#allocation61_spill] sm:$0xff]  ;;  %6271 = vtanh.bf16 %v3701_v20  ;;  %v8419_v37 = vpack.c.bf16 %v2255_v35, %v2251_v3 }
 0x30e   : > { %v3468_v60 = vmul.bf16 1027030327, %v9839_v59  ;;  %6273 = vtanh.bf16 %v3706_v7  ;;  %v3705_v34 = vmul.bf16 1061961548, %v3641_v62  ;;  %v3643_v44 = vadd.bf16 %v3579_v27, %v8178_v28 }
 0x30f   : > { %v8426_v16 = vpack.c.bf16 %v2448_v31, %v2444_v1  ;;  %6275 = vtanh.bf16 %v3708_v24  ;;  %v3710_v53 = vmul.bf16 1061961548, %v3646_v21  ;;  %v3712_v11 = vmul.bf16 1061961548, %v3648_v40  ;;  %v9843_v31 = vld [vmem:[#allocation34_spill] sm:$0xff]  ;;  %v9844_v40 = vld [vmem:[#allocation31_spill] sm:$0xff] }
 0x310   : > { %v8428_v51 = vpop.eup %6261  ;;  %6277 = vtanh.bf16 %v3703_v55  ;;  %v3645_v3 = vadd.bf16 %v3581_v14, %v8187_v36  ;;  %v9842_v35 = vmul.bf16 %v8296_v63, %v9812_v47  ;;  %v3583_v7 = vmul.bf16 %v8281_v26, %v8229_v6 }
 0x311   : > { %v8437_v1 = vpop.eup %6263  ;;  %v8444_v21 = vmul.bf16 %v3466_v23, %v9838_v19  ;;  %v8447_v14 = vmul.bf16 %v3468_v60, %v9839_v59  ;;  %6279 = vtanh.bf16 %v3705_v34  ;;  %v3707_v26 = vmul.bf16 1061961548, %v3643_v44 }
 0x312   : > { %v3650_v20 = vadd.bf16 %v9842_v35, %v9812_v47  ;;  %v3467_v60 = vmul.bf16 1027030327, %v8419_v37  ;;  %v3469_v23 = vmul.bf16 1027030327, %v8426_v16  ;;  %6281 = vtanh.bf16 %v3710_v53 }
 0x313   : > { %v2258_v61 = vpop.f32.mrf.mxu0  ;;  %v2451_v48 = vpop.f32.mrf.mxu1  ;;  %v3709_v34 = vmul.bf16 1061961548, %v3645_v3  ;;  %6283 = vtanh.bf16 %v3712_v11 }
 0x314   : > { %v2259_v62 = vadd.f32 %v2258_v61, %v9843_v31  ;;  %v2452_v27 = vadd.f32 %v2451_v48, %v9844_v40  ;;  %v3585_v48 = vmul.bf16 %v8293_v46, %v8231_v45  ;;  %v3714_v44 = vmul.bf16 1061961548, %v3650_v20 }
 0x315   : > { %v8421_v38 = vpop.f32.mrf.mxu0  ;;  %v8423_v10 = vpop.f32.mrf.mxu1  ;;  %v9851_v46 = vmul.bf16 1027030327, %v8334_v8  ;;  %6285 = vtanh.bf16 %v3707_v26  ;;  %v3589_v20 = vmul.bf16 %v8330_v50, %v8273_v56  ;;  %v9854_v50 = vmul.bf16 %v8387_v57, %v7988_v58 }
 0x316   : > { %9840 = vst [vmem:[#allocation24_spill] sm:$0xff] %v8421_v38  ;;  %9841 = vst [vmem:[#allocation36_spill] sm:$0xff] %v8423_v10  ;;  %v3649_v3 = vadd.bf16 %v3585_v48, %v8231_v45  ;;  %6287 = vtanh.bf16 %v3709_v34 }
 0x317   : > { %v2262_v33 = vpop.f32.mrf.mxu0  ;;  %v2455_v49 = vpop.f32.mrf.mxu1  ;;  %6289 = vtanh.bf16 %v3714_v44 }
 0x318   : > { %v2263_v24 = vadd.f32 %v2262_v33, %v9843_v31  ;;  %v2456_v55 = vadd.f32 %v2455_v49, %v9844_v40  ;;  %v9849_v49 = vmul.bf16 %v8299_v13, %v9813_v25  ;;  %v9850_v13 = vmul.bf16 1027030327, %v8332_v5 }
 0x319   : > { %v8449_v63 = vpop.f32.mrf.mxu0  ;;  %v8451_v35 = vpop.f32.mrf.mxu1 }
 0x31a   : > { %9845 = vst [vmem:[#allocation32_spill] sm:$0xff] %v8449_v63  ;;  %9846 = vst [vmem:[#allocation23_spill] sm:$0xff] %v8451_v35  ;;  %v8453_v10 = vpack.c.bf16 %v2263_v24, %v2259_v62  ;;  %v8455_v61 = vpack.c.bf16 %v2456_v55, %v2452_v27  ;;  %v3652_v33 = vadd.bf16 %v9849_v49, %v9813_v25 }
 0x31b   : > { %v2268_v38 = vpop.f32.mrf.mxu0  ;;  %v2461_v35 = vpop.f32.mrf.mxu1  ;;  %v3647_v62 = vadd.bf16 %v3583_v7, %v8229_v6  ;;  %v3654_v27 = vadd.bf16 %v3590_v9, %v7986_v42  ;;  %v3527_v24 = vmul.bf16 %v9850_v13, %v8332_v5  ;;  %v3529_v55 = vmul.bf16 %v9851_v46, %v8334_v8 }
 0x31c   : > { %9847 = vst [vmem:[#allocation35_spill] sm:$0xff] %v8453_v10  ;;  %9848 = vst [vmem:[#allocation26_spill] sm:$0xff] %v8455_v61  ;;  %v3594_v49 = vmul.bf16 %v8444_v21, %v9838_v19  ;;  %v3716_v11 = vmul.bf16 1061961548, %v3652_v33  ;;  %v3587_v9 = vmul.bf16 %v8325_v29, %v8271_v4  ;;  %v8484_v7 = vpop.eup %6265  ;;  %v3596_v13 = vmul.bf16 %v8447_v14, %v9839_v59 }
 0x31d   : > { %v8475_v61 = vpop.f32.mrf.mxu0  ;;  %v8477_v53 = vpop.f32.mrf.mxu1  ;;  %v8489_v21 = vmul.bf16 %v3467_v60, %v8419_v37  ;;  %v8492_v46 = vmul.bf16 %v3469_v23, %v8426_v16  ;;  %v3711_v29 = vmul.bf16 1061961548, %v3647_v62  ;;  %v2269_v60 = vadd.f32 %v2268_v38, %v9843_v31 }
 0x31e   : > { %9852 = vst [vmem:[#allocation25_spill] sm:$0xff] %v8475_v61  ;;  %9853 = vst [vmem:[#allocation51_spill] sm:$0xff] %v8477_v53  ;;  %v8494_v48 = vpop.eup %6267  ;;  %v3718_v53 = vmul.bf16 1061961548, %v3654_v27  ;;  %v3656_v61 = vadd.bf16 %v9854_v50, %v7988_v58  ;;  %v2462_v23 = vadd.f32 %v2461_v35, %v9844_v40  ;;  %6291 = vtanh.bf16 %v3716_v11 }
 0x31f   : > { %v2272_v26 = vpop.f32.mrf.mxu0  ;;  %v2465_v33 = vpop.f32.mrf.mxu1  ;;  %v3713_v27 = vmul.bf16 1061961548, %v3649_v3  ;;  %v3651_v57 = vadd.bf16 %v3587_v9, %v8271_v4  ;;  %v3653_v50 = vadd.bf16 %v3589_v20, %v8273_v56  ;;  %v9859_v11 = vsub.s32 3, %v9827_v52 }
 0x320   : > { %v8500_v14 = vpop.eup %6269  ;;  %v2273_v10 = vadd.f32 %v2272_v26, %v9843_v31  ;;  %v2466_v34 = vadd.f32 %v2465_v33, %v9844_v40  ;;  %v3821_v9 = vadd.bf16 1065369472, %v8381_v32  ;;  %6293 = vtanh.bf16 %v3718_v53 }
 0x321   : > { %v8506_v63 = vpop.f32.mrf.mxu0  ;;  %v8508_v44 = vpop.f32.mrf.mxu1  ;;  %v8527_v3 = vrot.slane %v8339_v30, %v9859_v11  ;;  %6295 = vtanh.bf16 %v3711_v29  ;;  %v3658_v52 = vadd.bf16 %v3594_v49, %v9838_v19  ;;  %v3715_v30 = vmul.bf16 1061961548, %v3651_v57 }
 0x322   : > { %9855 = vst [vmem:[#allocation52_spill] sm:$0xff] %v8506_v63  ;;  %9856 = vst [vmem:[#allocation53_spill] sm:$0xff] %v8508_v44  ;;  %v8510_v62 = vpop.eup %6271  ;;  %v8516_v38 = vpack.c.bf16 %v2273_v10, %v2269_v60  ;;  %v8518_v35 = vpack.c.bf16 %v2466_v34, %v2462_v23  ;;  %v3591_v63 = vmul.bf16 %v3527_v24, %v8332_v5  ;;  %v3826_v10 = vadd.bf16 1065369472, %v8390_v2 }
 0x323   : > { %v8514_v58 = vpop.eup %6273  ;;  %v3593_v44 = vmul.bf16 %v3529_v55, %v8334_v8  ;;  %9860 = vst [vmem:[#allocation59_spill] sm:$0xff] %v8527_v3  ;;  %v3828_v24 = vadd.bf16 1065369472, %v8398_v0  ;;  %v3720_v55 = vmul.bf16 1061961548, %v3656_v61  ;;  %6297 = vtanh.bf16 %v3713_v27 }
 0x324   : > { %9857 = vst [vmem:[#allocation41_spill] sm:$0xff] %v8516_v38  ;;  %9858 = vst [vmem:[#allocation58_spill] sm:$0xff] %v8518_v35  ;;  %v2278_v26 = vpop.f32.mrf.mxu0  ;;  %v2471_v33 = vpop.f32.mrf.mxu1  ;;  %v3660_v34 = vadd.bf16 %v3596_v13, %v9839_v59  ;;  %v3595_v32 = vmul.bf16 %v8489_v21, %v8419_v37  ;;  %v3597_v61 = vmul.bf16 %v8492_v46, %v8426_v16  ;;  %v3823_v46 = vadd.bf16 1065369472, %v8428_v51 }
 0x325   : > { %v8522_v42 = vpop.eup %6275  ;;  %v3657_v0 = vadd.bf16 %v3593_v44, %v8334_v8  ;;  %v2279_v49 = vadd.f32 %v2278_v26, %v9843_v31  ;;  %v2472_v29 = vadd.f32 %v2471_v33, %v9844_v40  ;;  %6299 = vtanh.bf16 %v3720_v55 }
 0x326   : > { %v8531_v20 = vpop.eup %6277  ;;  %v8533_v60 = vpop.f32.mrf.mxu0  ;;  %v3722_v26 = vmul.bf16 1061961548, %v3658_v52  ;;  %v3659_v3 = vadd.bf16 %v3595_v32, %v8419_v37  ;;  %v9872_v51 = vmul.bf16 1056980736, %v7870_v54  ;;  %6301 = vtanh.bf16 %v3715_v30 }
 0x327   : > { %9861 = vst [vmem:[#allocation60_spill] sm:$0xff] %v8533_v60  ;;  %v8535_v23 = vpop.f32.mrf.mxu1  ;;  %v8542_v2 = vpop.eup %6279  ;;  %v3717_v60 = vmul.bf16 1061961548, %v3653_v50  ;;  %v3661_v32 = vadd.bf16 %v3597_v61, %v8426_v16 }
 0x328   : > { %9862 = vst [vmem:[#allocation61_spill] sm:$0xff] %v8535_v23  ;;  %v2282_v53 = vpop.f32.mrf.mxu0  ;;  %v3655_v23 = vadd.bf16 %v3591_v63, %v8332_v5  ;;  %v8552_v27 = vpop.eup %6281  ;;  %v9865_v63 = vld [vmem:[#allocation62_spill] sm:$0xff]  ;;  %v8578_v55 = vmul.bf16 %v3828_v24, %v9872_v51  ;;  %v3723_v61 = vmul.bf16 1061961548, %v3659_v3 }
 0x329   : > { %v2475_v11 = vpop.f32.mrf.mxu1  ;;  %v2283_v13 = vadd.f32 %v2282_v53, %v9843_v31  ;;  %v9866_v35 = vmul.bf16 1056980736, %v9865_v63  ;;  %v8563_v38 = vpop.eup %6283  ;;  %v9869_v63 = vld [vmem:[#allocation33_spill] sm:$0xff]  ;;  %6303 = vtanh.bf16 %v3717_v60  ;;  %v9874_v60 = vmul.bf16 1056980736, %v8073_v41  ;;  %v9875_v24 = vld [vmem:[#allocation22_spill] sm:$0xff] }
 0x32a   : > { %v2476_v21 = vadd.f32 %v2475_v11, %v9844_v40  ;;  %v8554_v57 = vpop.f32.mrf.mxu0  ;;  %v3724_v11 = vmul.bf16 1061961548, %v3660_v34  ;;  %9873 = vst [vmem:[#allocation65_spill] sm:$0xff] %v8578_v55  ;;  %v3719_v52 = vmul.bf16 1061961548, %v3655_v23  ;;  %6305 = vtanh.bf16 %v3722_v26 }
 0x32b   : > { %9863 = vst [vmem:[#allocation34_spill] sm:$0xff] %v8554_v57  ;;  %v8556_v50 = vpop.f32.mrf.mxu1  ;;  %v8560_v44 = vmul.bf16 %v3821_v9, %v9866_v35  ;;  %v8565_v33 = vpack.c.bf16 %v2283_v13, %v2279_v49  ;;  %v8570_v57 = vpop.eup %6285  ;;  %v9870_v35 = vmul.bf16 1056980736, %v9869_v63  ;;  %v3721_v34 = vmul.bf16 1061961548, %v3657_v0 }
 0x32c   : > { %9864 = vst [vmem:[#allocation31_spill] sm:$0xff] %v8556_v50  ;;  %v8567_v53 = vpack.c.bf16 %v2476_v21, %v2472_v29  ;;  %v2288_v50 = vpop.f32.mrf.mxu0  ;;  %v8582_v29 = vpop.eup %6287  ;;  %v8595_v30 = vmul.bf16 %v3823_v46, %v9874_v60  ;;  %6307 = vtanh.bf16 %v3724_v11  ;;  %v3725_v46 = vmul.bf16 1061961548, %v3661_v32 }
 0x32d   : > { %9867 = vst [vmem:[#allocation62_spill] sm:$0xff] %v8565_v33  ;;  %v2481_v8 = vpop.f32.mrf.mxu1  ;;  %v8574_v9 = vmul.bf16 %v3826_v10, %v9870_v35  ;;  %v3825_v10 = vadd.bf16 1065369472, %v8437_v1  ;;  %v8591_v23 = vpop.eup %6289  ;;  %6309 = vtanh.bf16 %v3719_v52  ;;  %v2289_v11 = vadd.f32 %v2288_v50, %v9843_v31 }
 0x32e   : > { %9868 = vst [vmem:[#allocation64_spill] sm:$0xff] %v8567_v53  ;;  %v8584_v13 = vpop.f32.mrf.mxu0  ;;  %v8601_v26 = vpop.eup %6291  ;;  %6311 = vtanh.bf16 %v3721_v34  ;;  %v2482_v3 = vadd.f32 %v2481_v8, %v9844_v40  ;;  %v3830_v49 = vadd.bf16 1065369472, %v8484_v7  ;;  %v3827_v7 = vadd.bf16 1065369472, %v8500_v14  ;;  %v9880_v34 = vld [vmem:[#allocation63_spill] sm:$0xff] }
 0x32f   : > { %9871 = vst [vmem:[#allocation33_spill] sm:$0xff] %v8574_v9  ;;  %v8586_v21 = vpop.f32.mrf.mxu1  ;;  %v8613_v52 = vpop.eup %6293  ;;  %6313 = vtanh.bf16 %v3723_v61  ;;  %v9886_v14 = vld [vmem:[#allocation39_spill] sm:$0xff]  ;;  %v9889_v61 = vld [vmem:[#allocation42_spill] sm:$0xff] }
 0x330   : > { %v2292_v63 = vpop.f32.mrf.mxu0  ;;  %v8618_v50 = vpop.eup %6295  ;;  %6315 = vtanh.bf16 %v3725_v46  ;;  %v3829_v46 = vadd.bf16 1065369472, %v8510_v62  ;;  %v9892_v62 = vmul.bf16 1056980736, %v8098_v43 }
 0x331   : > { %v2485_v35 = vpop.f32.mrf.mxu1  ;;  %v2293_v60 = vadd.f32 %v2292_v63, %v9843_v31  ;;  %v3832_v63 = vadd.bf16 1065369472, %v8494_v48  ;;  %v8626_v0 = vpop.eup %6297  ;;  %v9883_v48 = vld [vmem:[#allocation57_spill] sm:$0xff] }
 0x332   : > { %v2486_v51 = vadd.f32 %v2485_v35, %v9844_v40  ;;  %v8609_v1 = vpop.f32.mrf.mxu0  ;;  %v3834_v35 = vadd.bf16 1065369472, %v8514_v58 }
 0x333   : > { %9876 = vst [vmem:[#allocation22_spill] sm:$0xff] %v8609_v1  ;;  %v8611_v54 = vpop.f32.mrf.mxu1  ;;  %v8620_v8 = vpack.c.bf16 %v2293_v60, %v2289_v11  ;;  %v9881_v11 = vmul.bf16 1056980736, %v9880_v34  ;;  %v9887_v1 = vmul.bf16 1056980736, %v9886_v14 }
 0x334   : > { %9877 = vst [vmem:[#allocation66_spill] sm:$0xff] %v8611_v54  ;;  %v8622_v32 = vpack.c.bf16 %v2486_v51, %v2482_v3  ;;  %v9882_v51 = vld [vmem:[#allocation56_spill] sm:$0xff]  ;;  %v3833_v34 = vadd.bf16 1065369472, %v8542_v2 }
 0x335   : > { %9878 = vst [vmem:[#allocation67_spill] sm:$0xff] %v8620_v8  ;;  %v8633_v60 = vmul.bf16 %v3825_v10, %v9881_v11  ;;  %v8644_v41 = vmul.bf16 %v3830_v49, %v9887_v1  ;;  %v8649_v11 = vpop.eup %6299  ;;  %v3831_v10 = vadd.bf16 1065369472, %v8531_v20  ;;  %v9895_v20 = vmul.bf16 1056980736, %v8101_v18 }
 0x336   : > { %9879 = vst [vmem:[#allocation68_spill] sm:$0xff] %v8622_v32  ;;  %v2298_v55 = vpop.f32.mrf.mxu0  ;;  %v2491_v9 = vpop.f32.mrf.mxu1  ;;  %v9890_v32 = vmul.bf16 1056980736, %v9889_v61  ;;  %v3838_v61 = vadd.bf16 1065369472, %v8552_v27 }
 0x337   : > { %9888 = vst [vmem:[#allocation57_spill] sm:$0xff] %v8644_v41  ;;  %v2299_v58 = vadd.f32 %v2298_v55, %v9843_v31  ;;  %v8679_v2 = vmul.bf16 %v3829_v46, %v9895_v20  ;;  %v3840_v27 = vadd.bf16 1065369472, %v8563_v38  ;;  %v3835_v55 = vadd.bf16 1065369472, %v8570_v57 }
 0x338   : > { %v8638_v8 = vpop.f32.mrf.mxu0  ;;  %v8640_v54 = vpop.f32.mrf.mxu1  ;;  %v8653_v3 = vmul.bf16 %v3832_v63, %v9890_v32  ;;  %v9897_v38 = vmul.bf16 1056980736, %v7908_v15  ;;  %v9898_v57 = vmul.bf16 1056980736, %v7910_v39  ;;  %v9901_v15 = vmul.bf16 1056980736, %v7929_v22 }
 0x339   : > { %9884 = vst [vmem:[#allocation63_spill] sm:$0xff] %v8638_v8  ;;  %9885 = vst [vmem:[#allocation56_spill] sm:$0xff] %v8640_v54  ;;  %v3836_v54 = vadd.bf16 1065369472, %v8522_v42  ;;  %v8660_v8 = vmul.bf16 %v3827_v7, %v9892_v62  ;;  %v8665_v32 = vpop.eup %6301  ;;  %v2492_v42 = vadd.f32 %v2491_v9, %v9844_v40  ;;  %v3837_v9 = vadd.bf16 1065369472, %v8582_v29 }
 0x33a   : > { %9891 = vst [vmem:[#allocation39_spill] sm:$0xff] %v8653_v3  ;;  %v2302_v49 = vpop.f32.mrf.mxu0  ;;  %v2495_v1 = vpop.f32.mrf.mxu1  ;;  %v8696_v20 = vmul.bf16 %v3834_v35, %v9897_v38  ;;  %v8714_v35 = vmul.bf16 %v3838_v61, %v9901_v15  ;;  %v9902_v39 = vld [vmem:[#allocation45_spill] sm:$0xff]  ;;  %v3405_v22 = vmul.bf16 1056980736, %v8426_v16  ;;  %v9907_v61 = vmul.bf16 1056980736, %v8187_v36 }
 0x33b   : > { %v2303_v63 = vadd.f32 %v2302_v49, %v9843_v31  ;;  %v2496_v14 = vadd.f32 %v2495_v1, %v9844_v40  ;;  %v8671_v3 = vpop.eup %6303  ;;  %v8700_v29 = vmul.bf16 %v3836_v54, %v9898_v57  ;;  %v3401_v54 = vmul.bf16 1056980736, %v9902_v39 }
 0x33c   : > { %v8673_v43 = vpop.f32.mrf.mxu0  ;;  %v8675_v7 = vpop.f32.mrf.mxu1  ;;  %v9912_v16 = vmul.bf16 1056980736, %v9882_v51 }
 0x33d   : > { %9893 = vst [vmem:[#allocation42_spill] sm:$0xff] %v8673_v43  ;;  %9894 = vst [vmem:[#allocation69_spill] sm:$0xff] %v8675_v7  ;;  %v8684_v62 = vpop.eup %6305  ;;  %v8686_v49 = vpack.c.bf16 %v2303_v63, %v2299_v58  ;;  %v8688_v1 = vpack.c.bf16 %v2496_v14, %v2492_v42  ;;  %v3842_v43 = vadd.bf16 1065369472, %v8591_v23  ;;  %v3844_v7 = vadd.bf16 1065369472, %v8601_v26 }
 0x33e   : > { %v8692_v41 = vpop.eup %6307  ;;  %v2308_v18 = vpop.f32.mrf.mxu0  ;;  %v3846_v58 = vadd.bf16 1065369472, %v8613_v52  ;;  %v3399_v14 = vmul.bf16 1056980736, %v8332_v5  ;;  %v9899_v23 = vmul.bf16 1056980736, %v8135_v12 }
 0x33f   : > { %9896 = vst [vmem:[#allocation70_spill] sm:$0xff] %v8688_v1  ;;  %v2501_v46 = vpop.f32.mrf.mxu1  ;;  %v6310_v42 = vpop.eup %6309  ;;  %v9900_v63 = vmul.bf16 1056980736, %v8137_v17  ;;  %v9904_v5 = vmul.bf16 1056980736, %v9875_v24 }
 0x340   : > { %v8706_v26 = vmul.bf16 %v3831_v10, %v9899_v23  ;;  %v6312_v38 = vpop.eup %6311  ;;  %v8717_v57 = vpop.f32.mrf.mxu0  ;;  %v9906_v10 = vmul.bf16 1056980736, %v8178_v28  ;;  %v8733_v23 = vmul.bf16 %v3837_v9, %v9907_v61  ;;  %v9910_v24 = vmul.bf16 1056980736, %v9813_v25 }
 0x341   : > { %v8710_v1 = vmul.bf16 %v3833_v34, %v9900_v63  ;;  %v8719_v52 = vpop.f32.mrf.mxu1  ;;  %v8723_v12 = vmul.bf16 %v3840_v27, %v9904_v5  ;;  %v3403_v34 = vmul.bf16 1056980736, %v8419_v37  ;;  %v9908_v63 = vmul.bf16 1056980736, %v9812_v47 }
 0x342   : > { %9903 = vst [vmem:[#allocation45_spill] sm:$0xff] %v8719_v52  ;;  %v8727_v17 = vmul.bf16 %v3835_v55, %v9906_v10  ;;  %v8741_v27 = vmul.bf16 %v3844_v7, %v9910_v24  ;;  %v3839_v28 = vadd.bf16 1065369472, %v8618_v50  ;;  %v6314_v55 = vpop.eup %6313  ;;  %v2312_v39 = vpop.f32.mrf.mxu0  ;;  %v3841_v37 = vadd.bf16 1065369472, %v8626_v0  ;;  %v9915_v10 = vld [vmem:[#allocation32_spill] sm:$0xff] }
 0x343   : > { %9905 = vst [vmem:[#allocation71_spill] sm:$0xff] %v8723_v12  ;;  %v8737_v15 = vmul.bf16 %v3842_v43, %v9908_v63  ;;  %v2505_v5 = vpop.f32.mrf.mxu1  ;;  %v8747_v36 = vmul.bf16 %v3846_v58, %v9912_v16  ;;  %v3848_v9 = vadd.bf16 1065369472, %v8649_v11  ;;  %v3843_v47 = vadd.bf16 1065369472, %v8665_v32  ;;  %v9914_v43 = vld [vmem:[#allocation54_spill] sm:$0xff]  ;;  %v6316_v63 = vpop.eup %6315 }
 0x344   : > { %9911 = vst [vmem:[#allocation73_spill] sm:$0xff] %v8741_v27  ;;  %v2265_v25 = vadd.f32 %v9915_v10, %v9914_v43  ;;  %v3845_v7 = vadd.bf16 1065369472, %v8671_v3  ;;  %v3850_v50 = vadd.bf16 1065369472, %v8684_v62  ;;  %v2309_v0 = vadd.f32 %v2308_v18, %v9843_v31  ;;  %v8760_v24 = vpop.f32.mrf.mxu0  ;;  %v9918_v16 = vld [vmem:[#allocation55_spill] sm:$0xff] }
 0x345   : > { %9909 = vst [vmem:[#allocation72_spill] sm:$0xff] %v8737_v15  ;;  %9913 = vst [vmem:[#allocation74_spill] sm:$0xff] %v8747_v36  ;;  %v3852_v61 = vadd.bf16 1065369472, %v8692_v41  ;;  %v2502_v51 = vadd.f32 %v2501_v46, %v9844_v40  ;;  %v2313_v58 = vadd.f32 %v2312_v39, %v9843_v31  ;;  %v2506_v11 = vadd.f32 %v2505_v5, %v9844_v40  ;;  %v8762_v32 = vpop.f32.mrf.mxu1  ;;  %v9919_v10 = vld [vmem:[#allocation23_spill] sm:$0xff]  ;;  %v9920_v41 = vld [vmem:[#allocation24_spill] sm:$0xff] }
 0x346   : > { %9916 = vst [vmem:[#allocation54_spill] sm:$0xff] %v8760_v24  ;;  %9917 = vst [vmem:[#allocation32_spill] sm:$0xff] %v8762_v32  ;;  %v2458_v3 = vadd.f32 %v9919_v10, %v9918_v16  ;;  %v3847_v36 = vadd.bf16 1065369472, %v6310_v42  ;;  %v3849_v62 = vadd.bf16 1065369472, %v6312_v38  ;;  %v2261_v15 = vadd.f32 %v9920_v41, %v9914_v43  ;;  %v2950_v40 = vpop.f32.mrf.mxu0 }
 0x347   : > { %v3851_v27 = vadd.bf16 1065369472, %v6314_v55  ;;  %v9921_v18 = vld [vmem:[#allocation35_spill] sm:$0xff]  ;;  %v8769_v46 = vpack.c.bf16 %v2313_v58, %v2309_v0  ;;  %v8771_v31 = vpack.c.bf16 %v2506_v11, %v2502_v51  ;;  %v9924_v39 = vld [vmem:[#allocation36_spill] sm:$0xff]  ;;  %v3143_v32 = vpop.f32.mrf.mxu1  ;;  %v9925_v24 = vmul.bf16 1056980736, %v8229_v6 }
 0x348   : > { %v3470_v12 = vmul.bf16 1027030327, %v9921_v18  ;;  %v2454_v5 = vadd.f32 %v9924_v39, %v9918_v16  ;;  %v9926_v42 = vmul.bf16 1056980736, %v8231_v45  ;;  %v3853_v55 = vadd.bf16 1065369472, %v6316_v63  ;;  %v2952_v51 = vpop.f32.mrf.mxu0 }
 0x349   : > { %9922 = vst [vmem:[#allocation55_spill] sm:$0xff] %v8769_v46  ;;  %9923 = vst [vmem:[#allocation23_spill] sm:$0xff] %v8771_v31  ;;  %v8777_v10 = vmul.bf16 %v3839_v28, %v9925_v24  ;;  %v9928_v41 = vld [vmem:[#allocation26_spill] sm:$0xff]  ;;  %v8784_v0 = vpack.c.bf16 %v2265_v25, %v2261_v15  ;;  %v9930_v58 = vmul.bf16 1056980736, %v9883_v48  ;;  %v3145_v28 = vpop.f32.mrf.mxu1  ;;  %v8811_v24 = vmul.bf16 %v3849_v62, %v3401_v54  ;;  %v9945_v54 = vld [vmem:[#allocation47_spill] sm:$0xff] }
 0x34a   : > { %v8781_v38 = vmul.bf16 %v3841_v37, %v9926_v42  ;;  %v3472_v52 = vmul.bf16 1027030327, %v9928_v41  ;;  %v9932_v39 = vmul.bf16 1056980736, %v8271_v4  ;;  %v8794_v6 = vpack.c.bf16 %v2458_v3, %v2454_v5  ;;  %v2954_v4 = vpop.f32.mrf.mxu0  ;;  %v9946_v62 = vld [vmem:[#allocation48_spill] sm:$0xff] }
 0x34b   : > { %9929 = vst [vmem:[#allocation35_spill] sm:$0xff] %v8784_v0  ;;  %v8788_v11 = vmul.bf16 %v3848_v9, %v9930_v58  ;;  %v9934_v45 = vmul.bf16 1056980736, %v8273_v56  ;;  %v9936_v63 = vmul.bf16 1056980736, %v9838_v19  ;;  %v3534_v9 = vmul.bf16 %v3470_v12, %v9921_v18  ;;  %9941 = vst [vmem:[#allocation79_spill] sm:$0xff] %v8811_v24  ;;  %v3147_v5 = vpop.f32.mrf.mxu1 }
 0x34c   : > { %9927 = vst [vmem:[#allocation24_spill] sm:$0xff] %v8781_v38  ;;  %v8792_v31 = vmul.bf16 %v3843_v47, %v9932_v39  ;;  %v9938_v25 = vmul.bf16 1056980736, %v9839_v59  ;;  %v8809_v47 = vmul.bf16 %v3847_v36, %v3399_v14  ;;  %v8813_v3 = vmul.bf16 %v3851_v27, %v3403_v34  ;;  %v9943_v56 = vld [vmem:[#allocation29_spill] sm:$0xff]  ;;  %v2956_v34 = vpop.f32.mrf.mxu0 }
 0x34d   : > { %9931 = vst [vmem:[#allocation36_spill] sm:$0xff] %v8788_v11  ;;  %v8798_v37 = vmul.bf16 %v3845_v7, %v9934_v45  ;;  %v8802_v15 = vmul.bf16 %v3850_v50, %v9936_v63  ;;  %v2955_v7 = vadd.f32 %v2954_v4, %v9943_v56  ;;  %v8818_v42 = vmul.bf16 %v3853_v55, %v3405_v22  ;;  %v3149_v22 = vpop.f32.mrf.mxu1  ;;  %v9948_v4 = vld [vmem:[#allocation25_spill] sm:$0xff]  ;;  %v9949_v50 = vld [vmem:[#allocation52_spill] sm:$0xff] }
 0x34e   : > { %9933 = vst [vmem:[#allocation26_spill] sm:$0xff] %v8792_v31  ;;  %v8806_v48 = vmul.bf16 %v3852_v61, %v9938_v25  ;;  %9940 = vst [vmem:[#allocation78_spill] sm:$0xff] %v8809_v47  ;;  %v8821_v59 = vmul.bf16 %v3472_v52, %v9928_v41  ;;  %v3471_v12 = vmul.bf16 1027030327, %v8784_v0  ;;  %v2951_v14 = vadd.f32 %v2950_v40, %v9943_v56  ;;  %v9947_v52 = vld [vmem:[#allocation59_spill] sm:$0xff]  ;;  %v2960_v40 = vpop.f32.mrf.mxu0  ;;  %v9955_v11 = vld [vmem:[#allocation41_spill] sm:$0xff] }
 0x34f   : > { %9935 = vst [vmem:[#allocation75_spill] sm:$0xff] %v8798_v37  ;;  %9937 = vst [vmem:[#allocation76_spill] sm:$0xff] %v8802_v15  ;;  %v3148_v36 = vadd.f32 %v3147_v5, %v9945_v54  ;;  %v3473_v27 = vmul.bf16 1027030327, %v8794_v6  ;;  %v3144_v61 = vadd.f32 %v3143_v32, %v9945_v54  ;;  %v2953_v58 = vadd.f32 %v2952_v51, %v9946_v62  ;;  %v3153_v51 = vpop.f32.mrf.mxu1 }
 0x350   : > { %9939 = vst [vmem:[#allocation77_spill] sm:$0xff] %v8806_v48  ;;  %9942 = vst [vmem:[#allocation80_spill] sm:$0xff] %v8813_v3  ;;  %v2957_v39 = vadd.f32 %v2956_v34, %v9946_v62  ;;  %v3598_v55 = vmul.bf16 %v3534_v9, %v9921_v18  ;;  %v3146_v45 = vadd.f32 %v3145_v28, %v9947_v52  ;;  %v2962_v28 = vpop.f32.mrf.mxu0 }
 0x351   : > { %9944 = vst [vmem:[#allocation29_spill] sm:$0xff] %v8818_v42  ;;  %v3942_v63 = vpack.c.bf16 %v2955_v7, %v2951_v14  ;;  %v3150_v25 = vadd.f32 %v3149_v22, %v9947_v52  ;;  %v2271_v5 = vadd.f32 %v9948_v4, %v9914_v43  ;;  %v2275_v19 = vadd.f32 %v9949_v50, %v9914_v43  ;;  %v9950_v42 = vld [vmem:[#allocation51_spill] sm:$0xff]  ;;  %v9951_v22 = vld [vmem:[#allocation53_spill] sm:$0xff]  ;;  %v3155_v3 = vpop.f32.mrf.mxu1  ;;  %v9952_v50 = vld [vmem:[#allocation30_spill] sm:$0xff] }
 0x352   : > { %v3944_v32 = vpack.c.bf16 %v3148_v36, %v3144_v61  ;;  %v3943_v48 = vpack.c.bf16 %v2957_v39, %v2953_v58  ;;  %v3535_v34 = vmul.bf16 %v3471_v12, %v8784_v0  ;;  %v2464_v9 = vadd.f32 %v9950_v42, %v9918_v16  ;;  %v9953_v58 = vld [vmem:[#allocation40_spill] sm:$0xff]  ;;  %v2964_v39 = vpop.f32.mrf.mxu0  ;;  %v9957_v61 = vld [vmem:[#allocation58_spill] sm:$0xff] }
 0x353   : > { %v3945_v15 = vpack.c.bf16 %v3150_v25, %v3146_v45  ;;  %v3600_v14 = vmul.bf16 %v8821_v59, %v9928_v41  ;;  %v2468_v4 = vadd.f32 %v9951_v22, %v9918_v16  ;;  %v8848_v12 = vmul.bf16 %v3473_v27, %v8794_v6  ;;  %v9954_v45 = vld [vmem:[#allocation50_spill] sm:$0xff] }
 0x354   : > { %v4007_v36 = vmul.bf16 %v3943_v48, %v9952_v50  ;;  %v4006_v42 = vmul.bf16 %v3942_v63, %v9953_v58  ;;  %v3662_v7 = vadd.bf16 %v3598_v55, %v9921_v18  ;;  %v3474_v59 = vmul.bf16 1027030327, %v9955_v11  ;;  %v9956_v22 = vld [vmem:[#allocation38_spill] sm:$0xff]  ;;  %v3157_v50 = vpop.f32.mrf.mxu1 }
 0x355   : > { %v4009_v25 = vmul.bf16 %v3945_v15, %v9954_v45  ;;  %v8854_v24 = vpack.c.bf16 %v2275_v19, %v2271_v5  ;;  %v4008_v47 = vmul.bf16 %v3944_v32, %v9956_v22  ;;  %v2965_v48 = vadd.f32 %v2964_v39, %v9943_v56  ;;  %v2966_v15 = vpop.f32.mrf.mxu0 }
 0x356   : > { %4550 = vmatprep.mubr.bf16.mxu0 %v4007_v36  ;;  %v3476_v27 = vmul.bf16 1027030327, %v9957_v61  ;;  %v2961_v46 = vadd.f32 %v2960_v40, %v9943_v56  ;;  %v3158_v63 = vadd.f32 %v3157_v50, %v9945_v54  ;;  %v3599_v55 = vmul.bf16 %v3535_v34, %v8784_v0  ;;  %v3159_v36 = vpop.f32.mrf.mxu1 }
 0x357   : > { %4743 = vmatprep.mubr.bf16.mxu1 %v4009_v25  ;;  %4551 = vmatmul.mubr.bf16.vlgmr.msra.gmra.mxu0 %v4006_v42  ;;  %v8862_v58 = vpack.c.bf16 %v2468_v4, %v2464_v9  ;;  %v3154_v19 = vadd.f32 %v3153_v51, %v9945_v54  ;;  %v2963_v5 = vadd.f32 %v2962_v28, %v9946_v62  ;;  %v2970_v25 = vpop.f32.mrf.mxu0  ;;  %v3726_v22 = vmul.bf16 1061961548, %v3662_v7  ;;  %v9958_v7 = vld [vmem:[#allocation60_spill] sm:$0xff] }
 0x358   : > { %v2967_v32 = vadd.f32 %v2966_v15, %v9946_v62  ;;  %4744 = vmatmul.mubr.bf16.vlgmr.msra.gmra.mxu1 %v4008_v47  ;;  %v3156_v39 = vadd.f32 %v3155_v3, %v9947_v52  ;;  %v3946_v40 = vpack.c.bf16 %v2965_v48, %v2961_v46  ;;  %v3160_v45 = vadd.f32 %v3159_v36, %v9947_v52  ;;  %v3163_v51 = vpop.f32.mrf.mxu1  ;;  %v9959_v36 = vld [vmem:[#allocation27_spill] sm:$0xff] }
 0x359   : > { %v3538_v42 = vmul.bf16 %v3474_v59, %v9955_v11  ;;  %v3475_v34 = vmul.bf16 1027030327, %v8854_v24  ;;  %v3948_v9 = vpack.c.bf16 %v3158_v63, %v3154_v19  ;;  %v3540_v28 = vmul.bf16 %v3476_v27, %v9957_v61  ;;  %v2972_v15 = vpop.f32.mrf.mxu0  ;;  %v9960_v27 = vld [vmem:[#allocation61_spill] sm:$0xff] }
 0x35a   : > { %v3947_v4 = vpack.c.bf16 %v2967_v32, %v2963_v5  ;;  %v3949_v50 = vpack.c.bf16 %v3160_v45, %v3156_v39  ;;  %v3664_v47 = vadd.bf16 %v3600_v14, %v9928_v41  ;;  %v3477_v3 = vmul.bf16 1027030327, %v8862_v58  ;;  %v3165_v59 = vpop.f32.mrf.mxu1  ;;  %v9961_v5 = vld [vmem:[#allocation37_spill] sm:$0xff] }
 0x35b   : > { %v2281_v48 = vadd.f32 %v9958_v7, %v9914_v43  ;;  %v8880_v63 = vadd.bf16 %v3599_v55, %v8784_v0  ;;  %v2474_v19 = vadd.f32 %v9960_v27, %v9918_v16  ;;  %v4010_v32 = vmul.bf16 %v3946_v40, %v9961_v5  ;;  %v2974_v14 = vpop.f32.mrf.mxu0  ;;  %v9962_v7 = vld [vmem:[#allocation28_spill] sm:$0xff] }
 0x35c   : > { %v4011_v37 = vmul.bf16 %v3947_v4, %v9959_v36  ;;  %v4013_v39 = vmul.bf16 %v3949_v50, %v8560_v44  ;;  %6317 = vtanh.bf16 %v3726_v22  ;;  %v3602_v45 = vmul.bf16 %v3538_v42, %v9955_v11  ;;  %v3167_v55 = vpop.f32.mrf.mxu1 }
 0x35d   : > { %v8888_v46 = vmul.bf16 %v3475_v34, %v8854_v24  ;;  %v4012_v31 = vmul.bf16 %v3948_v9, %v9962_v7  ;;  %v2975_v4 = vadd.f32 %v2974_v14, %v9943_v56  ;;  %v3604_v36 = vmul.bf16 %v3540_v28, %v9957_v61  ;;  %v2976_v44 = vpop.f32.mrf.mxu0  ;;  %v9963_v28 = vld [vmem:[#allocation34_spill] sm:$0xff] }
 0x35e   : > { %4560 = vmatprep.mubr.bf16.mxu0 %v4011_v37  ;;  %v2971_v27 = vadd.f32 %v2970_v25, %v9943_v56  ;;  %v3168_v40 = vadd.f32 %v3167_v55, %v9945_v54  ;;  %4753 = vmatprep.mubr.bf16.mxu1 %v4013_v39  ;;  %v3728_v22 = vmul.bf16 1061961548, %v3664_v47  ;;  %v8896_v42 = vmul.bf16 %v3477_v3, %v8862_v58  ;;  %v3169_v37 = vpop.f32.mrf.mxu1  ;;  %v9964_v3 = vld [vmem:[#allocation31_spill] sm:$0xff] }
 0x35f   : > { %4561 = vmatmul.mubr.bf16.gmra.mxu0 %v4010_v32  ;;  %v3164_v34 = vadd.f32 %v3163_v51, %v9945_v54  ;;  %v2973_v9 = vadd.f32 %v2972_v15, %v9946_v62  ;;  %v2977_v50 = vadd.f32 %v2976_v44, %v9946_v62  ;;  %v2285_v25 = vadd.f32 %v9963_v28, %v9914_v43  ;;  %v2980_v47 = vpop.f32.mrf.mxu0 }
 0x360   : > { %4754 = vmatmul.mubr.bf16.gmra.mxu1 %v4012_v31  ;;  %v3166_v5 = vadd.f32 %v3165_v59, %v9947_v52  ;;  %v3950_v14 = vpack.c.bf16 %v2975_v4, %v2971_v27  ;;  %v3170_v32 = vadd.f32 %v3169_v37, %v9947_v52  ;;  %v2478_v39 = vadd.f32 %v9964_v3, %v9918_v16  ;;  %v3173_v55 = vpop.f32.mrf.mxu1 }
 0x361   : > { %v3952_v7 = vpack.c.bf16 %v3168_v40, %v3164_v34  ;;  %v3951_v51 = vpack.c.bf16 %v2977_v50, %v2973_v9  ;;  %v3666_v15 = vadd.bf16 %v3602_v45, %v9955_v11  ;;  %v3478_v44 = vmul.bf16 1027030327, %v8565_v33  ;;  %v2982_v0 = vpop.f32.mrf.mxu0  ;;  %v9965_v9 = vld [vmem:[#allocation46_spill] sm:$0xff] }
 0x362   : > { %v3953_v31 = vpack.c.bf16 %v3170_v32, %v3166_v5  ;;  %6319 = vtanh.bf16 %v3728_v22  ;;  %v3668_v28 = vadd.bf16 %v3604_v36, %v9957_v61  ;;  %v3480_v59 = vmul.bf16 1027030327, %v8567_v53  ;;  %v3175_v4 = vpop.f32.mrf.mxu1  ;;  %v9966_v36 = vld [vmem:[#allocation49_spill] sm:$0xff] }
 0x363   : > { %v4015_v27 = vmul.bf16 %v3951_v51, %v8595_v30  ;;  %v8914_v34 = vpack.c.bf16 %v2285_v25, %v2281_v48  ;;  %v4014_v45 = vmul.bf16 %v3950_v14, %v9965_v9  ;;  %v2984_v50 = vpop.f32.mrf.mxu0  ;;  %v3727_v22 = vmul.bf16 1061961548, %v8880_v63 }
 0x364   : > { %v4017_v5 = vmul.bf16 %v3953_v31, %v8633_v60  ;;  %v8919_v32 = vpack.c.bf16 %v2478_v39, %v2474_v19  ;;  %v4016_v3 = vmul.bf16 %v3952_v7, %v9966_v36  ;;  %v2985_v38 = vadd.f32 %v2984_v50, %v9943_v56  ;;  %v3177_v30 = vpop.f32.mrf.mxu1 }
 0x365   : > { %4570 = vmatprep.mubr.bf16.mxu0 %v4015_v27  ;;  %v3730_v51 = vmul.bf16 1061961548, %v3666_v15  ;;  %v8924_v40 = vmul.bf16 %v3478_v44, %v8565_v33  ;;  %v2981_v48 = vadd.f32 %v2980_v47, %v9943_v56  ;;  %v3178_v25 = vadd.f32 %v3177_v30, %v9945_v54  ;;  %v2986_v60 = vpop.f32.mrf.mxu0 }
 0x366   : > { %4763 = vmatprep.mubr.bf16.mxu1 %v4017_v5  ;;  %v3732_v63 = vmul.bf16 1061961548, %v3668_v28  ;;  %v8929_v19 = vmul.bf16 %v3480_v59, %v8567_v53  ;;  %v3174_v14 = vadd.f32 %v3173_v55, %v9945_v54  ;;  %v2983_v39 = vadd.f32 %v2982_v0, %v9946_v62  ;;  %v3179_v15 = vpop.f32.mrf.mxu1 }
 0x367   : > { %4571 = vmatmul.mubr.bf16.gmra.mxu0 %v4014_v45  ;;  %v2987_v7 = vadd.f32 %v2986_v60, %v9946_v62  ;;  %v3479_v44 = vmul.bf16 1027030327, %v8914_v34  ;;  %v3176_v47 = vadd.f32 %v3175_v4, %v9947_v52  ;;  %v3954_v31 = vpack.c.bf16 %v2985_v38, %v2981_v48  ;;  %v2990_v9 = vpop.f32.mrf.mxu0  ;;  %v9968_v48 = vld [vmem:[#allocation22_spill] sm:$0xff] }
 0x368   : > { %4764 = vmatmul.mubr.bf16.gmra.mxu1 %v4016_v3  ;;  %v3180_v27 = vadd.f32 %v3179_v15, %v9947_v52  ;;  %v3481_v28 = vmul.bf16 1027030327, %v8919_v32  ;;  %v2291_v59 = vadd.f32 %v8584_v13, %v9914_v43  ;;  %v3956_v55 = vpack.c.bf16 %v3178_v25, %v3174_v14  ;;  %v3183_v0 = vpop.f32.mrf.mxu1 }
 0x369   : > { %v3955_v45 = vpack.c.bf16 %v2987_v7, %v2983_v39  ;;  %v2484_v5 = vadd.f32 %v8586_v21, %v9918_v16  ;;  %v2992_v3 = vpop.f32.mrf.mxu0  ;;  %6321 = vtanh.bf16 %v3730_v51  ;;  %v9967_v38 = vmul.bf16 %v8848_v12, %v8794_v6  ;;  %v9969_v51 = vld [vmem:[#allocation66_spill] sm:$0xff]  ;;  %v9970_v12 = vld [vmem:[#allocation33_spill] sm:$0xff] }
 0x36a   : > { %v8940_v50 = vpop.eup %6317  ;;  %v3957_v36 = vpack.c.bf16 %v3180_v27, %v3176_v47  ;;  %v3606_v30 = vmul.bf16 %v8924_v40, %v8565_v33  ;;  %v3608_v13 = vmul.bf16 %v8929_v19, %v8567_v53  ;;  %v2295_v25 = vadd.f32 %v9968_v48, %v9914_v43  ;;  %v3185_v60 = vpop.f32.mrf.mxu1  ;;  %v9971_v19 = vld [vmem:[#allocation65_spill] sm:$0xff] }
 0x36b   : > { %v3665_v4 = vadd.bf16 %v9967_v38, %v8794_v6  ;;  %v4019_v21 = vmul.bf16 %v3955_v45, %v8660_v8  ;;  %v8956_v14 = vmul.bf16 %v3479_v44, %v8914_v34  ;;  %v2488_v39 = vadd.f32 %v9969_v51, %v9918_v16  ;;  %v2994_v15 = vpop.f32.mrf.mxu0 }
 0x36c   : > { %v4018_v7 = vmul.bf16 %v3954_v31, %v9970_v12  ;;  %v4021_v40 = vmul.bf16 %v3957_v36, %v8679_v2  ;;  %v8963_v47 = vmul.bf16 %v3481_v28, %v8919_v32  ;;  %v4020_v27 = vmul.bf16 %v3956_v55, %v9971_v19  ;;  %v3187_v48 = vpop.f32.mrf.mxu1 }
 0x36d   : > { %v2995_v38 = vadd.f32 %v2994_v15, %v9943_v56  ;;  %4580 = vmatprep.mubr.bf16.mxu0 %v4019_v21  ;;  %6323 = vtanh.bf16 %v3732_v63  ;;  %v2991_v8 = vadd.f32 %v2990_v9, %v9943_v56  ;;  %v3188_v44 = vadd.f32 %v3187_v48, %v9945_v54  ;;  %v2996_v45 = vpop.f32.mrf.mxu0 }
 0x36e   : > { %4773 = vmatprep.mubr.bf16.mxu1 %v4021_v40  ;;  %6325 = vtanh.bf16 %v3727_v22  ;;  %v3729_v31 = vmul.bf16 1061961548, %v3665_v4  ;;  %v8969_v2 = vpack.c.bf16 %v2295_v25, %v2291_v59  ;;  %v3184_v28 = vadd.f32 %v3183_v0, %v9945_v54  ;;  %v3189_v51 = vpop.f32.mrf.mxu1  ;;  %v9972_v59 = vld [vmem:[#allocation67_spill] sm:$0xff] }
 0x36f   : > { %4581 = vmatmul.mubr.bf16.gmra.mxu0 %v4018_v7  ;;  %v2993_v55 = vadd.f32 %v2992_v3, %v9946_v62  ;;  %v2997_v36 = vadd.f32 %v2996_v45, %v9946_v62  ;;  %v8976_v9 = vpack.c.bf16 %v2488_v39, %v2484_v5  ;;  %v3186_v21 = vadd.f32 %v3185_v60, %v9947_v52  ;;  %v3000_v4 = vpop.f32.mrf.mxu0  ;;  %v9973_v7 = vld [vmem:[#allocation68_spill] sm:$0xff] }
 0x370   : > { %4774 = vmatmul.mubr.bf16.gmra.mxu1 %v4020_v27  ;;  %v8974_v63 = vpop.eup %6319  ;;  %v3958_v12 = vpack.c.bf16 %v2995_v38, %v2991_v8  ;;  %v3190_v22 = vadd.f32 %v3189_v51, %v9947_v52  ;;  %v3482_v25 = vmul.bf16 1027030327, %v9972_v59  ;;  %v3484_v0 = vmul.bf16 1027030327, %v9973_v7  ;;  %v3193_v40 = vpop.f32.mrf.mxu1 }
 0x371   : > { %v3960_v15 = vpack.c.bf16 %v3188_v44, %v3184_v28  ;;  %v3959_v3 = vpack.c.bf16 %v2997_v36, %v2993_v55  ;;  %v3002_v48 = vpop.f32.mrf.mxu0  ;;  %6327 = vtanh.bf16 %v3729_v31  ;;  %v3670_v5 = vadd.bf16 %v3606_v30, %v8565_v33  ;;  %v9974_v28 = vld [vmem:[#allocation57_spill] sm:$0xff] }
 0x372   : > { %v3961_v19 = vpack.c.bf16 %v3190_v22, %v3186_v21  ;;  %v3483_v60 = vmul.bf16 1027030327, %v8969_v2  ;;  %v3195_v39 = vpop.f32.mrf.mxu1  ;;  %v8988_v45 = vadd.bf16 %v3608_v13, %v8567_v53  ;;  %v3485_v44 = vmul.bf16 1027030327, %v8976_v9  ;;  %v9975_v21 = vld [vmem:[#allocation39_spill] sm:$0xff] }
 0x373   : > { %v4023_v38 = vmul.bf16 %v3959_v3, %v8706_v26  ;;  %v4022_v55 = vmul.bf16 %v3958_v12, %v9974_v28  ;;  %v3004_v36 = vpop.f32.mrf.mxu0  ;;  %v8996_v51 = vmul.bf16 %v3482_v25, %v9972_v59  ;;  %v8999_v26 = vmul.bf16 %v3484_v0, %v9973_v7  ;;  %v9976_v12 = vld [vmem:[#allocation63_spill] sm:$0xff] }
 0x374   : > { %v4025_v31 = vmul.bf16 %v3961_v19, %v8710_v1  ;;  %v4024_v22 = vmul.bf16 %v3960_v15, %v9975_v21  ;;  %v3005_v13 = vadd.f32 %v3004_v36, %v9943_v56  ;;  %v3197_v3 = vpop.f32.mrf.mxu1  ;;  %v2301_v28 = vadd.f32 %v9976_v12, %v9914_v43 }
 0x375   : > { %4590 = vmatprep.mubr.bf16.mxu0 %v4023_v38  ;;  %v3001_v1 = vadd.f32 %v3000_v4, %v9943_v56  ;;  %v3198_v19 = vadd.f32 %v3197_v3, %v9945_v54  ;;  %v3006_v8 = vpop.f32.mrf.mxu0  ;;  %v3854_v25 = vadd.bf16 1065369472, %v8940_v50  ;;  %v3194_v0 = vadd.f32 %v3193_v40, %v9945_v54  ;;  %v9977_v4 = vld [vmem:[#allocation56_spill] sm:$0xff] }
 0x376   : > { %4783 = vmatprep.mubr.bf16.mxu1 %v4025_v31  ;;  %v3003_v15 = vadd.f32 %v3002_v48, %v9946_v62  ;;  %v3007_v36 = vadd.f32 %v3006_v8, %v9946_v62  ;;  %v3199_v21 = vpop.f32.mrf.mxu1  ;;  %v3856_v38 = vadd.bf16 1065369472, %v8974_v63  ;;  %v2494_v3 = vadd.f32 %v9977_v4, %v9918_v16 }
 0x377   : > { %4591 = vmatmul.mubr.bf16.gmra.mxu0 %v4022_v55  ;;  %v9012_v12 = vpop.eup %6321  ;;  %v3196_v31 = vadd.f32 %v3195_v39, %v9947_v52  ;;  %v3962_v55 = vpack.c.bf16 %v3005_v13, %v3001_v1  ;;  %v3200_v50 = vadd.f32 %v3199_v21, %v9947_v52  ;;  %v3010_v27 = vpop.f32.mrf.mxu0  ;;  %v9019_v40 = vmul.bf16 %v3483_v60, %v8969_v2 }
 0x378   : > { %4784 = vmatmul.mubr.bf16.gmra.mxu1 %v4024_v22  ;;  %v3964_v48 = vpack.c.bf16 %v3198_v19, %v3194_v0  ;;  %v3963_v8 = vpack.c.bf16 %v3007_v36, %v3003_v15  ;;  %v3203_v37 = vpop.f32.mrf.mxu1  ;;  %v3734_v22 = vmul.bf16 1061961548, %v3670_v5  ;;  %v9024_v30 = vmul.bf16 %v3485_v44, %v8976_v9  ;;  %v9979_v19 = vld [vmem:[#allocation42_spill] sm:$0xff] }
 0x379   : > { %v3965_v4 = vpack.c.bf16 %v3200_v50, %v3196_v31  ;;  %v3012_v53 = vpop.f32.mrf.mxu0  ;;  %v9978_v39 = vmul.bf16 1056980736, %v9921_v18  ;;  %v2305_v5 = vadd.f32 %v9979_v19, %v9914_v43  ;;  %v9980_v44 = vmul.bf16 1056980736, %v9928_v41  ;;  %v9981_v18 = vld [vmem:[#allocation69_spill] sm:$0xff] }
 0x37a   : > { %v3205_v0 = vpop.f32.mrf.mxu1  ;;  %v4027_v15 = vmul.bf16 %v3963_v8, %v8727_v17  ;;  %v4026_v31 = vmul.bf16 %v3962_v55, %v8696_v20  ;;  %v3736_v60 = vmul.bf16 1061961548, %v8988_v45  ;;  %v4028_v19 = vmul.bf16 %v3964_v48, %v8700_v29 }
 0x37b   : > { %v9028_v13 = vmul.bf16 %v3854_v25, %v9978_v39  ;;  %v9030_v1 = vpop.eup %6323  ;;  %v9039_v36 = vmul.bf16 %v3856_v38, %v9980_v44  ;;  %v2498_v25 = vadd.f32 %v9981_v18, %v9918_v16  ;;  %v3014_v50 = vpop.f32.mrf.mxu0  ;;  %v4029_v39 = vmul.bf16 %v3965_v4, %v8733_v23  ;;  %v9982_v44 = vld [vmem:[#allocation70_spill] sm:$0xff] }
 0x37c   : > { %v9041_v21 = vpop.eup %6325  ;;  %v3015_v17 = vadd.f32 %v3014_v50, %v9943_v56  ;;  %v3207_v8 = vpop.f32.mrf.mxu1  ;;  %4600 = vmatprep.mubr.bf16.mxu0 %v4027_v15  ;;  %6329 = vtanh.bf16 %v3734_v22  ;;  %v3486_v38 = vmul.bf16 1027030327, %v8686_v49  ;;  %v3488_v18 = vmul.bf16 1027030327, %v9982_v44 }
 0x37d   : > { %v3011_v20 = vadd.f32 %v3010_v27, %v9943_v56  ;;  %v3208_v55 = vadd.f32 %v3207_v8, %v9945_v54  ;;  %4793 = vmatprep.mubr.bf16.mxu1 %v4029_v39  ;;  %v3016_v23 = vpop.f32.mrf.mxu0  ;;  %v9055_v45 = vpack.c.bf16 %v2305_v5, %v2301_v28  ;;  %v3204_v29 = vadd.f32 %v3203_v37, %v9945_v54 }
 0x37e   : > { %v3013_v48 = vadd.f32 %v3012_v53, %v9946_v62  ;;  %v3017_v22 = vadd.f32 %v3016_v23, %v9946_v62  ;;  %v3209_v4 = vpop.f32.mrf.mxu1  ;;  %v9062_v50 = vpack.c.bf16 %v2498_v25, %v2494_v3  ;;  %v3206_v27 = vadd.f32 %v3205_v0, %v9947_v52 }
 0x37f   : > { %4601 = vmatmul.mubr.bf16.gmra.mxu0 %v4026_v31  ;;  %v9060_v15 = vpop.eup %6327  ;;  %v3966_v8 = vpack.c.bf16 %v3015_v17, %v3011_v20  ;;  %v3210_v39 = vadd.f32 %v3209_v4, %v9947_v52  ;;  %v3020_v31 = vpop.f32.mrf.mxu0  ;;  %v3968_v28 = vpack.c.bf16 %v3208_v55, %v3204_v29  ;;  %v3858_v37 = vadd.bf16 1065369472, %v9012_v12  ;;  %v9984_v4 = vld [vmem:[#allocation24_spill] sm:$0xff] }
 0x380   : > { %4794 = vmatmul.mubr.bf16.gmra.mxu1 %v4028_v19  ;;  %v3967_v5 = vpack.c.bf16 %v3017_v22, %v3013_v48  ;;  %v3213_v41 = vpop.f32.mrf.mxu1  ;;  %v9983_v53 = vmul.bf16 %v8888_v46, %v8854_v24  ;;  %v9074_v3 = vmul.bf16 %v3486_v38, %v8686_v49  ;;  %v3605_v20 = vmul.bf16 %v8896_v42, %v8862_v58  ;;  %v9985_v42 = vld [vmem:[#allocation45_spill] sm:$0xff] }
 0x381   : > { %v3969_v25 = vpack.c.bf16 %v3210_v39, %v3206_v27  ;;  %v3022_v0 = vpop.f32.mrf.mxu0  ;;  %v9080_v55 = vmul.bf16 %v3488_v18, %v9982_v44  ;;  %v3487_v12 = vmul.bf16 1027030327, %v9055_v45  ;;  %6331 = vtanh.bf16 %v3736_v60  ;;  %v9986_v39 = vld [vmem:[#allocation71_spill] sm:$0xff] }
 0x382   : > { %v9071_v19 = vadd.bf16 %v9983_v53, %v8854_v24  ;;  %v3215_v23 = vpop.f32.mrf.mxu1  ;;  %v4031_v46 = vmul.bf16 %v3967_v5, %v8777_v10  ;;  %v3489_v29 = vmul.bf16 1027030327, %v9062_v50  ;;  %v2311_v38 = vadd.f32 %v8717_v57, %v9914_v43 }
 0x383   : > { %v4030_v48 = vmul.bf16 %v3966_v8, %v8714_v35  ;;  %v3024_v22 = vpop.f32.mrf.mxu0  ;;  %v4033_v27 = vmul.bf16 %v3969_v25, %v9984_v4  ;;  %v2504_v18 = vadd.f32 %v9985_v42, %v9918_v16  ;;  %v4032_v53 = vmul.bf16 %v3968_v28, %v9986_v39  ;;  %v9989_v25 = vld [vmem:[#allocation54_spill] sm:$0xff] }
 0x384   : > { %v3025_v17 = vadd.f32 %v3024_v22, %v9943_v56  ;;  %v3217_v63 = vpop.f32.mrf.mxu1  ;;  %4610 = vmatprep.mubr.bf16.mxu0 %v4031_v46  ;;  %v9987_v10 = vmul.bf16 1056980736, %v9955_v11  ;;  %v3021_v35 = vadd.f32 %v3020_v31, %v9943_v56  ;;  %v3860_v28 = vadd.bf16 1065369472, %v9030_v1  ;;  %v9990_v31 = vld [vmem:[#allocation32_spill] sm:$0xff] }
 0x385   : > { %v3218_v8 = vadd.f32 %v3217_v63, %v9945_v54  ;;  %4803 = vmatprep.mubr.bf16.mxu1 %v4033_v27  ;;  %v3026_v5 = vpop.f32.mrf.mxu0  ;;  %v2315_v22 = vadd.f32 %v9989_v25, %v9914_v43  ;;  %v3214_v46 = vadd.f32 %v3213_v41, %v9945_v54  ;;  %v3023_v11 = vadd.f32 %v3022_v0, %v9946_v62 }
 0x386   : > { %v9095_v60 = vmul.bf16 %v3858_v37, %v9987_v10  ;;  %v3027_v37 = vadd.f32 %v3026_v5, %v9946_v62  ;;  %v3219_v4 = vpop.f32.mrf.mxu1  ;;  %v2508_v42 = vadd.f32 %v9990_v31, %v9918_v16  ;;  %v3216_v63 = vadd.f32 %v3215_v23, %v9947_v52 }
 0x387   : > { %4611 = vmatmul.mubr.bf16.gmra.mxu0 %v4030_v48  ;;  %v3970_v27 = vpack.c.bf16 %v3025_v17, %v3021_v35  ;;  %v3220_v48 = vadd.f32 %v3219_v4, %v9947_v52  ;;  %v3030_v1 = vpop.f32.mrf.mxu0  ;;  %v3972_v39 = vpack.c.bf16 %v3218_v8, %v3214_v46  ;;  %v3731_v0 = vmul.bf16 1061961548, %v9071_v19  ;;  %v9993_v46 = vld [vmem:[#allocation26_spill] sm:$0xff] }
 0x388   : > { %9988 = vst [vmem:[#allocation47_spill] sm:$0xff] %v9095_v60  ;;  %4804 = vmatmul.mubr.bf16.gmra.mxu1 %v4032_v53  ;;  %v3971_v41 = vpack.c.bf16 %v3027_v37, %v3023_v11  ;;  %v3223_v10 = vpop.f32.mrf.mxu1  ;;  %v9115_v5 = vmul.bf16 %v3487_v12, %v9055_v45  ;;  %v9118_v53 = vmul.bf16 %v3489_v29, %v9062_v50  ;;  %v9991_v17 = vmul.bf16 1056980736, %v9957_v61  ;;  %v9994_v29 = vld [vmem:[#allocation72_spill] sm:$0xff] }
 0x389   : > { %v3973_v16 = vpack.c.bf16 %v3220_v48, %v3216_v63  ;;  %v3032_v23 = vpop.f32.mrf.mxu0  ;;  %v9126_v4 = vpack.c.bf16 %v2315_v22, %v2311_v38  ;;  %v3855_v19 = vadd.bf16 1065369472, %v9041_v21  ;;  %v3857_v12 = vadd.bf16 1065369472, %v9060_v15  ;;  %v9995_v48 = vld [vmem:[#allocation75_spill] sm:$0xff]  ;;  %v9997_v38 = vld [vmem:[#allocation73_spill] sm:$0xff] }
 0x38a   : > { %v9122_v35 = vmul.bf16 %v3860_v28, %v9991_v17  ;;  %v9124_v25 = vpop.eup %6329  ;;  %v3225_v8 = vpop.f32.mrf.mxu1  ;;  %v4035_v11 = vmul.bf16 %v3971_v41, %v9993_v46  ;;  %v9131_v37 = vpack.c.bf16 %v2508_v42, %v2504_v18  ;;  %v4034_v31 = vmul.bf16 %v3970_v27, %v9994_v29  ;;  %v9996_v17 = vld [vmem:[#allocation55_spill] sm:$0xff] }
 0x38b   : > { %v3034_v63 = vpop.f32.mrf.mxu0  ;;  %v4037_v61 = vmul.bf16 %v3973_v16, %v9995_v48  ;;  %v3669_v28 = vadd.bf16 %v3605_v20, %v8862_v58  ;;  %v3490_v43 = vmul.bf16 1027030327, %v9996_v17  ;;  %v4036_v22 = vmul.bf16 %v3972_v39, %v9997_v38  ;;  %v9998_v21 = vld [vmem:[#allocation23_spill] sm:$0xff] }
 0x38c   : > { %9992 = vst [vmem:[#allocation48_spill] sm:$0xff] %v9122_v35  ;;  %v3035_v57 = vadd.f32 %v3034_v63, %v9943_v56  ;;  %v3227_v41 = vpop.f32.mrf.mxu1  ;;  %4620 = vmatprep.mubr.bf16.mxu0 %v4035_v11  ;;  %6333 = vtanh.bf16 %v3731_v0  ;;  %v3492_v15 = vmul.bf16 1027030327, %v9998_v21  ;;  %v3031_v18 = vadd.f32 %v3030_v1, %v9943_v56 }
 0x38d   : > { %v3228_v42 = vadd.f32 %v3227_v41, %v9945_v54  ;;  %4813 = vmatprep.mubr.bf16.mxu1 %v4037_v61  ;;  %v3036_v27 = vpop.f32.mrf.mxu0  ;;  %v3607_v20 = vmul.bf16 %v8956_v14, %v8914_v34  ;;  %v3491_v16 = vmul.bf16 1027030327, %v9126_v4  ;;  %v3224_v39 = vadd.f32 %v3223_v10, %v9945_v54 }
 0x38e   : > { %v3033_v46 = vadd.f32 %v3032_v23, %v9946_v62  ;;  %v3037_v0 = vadd.f32 %v3036_v27, %v9946_v62  ;;  %v3229_v11 = vpop.f32.mrf.mxu1  ;;  %v3493_v1 = vmul.bf16 1027030327, %v9131_v37  ;;  %v3226_v29 = vadd.f32 %v3225_v8, %v9947_v52 }
 0x38f   : > { %4621 = vmatmul.mubr.bf16.gmra.mxu0 %v4034_v31  ;;  %v3974_v63 = vpack.c.bf16 %v3035_v57, %v3031_v18  ;;  %v3230_v31 = vadd.f32 %v3229_v11, %v9947_v52  ;;  %v3040_v48 = vpop.f32.mrf.mxu0  ;;  %v9151_v61 = vpop.eup %6331  ;;  %v3976_v14 = vpack.c.bf16 %v3228_v42, %v3224_v39  ;;  %v3733_v10 = vmul.bf16 1061961548, %v3669_v28  ;;  %v10004_v11 = vld [vmem:[#allocation79_spill] sm:$0xff] }
 0x390   : > { %4814 = vmatmul.mubr.bf16.gmra.mxu1 %v4036_v22  ;;  %v3975_v38 = vpack.c.bf16 %v3037_v0, %v3033_v46  ;;  %v3233_v41 = vpop.f32.mrf.mxu1  ;;  %v3609_v23 = vmul.bf16 %v8963_v47, %v8919_v32  ;;  %v9999_v22 = vld [vmem:[#allocation35_spill] sm:$0xff]  ;;  %v10001_v57 = vmul.bf16 1056980736, %v8794_v6  ;;  %v3671_v18 = vadd.bf16 %v3607_v20, %v8914_v34  ;;  %v10002_v47 = vld [vmem:[#allocation78_spill] sm:$0xff] }
 0x391   : > { %v3977_v27 = vpack.c.bf16 %v3230_v31, %v3226_v29  ;;  %v3042_v33 = vpop.f32.mrf.mxu0  ;;  %v10000_v35 = vmul.bf16 1056980736, %v9999_v22  ;;  %v9165_v42 = vmul.bf16 %v3490_v43, %v9996_v17  ;;  %v9168_v28 = vmul.bf16 %v3492_v15, %v9998_v21  ;;  %v10005_v29 = vld [vmem:[#allocation36_spill] sm:$0xff] }
 0x392   : > { %v9161_v8 = vmul.bf16 %v3857_v12, %v10001_v57  ;;  %v3235_v39 = vpop.f32.mrf.mxu1  ;;  %v4039_v46 = vmul.bf16 %v3975_v38, %v10002_v47  ;;  %v9176_v6 = vmul.bf16 %v3493_v1, %v9131_v37  ;;  %v4040_v31 = vmul.bf16 %v3976_v14, %v10005_v29 }
 0x393   : > { %v9157_v60 = vmul.bf16 %v3855_v19, %v10000_v35  ;;  %v9173_v35 = vmul.bf16 %v3491_v16, %v9126_v4  ;;  %v10003_v19 = vld [vmem:[#allocation74_spill] sm:$0xff]  ;;  %v3044_v20 = vpop.f32.mrf.mxu0  ;;  %v4041_v43 = vmul.bf16 %v3977_v27, %v10004_v11  ;;  %6335 = vtanh.bf16 %v3733_v10 }
 0x394   : > { %v4038_v12 = vmul.bf16 %v3974_v63, %v10003_v19  ;;  %v3045_v15 = vadd.f32 %v3044_v20, %v9943_v56  ;;  %v3237_v22 = vpop.f32.mrf.mxu1  ;;  %4630 = vmatprep.mubr.bf16.mxu0 %v4039_v46  ;;  %v3673_v38 = vadd.bf16 %v3609_v23, %v8919_v32  ;;  %v3041_v16 = vadd.f32 %v3040_v48, %v9943_v56 }
 0x395   : > { %v3238_v57 = vadd.f32 %v3237_v22, %v9945_v54  ;;  %4823 = vmatprep.mubr.bf16.mxu1 %v4041_v43  ;;  %v3046_v1 = vpop.f32.mrf.mxu0  ;;  %v10006_v63 = vmul.bf16 %v8996_v51, %v9972_v59  ;;  %v3735_v14 = vmul.bf16 1061961548, %v3671_v18  ;;  %v3234_v47 = vadd.f32 %v3233_v41, %v9945_v54 }
 0x396   : > { %v3043_v10 = vadd.f32 %v3042_v33, %v9946_v62  ;;  %v3047_v23 = vadd.f32 %v3046_v1, %v9946_v62  ;;  %v3239_v46 = vpop.f32.mrf.mxu1  ;;  %v10007_v48 = vmul.bf16 %v8999_v26, %v9973_v7  ;;  %v3978_v51 = vpack.c.bf16 %v3045_v15, %v3041_v16 }
 0x397   : > { %4631 = vmatmul.mubr.bf16.gmra.mxu0 %v4038_v12  ;;  %v9189_v27 = vadd.bf16 %v10006_v63, %v9972_v59  ;;  %v3236_v12 = vadd.f32 %v3235_v39, %v9947_v52  ;;  %v3240_v20 = vadd.f32 %v3239_v46, %v9947_v52  ;;  %v3050_v18 = vpop.f32.mrf.mxu0  ;;  %v3611_v41 = vmul.bf16 %v9019_v40, %v8969_v2  ;;  %v10008_v63 = vld [vmem:[#allocation80_spill] sm:$0xff]  ;;  %v10010_v46 = vld [vmem:[#allocation29_spill] sm:$0xff] }
 0x398   : > { %4824 = vmatmul.mubr.bf16.gmra.mxu1 %v4040_v31  ;;  %v9198_v19 = vadd.bf16 %v10007_v48, %v9973_v7  ;;  %v3980_v33 = vpack.c.bf16 %v3238_v57, %v3234_v47  ;;  %v3979_v11 = vpack.c.bf16 %v3047_v23, %v3043_v10  ;;  %v3243_v43 = vpop.f32.mrf.mxu1  ;;  %v3737_v29 = vmul.bf16 1061961548, %v3673_v38 }
 0x399   : > { %v3613_v31 = vmul.bf16 %v9024_v30, %v8976_v9  ;;  %v3618_v26 = vmul.bf16 %v9165_v42, %v9996_v17  ;;  %v3981_v15 = vpack.c.bf16 %v3240_v20, %v3236_v12  ;;  %v3052_v22 = vpop.f32.mrf.mxu0  ;;  %6337 = vtanh.bf16 %v3735_v14  ;;  %v10009_v30 = vld [vmem:[#allocation76_spill] sm:$0xff]  ;;  %v10011_v14 = vld [vmem:[#allocation77_spill] sm:$0xff] }
 0x39a   : > { %v6334_v16 = vpop.eup %6333  ;;  %v3245_v1 = vpop.f32.mrf.mxu1  ;;  %v4043_v40 = vmul.bf16 %v3979_v11, %v10008_v63  ;;  %v3862_v57 = vadd.bf16 1065369472, %v9124_v25  ;;  %v3864_v38 = vadd.bf16 1065369472, %v9151_v61  ;;  %v3738_v47 = vmul.bf16 1061961548, %v9189_v27 }
 0x39b   : > { %v4042_v10 = vmul.bf16 %v3978_v51, %v10009_v30  ;;  %v3054_v23 = vpop.f32.mrf.mxu0  ;;  %v4045_v48 = vmul.bf16 %v3981_v15, %v10010_v46  ;;  %v3740_v0 = vmul.bf16 1061961548, %v9198_v19  ;;  %v3675_v12 = vadd.bf16 %v3611_v41, %v8969_v2 }
 0x39c   : > { %v4044_v20 = vmul.bf16 %v3980_v33, %v10011_v14  ;;  %v3055_v39 = vadd.f32 %v3054_v23, %v9943_v56  ;;  %v3247_v11 = vpop.f32.mrf.mxu1  ;;  %4640 = vmatprep.mubr.bf16.mxu0 %v4043_v40  ;;  %6339 = vtanh.bf16 %v3737_v29  ;;  %v3677_v63 = vadd.bf16 %v3613_v31, %v8976_v9 }
 0x39d   : > { %v3051_v27 = vadd.f32 %v3050_v18, %v9943_v56  ;;  %v3248_v51 = vadd.f32 %v3247_v11, %v9945_v54  ;;  %4833 = vmatprep.mubr.bf16.mxu1 %v4045_v48  ;;  %v3056_v30 = vpop.f32.mrf.mxu0  ;;  %v3859_v15 = vadd.bf16 1065369472, %v6334_v16  ;;  %v10012_v19 = vmul.bf16 %v9074_v3, %v8686_v49 }
 0x39e   : > { %v3244_v33 = vadd.f32 %v3243_v43, %v9945_v54  ;;  %v3053_v29 = vadd.f32 %v3052_v22, %v9946_v62  ;;  %v3057_v31 = vadd.f32 %v3056_v30, %v9946_v62  ;;  %v3249_v40 = vpop.f32.mrf.mxu1  ;;  %v3615_v18 = vmul.bf16 %v9115_v5, %v9055_v45 }
 0x39f   : > { %4641 = vmatmul.mubr.bf16.gmra.mxu0 %v4042_v10  ;;  %v9227_v41 = vadd.bf16 %v10012_v19, %v8686_v49  ;;  %v3246_v10 = vadd.f32 %v3245_v1, %v9947_v52  ;;  %v3982_v16 = vpack.c.bf16 %v3055_v39, %v3051_v27  ;;  %v3250_v23 = vadd.f32 %v3249_v40, %v9947_v52  ;;  %v3060_v46 = vpop.f32.mrf.mxu0 }
 0x3a0   : > { %4834 = vmatmul.mubr.bf16.gmra.mxu1 %v4044_v20  ;;  %v3739_v3 = vmul.bf16 1061961548, %v3675_v12  ;;  %v3984_v48 = vpack.c.bf16 %v3248_v51, %v3244_v33  ;;  %v3983_v14 = vpack.c.bf16 %v3057_v31, %v3053_v29  ;;  %v3253_v11 = vpop.f32.mrf.mxu1  ;;  %v3741_v43 = vmul.bf16 1061961548, %v3677_v63 }
 0x3a1   : > { %v3617_v22 = vmul.bf16 %v9118_v53, %v9062_v50  ;;  %v3985_v30 = vpack.c.bf16 %v3250_v23, %v3246_v10  ;;  %v3062_v19 = vpop.f32.mrf.mxu0  ;;  %6341 = vtanh.bf16 %v3738_v47  ;;  %v3415_v20 = vmul.bf16 1056980736, %v8914_v34  ;;  %v6336_v1 = vpop.eup %6335 }
 0x3a2   : > { %v10013_v5 = vmul.bf16 %v9080_v55, %v9982_v44  ;;  %v3255_v27 = vpop.f32.mrf.mxu1  ;;  %v4047_v12 = vmul.bf16 %v3983_v14, %v9157_v60  ;;  %6343 = vtanh.bf16 %v3740_v0  ;;  %v3742_v63 = vmul.bf16 1061961548, %v9227_v41 }
 0x3a3   : > { %v3679_v51 = vadd.bf16 %v3615_v18, %v9055_v45  ;;  %v4046_v53 = vmul.bf16 %v3982_v16, %v9028_v13  ;;  %v3064_v33 = vpop.f32.mrf.mxu0  ;;  %v4049_v47 = vmul.bf16 %v3985_v30, %v9161_v8  ;;  %v10014_v29 = vmul.bf16 1056980736, %v8854_v24 }
 0x3a4   : > { %v3680_v39 = vadd.bf16 %v10013_v5, %v9982_v44  ;;  %6345 = vtanh.bf16 %v3739_v3  ;;  %v4048_v55 = vmul.bf16 %v3984_v48, %v9039_v36  ;;  %v3065_v40 = vadd.f32 %v3064_v33, %v9943_v56  ;;  %v3257_v10 = vpop.f32.mrf.mxu1  ;;  %4650 = vmatprep.mubr.bf16.mxu0 %v4047_v12 }
 0x3a5   : > { %v3923_v31 = vmul.bf16 %v3859_v15, %v10014_v29  ;;  %6347 = vtanh.bf16 %v3741_v43  ;;  %v3681_v60 = vadd.bf16 %v3617_v22, %v9062_v50  ;;  %v3061_v0 = vadd.f32 %v3060_v46, %v9943_v56  ;;  %4843 = vmatprep.mubr.bf16.mxu1 %v4049_v47  ;;  %v3066_v41 = vpop.f32.mrf.mxu0 }
 0x3a6   : > { %v3258_v13 = vadd.f32 %v3257_v10, %v9945_v54  ;;  %v3861_v8 = vadd.bf16 1065369472, %v6336_v1  ;;  %v3744_v24 = vmul.bf16 1061961548, %v3680_v39  ;;  %v3254_v15 = vadd.f32 %v3253_v11, %v9945_v54  ;;  %v3259_v16 = vpop.f32.mrf.mxu1 }
 0x3a7   : > { %4651 = vmatmul.mubr.bf16.gmra.mxu0 %v4046_v53  ;;  %v3063_v36 = vadd.f32 %v3062_v19, %v9946_v62  ;;  %v3067_v18 = vadd.f32 %v3066_v41, %v9946_v62  ;;  %v3743_v23 = vmul.bf16 1061961548, %v3679_v51  ;;  %v6338_v3 = vpop.eup %6337  ;;  %v3256_v48 = vadd.f32 %v3255_v27, %v9947_v52  ;;  %v3070_v43 = vpop.f32.mrf.mxu0 }
 0x3a8   : > { %4844 = vmatmul.mubr.bf16.gmra.mxu1 %v4048_v55  ;;  %v3986_v46 = vpack.c.bf16 %v3065_v40, %v3061_v0  ;;  %v3260_v14 = vadd.f32 %v3259_v16, %v9947_v52  ;;  %v3619_v22 = vmul.bf16 %v9173_v35, %v9126_v4  ;;  %v3988_v30 = vpack.c.bf16 %v3258_v13, %v3254_v15  ;;  %v3263_v11 = vpop.f32.mrf.mxu1  ;;  %v10016_v40 = vld [vmem:[#allocation47_spill] sm:$0xff]  ;;  %v10017_v0 = vld [vmem:[#allocation48_spill] sm:$0xff] }
 0x3a9   : > { %v3987_v5 = vpack.c.bf16 %v3067_v18, %v3063_v36  ;;  %v3745_v39 = vmul.bf16 1061961548, %v3681_v60  ;;  %v3621_v19 = vmul.bf16 %v9176_v6, %v9131_v37  ;;  %v3072_v12 = vpop.f32.mrf.mxu0  ;;  %v10015_v51 = vmul.bf16 1056980736, %v8862_v58 }
 0x3aa   : > { %v3989_v1 = vpack.c.bf16 %v3260_v14, %v3256_v48  ;;  %v3417_v27 = vmul.bf16 1056980736, %v8919_v32  ;;  %6349 = vtanh.bf16 %v3742_v63  ;;  %v6340_v33 = vpop.eup %6339  ;;  %v3265_v47 = vpop.f32.mrf.mxu1  ;;  %v3863_v55 = vadd.bf16 1065369472, %v6338_v3 }
 0x3ab   : > { %v3925_v53 = vmul.bf16 %v3861_v8, %v10015_v51  ;;  %v4051_v29 = vmul.bf16 %v3987_v5, %v3923_v31  ;;  %6351 = vtanh.bf16 %v3744_v24  ;;  %v3682_v35 = vadd.bf16 %v3618_v26, %v9996_v17  ;;  %v3074_v10 = vpop.f32.mrf.mxu0  ;;  %v10019_v51 = vld [vmem:[#allocation62_spill] sm:$0xff] }
 0x3ac   : > { %v4050_v6 = vmul.bf16 %v3986_v46, %v10016_v40  ;;  %6353 = vtanh.bf16 %v3743_v23  ;;  %v3683_v58 = vadd.bf16 %v3619_v22, %v9126_v4  ;;  %v4052_v32 = vmul.bf16 %v3988_v30, %v10017_v0  ;;  %v3267_v13 = vpop.f32.mrf.mxu1 }
 0x3ad   : > { %v4053_v60 = vmul.bf16 %v3989_v1, %v3925_v53  ;;  %v3075_v63 = vadd.f32 %v3074_v10, %v9943_v56  ;;  %4660 = vmatprep.mubr.bf16.mxu0 %v4051_v29  ;;  %6355 = vtanh.bf16 %v3745_v39  ;;  %v3685_v31 = vadd.bf16 %v3621_v19, %v9131_v37  ;;  %v3076_v26 = vpop.f32.mrf.mxu0  ;;  %v10021_v10 = vld [vmem:[#allocation64_spill] sm:$0xff] }
 0x3ae   : > { %v3071_v41 = vadd.f32 %v3070_v43, %v9943_v56  ;;  %v3268_v42 = vadd.f32 %v3267_v13, %v9945_v54  ;;  %v3865_v8 = vadd.bf16 1065369472, %v6340_v33  ;;  %v10018_v24 = vmul.bf16 %v9168_v28, %v9998_v21  ;;  %v3269_v23 = vpop.f32.mrf.mxu1 }
 0x3af   : > { %4853 = vmatprep.mubr.bf16.mxu1 %v4053_v60  ;;  %4661 = vmatmul.mubr.bf16.gmra.mxu0 %v4050_v6  ;;  %v3264_v36 = vadd.f32 %v3263_v11, %v9945_v54  ;;  %v3073_v18 = vadd.f32 %v3072_v12, %v9946_v62  ;;  %v3077_v16 = vadd.f32 %v3076_v26, %v9946_v62  ;;  %v3746_v3 = vmul.bf16 1061961548, %v3682_v35  ;;  %v6342_v48 = vpop.eup %6341  ;;  %v3080_v22 = vpop.f32.mrf.mxu0 }
 0x3b0   : > { %v3684_v15 = vadd.bf16 %v10018_v24, %v9998_v21  ;;  %4854 = vmatmul.mubr.bf16.gmra.mxu1 %v4052_v32  ;;  %v3266_v46 = vadd.f32 %v3265_v47, %v9947_v52  ;;  %v3990_v14 = vpack.c.bf16 %v3075_v63, %v3071_v41  ;;  %v3270_v43 = vadd.f32 %v3269_v23, %v9947_v52  ;;  %v6344_v5 = vpop.eup %6343  ;;  %v3273_v19 = vpop.f32.mrf.mxu1 }
 0x3b1   : > { %v3747_v30 = vmul.bf16 1061961548, %v3683_v58  ;;  %v3992_v28 = vpack.c.bf16 %v3268_v42, %v3264_v36  ;;  %v3991_v39 = vpack.c.bf16 %v3077_v16, %v3073_v18  ;;  %v3927_v11 = vmul.bf16 %v3863_v55, %v3415_v20  ;;  %v3082_v29 = vpop.f32.mrf.mxu0 }
 0x3b2   : > { %v3749_v1 = vmul.bf16 1061961548, %v3685_v31  ;;  %v6346_v12 = vpop.eup %6345  ;;  %v10020_v53 = vmul.bf16 1056980736, %v10019_v51  ;;  %v3993_v47 = vpack.c.bf16 %v3270_v43, %v3266_v46  ;;  %v3929_v35 = vmul.bf16 %v3865_v8, %v3417_v27  ;;  %v3275_v0 = vpop.f32.mrf.mxu1 }
 0x3b3   : > { %v3748_v40 = vmul.bf16 1061961548, %v3684_v15  ;;  %v6348_v6 = vpop.eup %6347  ;;  %v10022_v60 = vmul.bf16 1056980736, %v10021_v10  ;;  %v4055_v34 = vmul.bf16 %v3991_v39, %v3927_v11  ;;  %v3419_v20 = vmul.bf16 1056980736, %v8969_v2  ;;  %v3084_v32 = vpop.f32.mrf.mxu0 }
 0x3b4   : > { %v3926_v33 = vmul.bf16 %v3862_v57, %v10020_v53  ;;  %6357 = vtanh.bf16 %v3746_v3  ;;  %v3866_v63 = vadd.bf16 1065369472, %v6342_v48  ;;  %v4057_v25 = vmul.bf16 %v3993_v47, %v3929_v35  ;;  %v3277_v13 = vpop.f32.mrf.mxu1 }
 0x3b5   : > { %v3928_v58 = vmul.bf16 %v3864_v38, %v10022_v60  ;;  %6359 = vtanh.bf16 %v3747_v30  ;;  %v3085_v27 = vadd.f32 %v3084_v32, %v9943_v56  ;;  %4670 = vmatprep.mubr.bf16.mxu0 %v4055_v34  ;;  %v3867_v31 = vadd.bf16 1065369472, %v6346_v12  ;;  %v3086_v41 = vpop.f32.mrf.mxu0 }
 0x3b6   : > { %v4054_v55 = vmul.bf16 %v3990_v14, %v3926_v33  ;;  %6361 = vtanh.bf16 %v3749_v1  ;;  %v3081_v61 = vadd.f32 %v3080_v22, %v9943_v56  ;;  %v3278_v38 = vadd.f32 %v3277_v13, %v9945_v54  ;;  %4863 = vmatprep.mubr.bf16.mxu1 %v4057_v25  ;;  %v3279_v15 = vpop.f32.mrf.mxu1 }
 0x3b7   : > { %v4056_v57 = vmul.bf16 %v3992_v28, %v3928_v58  ;;  %v3869_v2 = vadd.bf16 1065369472, %v6348_v6  ;;  %6363 = vtanh.bf16 %v3748_v40  ;;  %v3274_v42 = vadd.f32 %v3273_v19, %v9945_v54  ;;  %v3090_v3 = vpop.f32.mrf.mxu0 }
 0x3b8   : > { %4671 = vmatmul.mubr.bf16.gmra.mxu0 %v4054_v55  ;;  %v3083_v26 = vadd.f32 %v3082_v29, %v9946_v62  ;;  %v3868_v8 = vadd.bf16 1065369472, %v6344_v5  ;;  %v3087_v24 = vadd.f32 %v3086_v41, %v9946_v62  ;;  %v6350_v36 = vpop.eup %6349  ;;  %v3276_v18 = vadd.f32 %v3275_v0, %v9947_v52  ;;  %v3283_v30 = vpop.f32.mrf.mxu1 }
 0x3b9   : > { %4864 = vmatmul.mubr.bf16.gmra.mxu1 %v4056_v57  ;;  %v3994_v16 = vpack.c.bf16 %v3085_v27, %v3081_v61  ;;  %v3280_v23 = vadd.f32 %v3279_v15, %v9947_v52  ;;  %v3421_v48 = vmul.bf16 1056980736, %v8976_v9  ;;  %v6352_v46 = vpop.eup %6351  ;;  %v3420_v14 = vmul.bf16 1056980736, %v9973_v7  ;;  %v3092_v1 = vpop.f32.mrf.mxu0 }
 0x3ba   : > { %v3996_v43 = vpack.c.bf16 %v3278_v38, %v3274_v42  ;;  %v3995_v22 = vpack.c.bf16 %v3087_v24, %v3083_v26  ;;  %v3931_v5 = vmul.bf16 %v3867_v31, %v3419_v20  ;;  %v6354_v28 = vpop.eup %6353  ;;  %v10023_v39 = vmul.bf16 1056980736, %v9972_v59  ;;  %v3285_v33 = vpop.f32.mrf.mxu1 }
 0x3bb   : > { %v3997_v11 = vpack.c.bf16 %v3280_v23, %v3276_v18  ;;  %v3933_v12 = vmul.bf16 %v3869_v2, %v3421_v48  ;;  %v6356_v51 = vpop.eup %6355  ;;  %v3932_v53 = vmul.bf16 %v3868_v8, %v3420_v14  ;;  %v3094_v9 = vpop.f32.mrf.mxu0  ;;  %v3422_v35 = vmul.bf16 1056980736, %v8686_v49 }
 0x3bc   : > { %v3930_v19 = vmul.bf16 %v3866_v63, %v10023_v39  ;;  %v4059_v47 = vmul.bf16 %v3995_v22, %v3931_v5  ;;  %v3095_v6 = vadd.f32 %v3094_v9, %v9943_v56  ;;  %v3287_v10 = vpop.f32.mrf.mxu1  ;;  %v3423_v59 = vmul.bf16 1056980736, %v9055_v45 }
 0x3bd   : > { %v4061_v7 = vmul.bf16 %v3997_v11, %v3933_v12  ;;  %v4060_v40 = vmul.bf16 %v3996_v43, %v3932_v53  ;;  %v3871_v60 = vadd.bf16 1065369472, %v6354_v28  ;;  %v3091_v58 = vadd.f32 %v3090_v3, %v9943_v56  ;;  %v3096_v20 = vpop.f32.mrf.mxu0 }
 0x3be   : > { %v4058_v29 = vmul.bf16 %v3994_v16, %v3930_v19  ;;  %4680 = vmatprep.mubr.bf16.mxu0 %v4059_v47  ;;  %v3870_v0 = vadd.bf16 1065369472, %v6350_v36  ;;  %v3288_v34 = vadd.f32 %v3287_v10, %v9945_v54  ;;  %v3873_v55 = vadd.bf16 1065369472, %v6356_v51  ;;  %v3289_v57 = vpop.f32.mrf.mxu1 }
 0x3bf   : > { %4873 = vmatprep.mubr.bf16.mxu1 %v4061_v7  ;;  %v3284_v49 = vadd.f32 %v3283_v30, %v9945_v54  ;;  %v3093_v32 = vadd.f32 %v3092_v1, %v9946_v62  ;;  %v3872_v63 = vadd.bf16 1065369472, %v6352_v46  ;;  %v3097_v25 = vadd.f32 %v3096_v20, %v9946_v62  ;;  %v3100_v31 = vpop.f32.mrf.mxu0 }
 0x3c0   : > { %4681 = vmatmul.mubr.bf16.gmra.mxu0 %v4058_v29  ;;  %v3286_v45 = vadd.f32 %v3285_v33, %v9947_v52  ;;  %v3998_v27 = vpack.c.bf16 %v3095_v6, %v3091_v58  ;;  %v3290_v13 = vadd.f32 %v3289_v57, %v9947_v52  ;;  %v3425_v61 = vmul.bf16 1056980736, %v9062_v50  ;;  %v3293_v26 = vpop.f32.mrf.mxu1  ;;  %v10025_v57 = vld [vmem:[#allocation43_spill] sm:$0xff] }
 0x3c1   : > { %4874 = vmatmul.mubr.bf16.gmra.mxu1 %v4060_v40  ;;  %v3424_v41 = vmul.bf16 1056980736, %v9982_v44  ;;  %v4000_v2 = vpack.c.bf16 %v3288_v34, %v3284_v49  ;;  %v3999_v42 = vpack.c.bf16 %v3097_v25, %v3093_v32  ;;  %v3935_v8 = vmul.bf16 %v3871_v60, %v3423_v59  ;;  %v3102_v18 = vpop.f32.mrf.mxu0 }
 0x3c2   : > { %v6358_v38 = vpop.eup %6357  ;;  %v3934_v15 = vmul.bf16 %v3870_v0, %v3422_v35  ;;  %v4001_v36 = vpack.c.bf16 %v3290_v13, %v3286_v45  ;;  %v3937_v16 = vmul.bf16 %v3873_v55, %v3425_v61  ;;  %v3295_v48 = vpop.f32.mrf.mxu1  ;;  %v3426_v50 = vmul.bf16 1056980736, %v9996_v17 }
 0x3c3   : > { %v6360_v24 = vpop.eup %6359  ;;  %v3936_v3 = vmul.bf16 %v3872_v63, %v3424_v41  ;;  %v4063_v46 = vmul.bf16 %v3999_v42, %v3935_v8  ;;  %v3104_v22 = vpop.f32.mrf.mxu0  ;;  %v3427_v39 = vmul.bf16 1056980736, %v9126_v4  ;;  %v3101_v11 = vadd.f32 %v3100_v31, %v9943_v56 }
 0x3c4   : > { %v6362_v23 = vpop.eup %6361  ;;  %v4062_v43 = vmul.bf16 %v3998_v27, %v3934_v15  ;;  %v4065_v30 = vmul.bf16 %v4001_v36, %v3937_v16  ;;  %v3105_v5 = vadd.f32 %v3104_v22, %v9943_v56  ;;  %v3297_v28 = vpop.f32.mrf.mxu1  ;;  %v3875_v19 = vadd.bf16 1065369472, %v6360_v24 }
 0x3c5   : > { %v6364_v14 = vpop.eup %6363  ;;  %v4064_v44 = vmul.bf16 %v4000_v2, %v3936_v3  ;;  %4690 = vmatprep.mubr.bf16.mxu0 %v4063_v46  ;;  %v3874_v1 = vadd.bf16 1065369472, %v6358_v38  ;;  %v3298_v12 = vadd.f32 %v3297_v28, %v9945_v54  ;;  %v3106_v51 = vpop.f32.mrf.mxu0  ;;  %v3877_v53 = vadd.bf16 1065369472, %v6362_v23 }
 0x3c6   : > { %4883 = vmatprep.mubr.bf16.mxu1 %v4065_v30  ;;  %v3294_v17 = vadd.f32 %v3293_v26, %v9945_v54  ;;  %v3103_v33 = vadd.f32 %v3102_v18, %v9946_v62  ;;  %v3876_v47 = vadd.bf16 1065369472, %v6364_v14  ;;  %v3107_v29 = vadd.f32 %v3106_v51, %v9946_v62  ;;  %v3299_v9 = vpop.f32.mrf.mxu1 }
 0x3c7   : > { %v3296_v4 = vadd.f32 %v3295_v48, %v9947_v52  ;;  %v4002_v35 = vpack.c.bf16 %v3105_v5, %v3101_v11  ;;  %v3300_v56 = vadd.f32 %v3299_v9, %v9947_v52  ;;  %v3429_v7 = vmul.bf16 1056980736, %v9131_v37  ;;  %v5099_v52 = vld [vmem:[%s9538_s8] sm:$0x3] }
 0x3c8   : > { %4691 = vmatmul.mubr.bf16.gmra.mxu0 %v4062_v43  ;;  %v3428_v40 = vmul.bf16 1056980736, %v9998_v21  ;;  %v4004_v6 = vpack.c.bf16 %v3298_v12, %v3294_v17  ;;  %v4003_v10 = vpack.c.bf16 %v3107_v29, %v3103_v33  ;;  %v3939_v59 = vmul.bf16 %v3875_v19, %v3427_v39  ;;  %v10024_v21 = vld [vmem:[#allocation44_spill] sm:$0xff] }
 0x3c9   : > { %4884 = vmatmul.mubr.bf16.gmra.mxu1 %v4064_v44  ;;  %v3938_v54 = vmul.bf16 %v3874_v1, %v3426_v50  ;;  %v4005_v60 = vpack.c.bf16 %v3300_v56, %v3296_v4  ;;  %v3941_v58 = vmul.bf16 %v3877_v53, %v3429_v7  ;;  %v9338_v49 = vrot.slane %v5099_v52, %v10024_v21 }
 0x3ca   : > { %v3940_v0 = vmul.bf16 %v3876_v47, %v3428_v40  ;;  %v4067_v34 = vmul.bf16 %v4003_v10, %v3939_v59  ;;  %v9341_v45 = vrot.slane %v5099_v52, %v10025_v57 }
 0x3cb   : > { %v4066_v62 = vmul.bf16 %v4002_v35, %v3938_v54  ;;  %v4069_v20 = vmul.bf16 %v4005_v60, %v3941_v58 }
 0x3cc   : > { %v4068_v55 = vmul.bf16 %v4004_v6, %v3940_v0  ;;  %4700 = vmatprep.mubr.bf16.mxu0 %v4067_v34 }
 0x3cd   : > { %4893 = vmatprep.mubr.bf16.mxu1 %v4069_v20 }
 0x3d0   : > { %4701 = vmatmul.mubr.bf16.gmra.mxu0 %v4066_v62 }
 0x3d1   : > { %4894 = vmatmul.mubr.bf16.gmra.mxu1 %v4068_v55 }
 0x417   : > { %v4552_v37 = vpop.f32.mrf.mxu0 }
 0x418   : > { %v4745_v32 = vpop.f32.mrf.mxu1 }
 0x419   : > { %v4746_v63 = vadd.f32 %v4745_v32, %v4552_v37  ;;  %v4554_v25 = vpop.f32.mrf.mxu0 }
 0x41a   : > { %v4747_v27 = vpop.f32.mrf.mxu1 }
 0x41b   : > { %v5111_v13 = vadd.f32 %v9338_v49, %v4746_v63  ;;  %v4748_v31 = vadd.f32 %v4747_v27, %v4554_v25  ;;  %v4556_v61 = vpop.f32.mrf.mxu0 }
 0x41c   : > { %v4749_v38 = vpop.f32.mrf.mxu1 }
 0x41d   : > { %5175 = vst [vmem:[%s9346_s27] sm:$0xff] %v5111_v13  ;;  %v5112_v41 = vadd.f32 %v9341_v45, %v4748_v31  ;;  %v4750_v2 = vadd.f32 %v4749_v38, %v4556_v61  ;;  %v4558_v42 = vpop.f32.mrf.mxu0 }
 0x41e   : > { %v4751_v26 = vpop.f32.mrf.mxu1 }
 0x41f   : > { %5176 = vst [vmem:[%s9346_s27 + $0x8] sm:$0xff] %v5112_v41  ;;  %v5113_v8 = vadd.f32 %v9338_v49, %v4750_v2  ;;  %v4752_v24 = vadd.f32 %v4751_v26, %v4558_v42  ;;  %v4562_v15 = vpop.f32.mrf.mxu0 }
 0x420   : > { %v4755_v36 = vpop.f32.mrf.mxu1 }
 0x421   : > { %5177 = vst [vmem:[%s9346_s27 + $0x10] sm:$0xff] %v5113_v8  ;;  %v5114_v18 = vadd.f32 %v9341_v45, %v4752_v24  ;;  %v4756_v16 = vadd.f32 %v4755_v36, %v4562_v15  ;;  %v4564_v23 = vpop.f32.mrf.mxu0 }
 0x422   : > { %v4757_v3 = vpop.f32.mrf.mxu1 }
 0x423   : > { %5178 = vst [vmem:[%s9346_s27 + $0x18] sm:$0xff] %v5114_v18  ;;  %v5115_v48 = vadd.f32 %v9338_v49, %v4756_v16  ;;  %v4758_v46 = vadd.f32 %v4757_v3, %v4564_v23  ;;  %v4566_v14 = vpop.f32.mrf.mxu0 }
 0x424   : > { %v4759_v43 = vpop.f32.mrf.mxu1 }
 0x425   : > { %5179 = vst [vmem:[%s9346_s27 + $0x20] sm:$0xff] %v5115_v48  ;;  %v5116_v22 = vadd.f32 %v9341_v45, %v4758_v46  ;;  %v4760_v50 = vadd.f32 %v4759_v43, %v4566_v14  ;;  %v4568_v30 = vpop.f32.mrf.mxu0 }
 0x426   : > { %v4761_v44 = vpop.f32.mrf.mxu1 }
 0x427   : > { %5180 = vst [vmem:[%s9346_s27 + $0x28] sm:$0xff] %v5116_v22  ;;  %v5117_v5 = vadd.f32 %v9338_v49, %v4760_v50  ;;  %v4762_v28 = vadd.f32 %v4761_v44, %v4568_v30  ;;  %v4572_v39 = vpop.f32.mrf.mxu0 }
 0x428   : > { %v4765_v19 = vpop.f32.mrf.mxu1 }
 0x429   : > { %5181 = vst [vmem:[%s9346_s27 + $0x30] sm:$0xff] %v5117_v5  ;;  %v5118_v11 = vadd.f32 %v9341_v45, %v4762_v28  ;;  %v4766_v1 = vadd.f32 %v4765_v19, %v4572_v39  ;;  %v4574_v12 = vpop.f32.mrf.mxu0 }
 0x42a   : > { %v4767_v51 = vpop.f32.mrf.mxu1 }
 0x42b   : > { %5182 = vst [vmem:[%s9346_s27 + $0x38] sm:$0xff] %v5118_v11  ;;  %v5119_v53 = vadd.f32 %v9338_v49, %v4766_v1  ;;  %v4768_v17 = vadd.f32 %v4767_v51, %v4574_v12  ;;  %v4576_v33 = vpop.f32.mrf.mxu0 }
 0x42c   : > { %v4769_v47 = vpop.f32.mrf.mxu1 }
 0x42d   : > { %5183 = vst [vmem:[%s9346_s27 + $0x40] sm:$0xff] %v5119_v53  ;;  %v5120_v29 = vadd.f32 %v9341_v45, %v4768_v17  ;;  %v4770_v9 = vadd.f32 %v4769_v47, %v4576_v33  ;;  %v4578_v4 = vpop.f32.mrf.mxu0 }
 0x42e   : > { %v4771_v35 = vpop.f32.mrf.mxu1 }
 0x42f   : > { %5184 = vst [vmem:[%s9346_s27 + $0x48] sm:$0xff] %v5120_v29  ;;  %v5121_v56 = vadd.f32 %v9338_v49, %v4770_v9  ;;  %v4772_v7 = vadd.f32 %v4771_v35, %v4578_v4  ;;  %v4582_v40 = vpop.f32.mrf.mxu0 }
 0x430   : > { %v4775_v6 = vpop.f32.mrf.mxu1 }
 0x431   : > { %5185 = vst [vmem:[%s9346_s27 + $0x50] sm:$0xff] %v5121_v56  ;;  %v5122_v10 = vadd.f32 %v9341_v45, %v4772_v7  ;;  %v4776_v59 = vadd.f32 %v4775_v6, %v4582_v40  ;;  %v4584_v54 = vpop.f32.mrf.mxu0 }
 0x432   : > { %v4777_v60 = vpop.f32.mrf.mxu1 }
 0x433   : > { %5186 = vst [vmem:[%s9346_s27 + $0x58] sm:$0xff] %v5122_v10  ;;  %v5123_v58 = vadd.f32 %v9338_v49, %v4776_v59  ;;  %v4778_v0 = vadd.f32 %v4777_v60, %v4584_v54  ;;  %v4586_v34 = vpop.f32.mrf.mxu0 }
 0x434   : > { %v4779_v62 = vpop.f32.mrf.mxu1 }
 0x435   : > { %5187 = vst [vmem:[%s9346_s27 + $0x60] sm:$0xff] %v5123_v58  ;;  %v5124_v20 = vadd.f32 %v9341_v45, %v4778_v0  ;;  %v4780_v55 = vadd.f32 %v4779_v62, %v4586_v34  ;;  %v4588_v52 = vpop.f32.mrf.mxu0 }
 0x436   : > { %v4781_v37 = vpop.f32.mrf.mxu1 }
 0x437   : > { %5188 = vst [vmem:[%s9346_s27 + $0x68] sm:$0xff] %v5124_v20  ;;  %v5125_v21 = vadd.f32 %v9338_v49, %v4780_v55  ;;  %v4782_v32 = vadd.f32 %v4781_v37, %v4588_v52  ;;  %v4592_v63 = vpop.f32.mrf.mxu0 }
 0x438   : > { %v4785_v25 = vpop.f32.mrf.mxu1 }
 0x439   : > { %5189 = vst [vmem:[%s9346_s27 + $0x70] sm:$0xff] %v5125_v21  ;;  %v5126_v57 = vadd.f32 %v9341_v45, %v4782_v32  ;;  %v4786_v27 = vadd.f32 %v4785_v25, %v4592_v63  ;;  %v4594_v13 = vpop.f32.mrf.mxu0 }
 0x43a   : > { %v4787_v31 = vpop.f32.mrf.mxu1 }
 0x43b   : > { %5190 = vst [vmem:[%s9346_s27 + $0x78] sm:$0xff] %v5126_v57  ;;  %v5127_v61 = vadd.f32 %v9338_v49, %v4786_v27  ;;  %v4788_v38 = vadd.f32 %v4787_v31, %v4594_v13  ;;  %v4596_v41 = vpop.f32.mrf.mxu0 }
 0x43c   : > { %v4789_v2 = vpop.f32.mrf.mxu1 }
 0x43d   : > { %5191 = vst [vmem:[%s9346_s27 + $0x80] sm:$0xff] %v5127_v61  ;;  %v5128_v42 = vadd.f32 %v9341_v45, %v4788_v38  ;;  %v4790_v26 = vadd.f32 %v4789_v2, %v4596_v41  ;;  %v4598_v8 = vpop.f32.mrf.mxu0 }
 0x43e   : > { %v4791_v24 = vpop.f32.mrf.mxu1 }
 0x43f   : > { %5192 = vst [vmem:[%s9346_s27 + $0x88] sm:$0xff] %v5128_v42  ;;  %v5129_v15 = vadd.f32 %v9338_v49, %v4790_v26  ;;  %v4792_v36 = vadd.f32 %v4791_v24, %v4598_v8  ;;  %v4602_v18 = vpop.f32.mrf.mxu0 }
 0x440   : > { %v4795_v16 = vpop.f32.mrf.mxu1 }
 0x441   : > { %5193 = vst [vmem:[%s9346_s27 + $0x90] sm:$0xff] %v5129_v15  ;;  %v5130_v23 = vadd.f32 %v9341_v45, %v4792_v36  ;;  %v4796_v3 = vadd.f32 %v4795_v16, %v4602_v18  ;;  %v4604_v48 = vpop.f32.mrf.mxu0 }
 0x442   : > { %v4797_v46 = vpop.f32.mrf.mxu1 }
 0x443   : > { %5194 = vst [vmem:[%s9346_s27 + $0x98] sm:$0xff] %v5130_v23  ;;  %v5131_v14 = vadd.f32 %v9338_v49, %v4796_v3  ;;  %v4798_v43 = vadd.f32 %v4797_v46, %v4604_v48  ;;  %v4606_v22 = vpop.f32.mrf.mxu0 }
 0x444   : > { %v4799_v50 = vpop.f32.mrf.mxu1 }
 0x445   : > { %5195 = vst [vmem:[%s9346_s27 + $0xa0] sm:$0xff] %v5131_v14  ;;  %v5132_v30 = vadd.f32 %v9341_v45, %v4798_v43  ;;  %v4800_v44 = vadd.f32 %v4799_v50, %v4606_v22  ;;  %v4608_v5 = vpop.f32.mrf.mxu0 }
 0x446   : > { %v4801_v28 = vpop.f32.mrf.mxu1 }
 0x447   : > { %5196 = vst [vmem:[%s9346_s27 + $0xa8] sm:$0xff] %v5132_v30  ;;  %v5133_v39 = vadd.f32 %v9338_v49, %v4800_v44  ;;  %v4802_v19 = vadd.f32 %v4801_v28, %v4608_v5  ;;  %v4612_v11 = vpop.f32.mrf.mxu0 }
 0x448   : > { %v4805_v1 = vpop.f32.mrf.mxu1 }
 0x449   : > { %5197 = vst [vmem:[%s9346_s27 + $0xb0] sm:$0xff] %v5133_v39  ;;  %v5134_v12 = vadd.f32 %v9341_v45, %v4802_v19  ;;  %v4806_v51 = vadd.f32 %v4805_v1, %v4612_v11  ;;  %v4614_v53 = vpop.f32.mrf.mxu0 }
 0x44a   : > { %v4807_v17 = vpop.f32.mrf.mxu1 }
 0x44b   : > { %5198 = vst [vmem:[%s9346_s27 + $0xb8] sm:$0xff] %v5134_v12  ;;  %v5135_v33 = vadd.f32 %v9338_v49, %v4806_v51  ;;  %v4808_v47 = vadd.f32 %v4807_v17, %v4614_v53  ;;  %v4616_v29 = vpop.f32.mrf.mxu0 }
 0x44c   : > { %v4809_v9 = vpop.f32.mrf.mxu1 }
 0x44d   : > { %5199 = vst [vmem:[%s9346_s27 + $0xc0] sm:$0xff] %v5135_v33  ;;  %v5136_v4 = vadd.f32 %v9341_v45, %v4808_v47  ;;  %v4810_v35 = vadd.f32 %v4809_v9, %v4616_v29  ;;  %v4618_v56 = vpop.f32.mrf.mxu0 }
 0x44e   : > { %v4811_v7 = vpop.f32.mrf.mxu1 }
 0x44f   : > { %5200 = vst [vmem:[%s9346_s27 + $0xc8] sm:$0xff] %v5136_v4  ;;  %v5137_v40 = vadd.f32 %v9338_v49, %v4810_v35  ;;  %v4812_v6 = vadd.f32 %v4811_v7, %v4618_v56  ;;  %v4622_v10 = vpop.f32.mrf.mxu0 }
 0x450   : > { %v4815_v59 = vpop.f32.mrf.mxu1 }
 0x451   : > { %5201 = vst [vmem:[%s9346_s27 + $0xd0] sm:$0xff] %v5137_v40  ;;  %v5138_v54 = vadd.f32 %v9341_v45, %v4812_v6  ;;  %v4816_v60 = vadd.f32 %v4815_v59, %v4622_v10  ;;  %v4624_v58 = vpop.f32.mrf.mxu0 }
 0x452   : > { %v4817_v0 = vpop.f32.mrf.mxu1 }
 0x453   : > { %5202 = vst [vmem:[%s9346_s27 + $0xd8] sm:$0xff] %v5138_v54  ;;  %v5139_v34 = vadd.f32 %v9338_v49, %v4816_v60  ;;  %v4818_v62 = vadd.f32 %v4817_v0, %v4624_v58  ;;  %v4626_v20 = vpop.f32.mrf.mxu0 }
 0x454   : > { %v4819_v55 = vpop.f32.mrf.mxu1 }
 0x455   : > { %5203 = vst [vmem:[%s9346_s27 + $0xe0] sm:$0xff] %v5139_v34  ;;  %v5140_v52 = vadd.f32 %v9341_v45, %v4818_v62  ;;  %v4820_v37 = vadd.f32 %v4819_v55, %v4626_v20  ;;  %v4628_v21 = vpop.f32.mrf.mxu0 }
 0x456   : > { %v4821_v32 = vpop.f32.mrf.mxu1 }
 0x457   : > { %5204 = vst [vmem:[%s9346_s27 + $0xe8] sm:$0xff] %v5140_v52  ;;  %v5141_v63 = vadd.f32 %v9338_v49, %v4820_v37  ;;  %v4822_v25 = vadd.f32 %v4821_v32, %v4628_v21  ;;  %v4632_v57 = vpop.f32.mrf.mxu0 }
 0x458   : > { %v4825_v27 = vpop.f32.mrf.mxu1 }
 0x459   : > { %5205 = vst [vmem:[%s9346_s27 + $0xf0] sm:$0xff] %v5141_v63  ;;  %v5142_v13 = vadd.f32 %v9341_v45, %v4822_v25  ;;  %v4826_v31 = vadd.f32 %v4825_v27, %v4632_v57  ;;  %v4634_v61 = vpop.f32.mrf.mxu0 }
 0x45a   : > { %v4827_v38 = vpop.f32.mrf.mxu1 }
 0x45b   : > { %5206 = vst [vmem:[%s9346_s27 + $0xf8] sm:$0xff] %v5142_v13  ;;  %v5143_v41 = vadd.f32 %v9338_v49, %v4826_v31  ;;  %v4828_v2 = vadd.f32 %v4827_v38, %v4634_v61  ;;  %v4636_v42 = vpop.f32.mrf.mxu0 }
 0x45c   : > { %v4829_v26 = vpop.f32.mrf.mxu1 }
 0x45d   : > { %5207 = vst [vmem:[%s9346_s27 + $0x100] sm:$0xff] %v5143_v41  ;;  %v5144_v8 = vadd.f32 %v9341_v45, %v4828_v2  ;;  %v4830_v24 = vadd.f32 %v4829_v26, %v4636_v42  ;;  %v4638_v15 = vpop.f32.mrf.mxu0 }
 0x45e   : > { %v4831_v36 = vpop.f32.mrf.mxu1 }
 0x45f   : > { %5208 = vst [vmem:[%s9346_s27 + $0x108] sm:$0xff] %v5144_v8  ;;  %v5145_v18 = vadd.f32 %v9338_v49, %v4830_v24  ;;  %v4832_v16 = vadd.f32 %v4831_v36, %v4638_v15  ;;  %v4642_v23 = vpop.f32.mrf.mxu0 }
 0x460   : > { %v4835_v3 = vpop.f32.mrf.mxu1 }
 0x461   : > { %5209 = vst [vmem:[%s9346_s27 + $0x110] sm:$0xff] %v5145_v18  ;;  %v5146_v48 = vadd.f32 %v9341_v45, %v4832_v16  ;;  %v4836_v46 = vadd.f32 %v4835_v3, %v4642_v23  ;;  %v4644_v14 = vpop.f32.mrf.mxu0 }
 0x462   : > { %v4837_v43 = vpop.f32.mrf.mxu1 }
 0x463   : > { %5210 = vst [vmem:[%s9346_s27 + $0x118] sm:$0xff] %v5146_v48  ;;  %v5147_v22 = vadd.f32 %v9338_v49, %v4836_v46  ;;  %v4838_v50 = vadd.f32 %v4837_v43, %v4644_v14  ;;  %v4646_v30 = vpop.f32.mrf.mxu0 }
 0x464   : > { %v4839_v44 = vpop.f32.mrf.mxu1 }
 0x465   : > { %5211 = vst [vmem:[%s9346_s27 + $0x120] sm:$0xff] %v5147_v22  ;;  %v5148_v5 = vadd.f32 %v9341_v45, %v4838_v50  ;;  %v4840_v28 = vadd.f32 %v4839_v44, %v4646_v30  ;;  %v4648_v39 = vpop.f32.mrf.mxu0 }
 0x466   : > { %v4841_v19 = vpop.f32.mrf.mxu1 }
 0x467   : > { %5212 = vst [vmem:[%s9346_s27 + $0x128] sm:$0xff] %v5148_v5  ;;  %v5149_v11 = vadd.f32 %v9338_v49, %v4840_v28  ;;  %v4842_v1 = vadd.f32 %v4841_v19, %v4648_v39  ;;  %v4652_v12 = vpop.f32.mrf.mxu0 }
 0x468   : > { %v4845_v51 = vpop.f32.mrf.mxu1 }
 0x469   : > { %5213 = vst [vmem:[%s9346_s27 + $0x130] sm:$0xff] %v5149_v11  ;;  %v5150_v53 = vadd.f32 %v9341_v45, %v4842_v1  ;;  %v4846_v17 = vadd.f32 %v4845_v51, %v4652_v12  ;;  %v4654_v33 = vpop.f32.mrf.mxu0 }
 0x46a   : > { %v4847_v47 = vpop.f32.mrf.mxu1 }
 0x46b   : > { %5214 = vst [vmem:[%s9346_s27 + $0x138] sm:$0xff] %v5150_v53  ;;  %v5151_v29 = vadd.f32 %v9338_v49, %v4846_v17  ;;  %v4848_v9 = vadd.f32 %v4847_v47, %v4654_v33  ;;  %v4656_v4 = vpop.f32.mrf.mxu0 }
 0x46c   : > { %v4849_v35 = vpop.f32.mrf.mxu1 }
 0x46d   : > { %5215 = vst [vmem:[%s9346_s27 + $0x140] sm:$0xff] %v5151_v29  ;;  %v5152_v56 = vadd.f32 %v9341_v45, %v4848_v9  ;;  %v4850_v7 = vadd.f32 %v4849_v35, %v4656_v4  ;;  %v4658_v40 = vpop.f32.mrf.mxu0 }
 0x46e   : > { %v4851_v6 = vpop.f32.mrf.mxu1 }
 0x46f   : > { %5216 = vst [vmem:[%s9346_s27 + $0x148] sm:$0xff] %v5152_v56  ;;  %v5153_v10 = vadd.f32 %v9338_v49, %v4850_v7  ;;  %v4852_v59 = vadd.f32 %v4851_v6, %v4658_v40  ;;  %v4662_v54 = vpop.f32.mrf.mxu0 }
 0x470   : > { %v4855_v60 = vpop.f32.mrf.mxu1 }
 0x471   : > { %5217 = vst [vmem:[%s9346_s27 + $0x150] sm:$0xff] %v5153_v10  ;;  %v5154_v58 = vadd.f32 %v9341_v45, %v4852_v59  ;;  %v4856_v0 = vadd.f32 %v4855_v60, %v4662_v54  ;;  %v4664_v34 = vpop.f32.mrf.mxu0 }
 0x472   : > { %v4857_v62 = vpop.f32.mrf.mxu1 }
 0x473   : > { %5218 = vst [vmem:[%s9346_s27 + $0x158] sm:$0xff] %v5154_v58  ;;  %v5155_v20 = vadd.f32 %v9338_v49, %v4856_v0  ;;  %v4858_v55 = vadd.f32 %v4857_v62, %v4664_v34  ;;  %v4666_v52 = vpop.f32.mrf.mxu0 }
 0x474   : > { %v4859_v37 = vpop.f32.mrf.mxu1 }
 0x475   : > { %5219 = vst [vmem:[%s9346_s27 + $0x160] sm:$0xff] %v5155_v20  ;;  %v5156_v21 = vadd.f32 %v9341_v45, %v4858_v55  ;;  %v4860_v32 = vadd.f32 %v4859_v37, %v4666_v52  ;;  %v4668_v63 = vpop.f32.mrf.mxu0 }
 0x476   : > { %v4861_v25 = vpop.f32.mrf.mxu1 }
 0x477   : > { %5220 = vst [vmem:[%s9346_s27 + $0x168] sm:$0xff] %v5156_v21  ;;  %v5157_v57 = vadd.f32 %v9338_v49, %v4860_v32  ;;  %v4862_v27 = vadd.f32 %v4861_v25, %v4668_v63 }
 0x478   : > { %v4672_v13 = vpop.f32.mrf.mxu0 }
 0x479   : > { %v4865_v31 = vpop.f32.mrf.mxu1  ;;  %5221 = vst [vmem:[%s9346_s27 + $0x170] sm:$0xff] %v5157_v57  ;;  %v5158_v61 = vadd.f32 %v9341_v45, %v4862_v27 }
 0x47a   : > { %v4866_v38 = vadd.f32 %v4865_v31, %v4672_v13  ;;  %v4674_v41 = vpop.f32.mrf.mxu0 }
 0x47b   : > { %v4867_v2 = vpop.f32.mrf.mxu1  ;;  %5222 = vst [vmem:[%s9346_s27 + $0x178] sm:$0xff] %v5158_v61 }
 0x47c   : > { %v5159_v42 = vadd.f32 %v9338_v49, %v4866_v38  ;;  %v4868_v26 = vadd.f32 %v4867_v2, %v4674_v41  ;;  %v4676_v8 = vpop.f32.mrf.mxu0 }
 0x47d   : > { %v4869_v24 = vpop.f32.mrf.mxu1 }
 0x47e   : > { %5223 = vst [vmem:[%s9346_s27 + $0x180] sm:$0xff] %v5159_v42  ;;  %v5160_v15 = vadd.f32 %v9341_v45, %v4868_v26  ;;  %v4870_v36 = vadd.f32 %v4869_v24, %v4676_v8  ;;  %v4678_v18 = vpop.f32.mrf.mxu0 }
 0x47f   : > { %v4871_v16 = vpop.f32.mrf.mxu1 }
 0x480   : > { %5224 = vst [vmem:[%s9346_s27 + $0x188] sm:$0xff] %v5160_v15  ;;  %v5161_v23 = vadd.f32 %v9338_v49, %v4870_v36  ;;  %v4872_v3 = vadd.f32 %v4871_v16, %v4678_v18  ;;  %v4682_v48 = vpop.f32.mrf.mxu0 }
 0x481   : > { %v4875_v46 = vpop.f32.mrf.mxu1 }
 0x482   : > { %5225 = vst [vmem:[%s9346_s27 + $0x190] sm:$0xff] %v5161_v23  ;;  %v5162_v14 = vadd.f32 %v9341_v45, %v4872_v3  ;;  %v4876_v43 = vadd.f32 %v4875_v46, %v4682_v48  ;;  %v4684_v22 = vpop.f32.mrf.mxu0 }
 0x483   : > { %v4877_v50 = vpop.f32.mrf.mxu1 }
 0x484   : > { %5226 = vst [vmem:[%s9346_s27 + $0x198] sm:$0xff] %v5162_v14  ;;  %v5163_v30 = vadd.f32 %v9338_v49, %v4876_v43  ;;  %v4878_v44 = vadd.f32 %v4877_v50, %v4684_v22  ;;  %v4686_v5 = vpop.f32.mrf.mxu0 }
 0x485   : > { %v4879_v28 = vpop.f32.mrf.mxu1 }
 0x486   : > { %5227 = vst [vmem:[%s9346_s27 + $0x1a0] sm:$0xff] %v5163_v30  ;;  %v5164_v39 = vadd.f32 %v9341_v45, %v4878_v44  ;;  %v4880_v19 = vadd.f32 %v4879_v28, %v4686_v5  ;;  %v4688_v11 = vpop.f32.mrf.mxu0 }
 0x487   : > { %v4881_v1 = vpop.f32.mrf.mxu1 }
 0x488   : > { %5228 = vst [vmem:[%s9346_s27 + $0x1a8] sm:$0xff] %v5164_v39  ;;  %v5165_v12 = vadd.f32 %v9338_v49, %v4880_v19  ;;  %v4882_v51 = vadd.f32 %v4881_v1, %v4688_v11  ;;  %v4692_v53 = vpop.f32.mrf.mxu0 }
 0x489   : > { %v4885_v17 = vpop.f32.mrf.mxu1 }
 0x48a   : > { %5229 = vst [vmem:[%s9346_s27 + $0x1b0] sm:$0xff] %v5165_v12  ;;  %v5166_v33 = vadd.f32 %v9341_v45, %v4882_v51  ;;  %v4886_v47 = vadd.f32 %v4885_v17, %v4692_v53  ;;  %v4694_v29 = vpop.f32.mrf.mxu0 }
 0x48b   : > { %v4887_v9 = vpop.f32.mrf.mxu1 }
 0x48c   : > { %5230 = vst [vmem:[%s9346_s27 + $0x1b8] sm:$0xff] %v5166_v33  ;;  %v5167_v4 = vadd.f32 %v9338_v49, %v4886_v47  ;;  %v4888_v35 = vadd.f32 %v4887_v9, %v4694_v29  ;;  %v4696_v56 = vpop.f32.mrf.mxu0 }
 0x48d   : > { %v4889_v7 = vpop.f32.mrf.mxu1 }
 0x48e   : > { %5231 = vst [vmem:[%s9346_s27 + $0x1c0] sm:$0xff] %v5167_v4  ;;  %v5168_v40 = vadd.f32 %v9341_v45, %v4888_v35  ;;  %v4890_v6 = vadd.f32 %v4889_v7, %v4696_v56  ;;  %v4698_v10 = vpop.f32.mrf.mxu0 }
 0x48f   : > { %v4891_v59 = vpop.f32.mrf.mxu1 }
 0x490   : > { %5232 = vst [vmem:[%s9346_s27 + $0x1c8] sm:$0xff] %v5168_v40  ;;  %v5169_v54 = vadd.f32 %v9338_v49, %v4890_v6  ;;  %v4892_v60 = vadd.f32 %v4891_v59, %v4698_v10  ;;  %v4702_v58 = vpop.f32.mrf.mxu0 }
 0x491   : > { %v4895_v0 = vpop.f32.mrf.mxu1 }
 0x492   : > { %5233 = vst [vmem:[%s9346_s27 + $0x1d0] sm:$0xff] %v5169_v54  ;;  %v5170_v34 = vadd.f32 %v9341_v45, %v4892_v60  ;;  %v4896_v62 = vadd.f32 %v4895_v0, %v4702_v58  ;;  %v4704_v20 = vpop.f32.mrf.mxu0 }
 0x493   : > { %v4897_v55 = vpop.f32.mrf.mxu1 }
 0x494   : > { %5234 = vst [vmem:[%s9346_s27 + $0x1d8] sm:$0xff] %v5170_v34  ;;  %v5171_v52 = vadd.f32 %v9338_v49, %v4896_v62  ;;  %v4898_v37 = vadd.f32 %v4897_v55, %v4704_v20  ;;  %v4706_v21 = vpop.f32.mrf.mxu0 }
 0x495   : > { %v4899_v32 = vpop.f32.mrf.mxu1 }
 0x496   : > { %5235 = vst [vmem:[%s9346_s27 + $0x1e0] sm:$0xff] %v5171_v52  ;;  %v5172_v63 = vadd.f32 %v9341_v45, %v4898_v37  ;;  %v4900_v25 = vadd.f32 %v4899_v32, %v4706_v21  ;;  %v4708_v57 = vpop.f32.mrf.mxu0 }
 0x497   : > { %v4901_v27 = vpop.f32.mrf.mxu1 }
 0x498   : > { %5236 = vst [vmem:[%s9346_s27 + $0x1e8] sm:$0xff] %v5172_v63  ;;  %v5173_v13 = vadd.f32 %v9338_v49, %v4900_v25  ;;  %v4902_v31 = vadd.f32 %v4901_v27, %v4708_v57 }
 0x49a   : > { %5237 = vst [vmem:[%s9346_s27 + $0x1f0] sm:$0xff] %v5173_v13  ;;  %v5174_v61 = vadd.f32 %v9341_v45, %v4902_v31 }
 0x49c   : > { %5238 = vst [vmem:[%s9346_s27 + $0x1f8] sm:$0xff] %v5174_v61 }
 0x49d   : > { %6536 = shalt.err (!%p6533_p11)
}
 0x49e   : > { %s6537_s3 = scalar_lea.hbm %s9477_s2, 8192  ;;  %s6541_s22 = scalar_lea.hbm %s9539_s9, 16384 }
 0x49f   : > { %p6538_p3 = scmp.ne.s32.totalorder %s9477_s2, %s6537_s3  ;;  %p6542_p10 = scmp.lt.s32.totalorder %s9477_s2, %s9539_s9 }
 0x4a0   : > { %p6543_p13 = scmp.lt.s32.totalorder %s6541_s22, %s6537_s3 }
 0x4a1   : > { %p6539_p4 = pnand %p6538_p3, %p6803_p12 }
 0x4a2   : > { %p6544_p6 = por %p6543_p13, %p6542_p10 }
 0x4a3   : > { %p6540_p1 = pneg %p6539_p4 }
 0x4a5   : > { %p6545_p2 = pnand %p6544_p6, %p6540_p1 }
 0x4a7   : > { %6548 = shalt.err (!%p6545_p2)
}
 0x4a8   : > { %s6628_s27 = smov 256   ;;  %s6629_s26 = smov 16  }
 0x4a9   : > { %5788 = dma.vmem_to_hbm [thread:$0]  (%p6803_p12), %s9479_s21, 8192, %s9477_s2, %s5240_s12, %s6628_s27, %s6628_s27, %s6629_s26  }
 0x4aa PF: > { %s5269_s24 = sand.u32 1, %s6595_s30   ;;  %p10026_p7 = scmp.ge.s32.totalorder %s6615_s14, 2 }
 0x4ab   : > { %s5270_s1 = scalar_lea.sflag [#allocation6], %s5269_s24 }
 0x4ac   : > { %p5811_p5 = pnand %p10026_p7, %p6811_p0 }
 0x4ae   : > { %p5812_p8 = pneg %p5811_p5 }
 0x4b0   : > { %6590 = dma.done.wait (%p5812_p8), %s5270_s1, 8192  }
 0x4b1   : > { %6592 = vsyncadd (%p5812_p8), %s5270_s1, 4294959104  ;;  %s28_s14 = sadd.s32 1, %s6615_s14   ;;  %s10027_s15 = sld [smem:[#allocation21_spill]] }
 0x4b2   : > { %p25_p9 = scmp.ge.s32.totalorder %s28_s14, 4   ;;  %s10028_s30 = smov %s6599_s10 }
 0x4b3   : > { %s10029_s10 = smov %s6603_s11  ;;  %s10030_s11 = smov %s6809_s25 }
 0x4b4   : > { %s10031_s12 = smov %s6611_s13  ;;  %27 = sbr.rel (!%p25_p9) target bundleno = 15 (0xf), region = 138 }
 0x4b7   : > { %s10032_s13 = smov %s10027_s15 }
 0x4b9   :  { %5275 = vsyncpa [#allocation5], 1 }
 0x4ba   :  { %5277 = vsyncpa [#allocation5 + $0x1], 1 }
 0x4bb   :  { %5278 = vsyncpa [#allocation8], 1 }
 0x4bc   :  { %5279 = vsyncpa [#allocation11], 1 }
 0x4bd   :  { %5280 = vsyncpa [#allocation14], 1 }
 0x4be   :  { %5281 = vsyncpa [#allocation6], 1 }
 0x4bf   :  { %5283 = vsyncpa [#allocation6 + $0x1], 1 }

</bundles_post_ra>
